<compile_context>
chip_gen: v5e
topology: v5e:2x2
jax: 0.10.0
libtpu: 0.0.40
codegen_flags: <defaults>
</compile_context>

<pallas_src>
import math

import jax
import jax.numpy as jnp
from jax.experimental import pallas as pl
from jax.experimental.pallas import tpu as pltpu

# ---------------- problem sizes ----------------
BATCH = 2
VEC_DIM = 8
IMG_SIZE = 16                     # image state is (3, 16, 16) NCHW
HIDDEN_SIZE = 32
ACTION_SIZE = 4
HIDDEN_UNITS = (400, 300)

C1_IN, C1_OUT = 3, 16
C2_OUT = 32
H1 = W1 = IMG_SIZE                # 16 : conv1 spatial size
H2 = W2 = IMG_SIZE // 2           # 8  : after pool1
H3 = W3 = IMG_SIZE // 4           # 4  : after pool2
AFTER_CONV_SIZE = C2_OUT * H3 * W3          # 512
SUM_HIDDEN_DIM = 2 * HIDDEN_SIZE            # two state branches
EPS = 1e-5
NEG_SLOPE = 0.01                  # nn.LeakyReLU default

K1 = 9 * C1_IN                    # 27  : conv1 im2col depth
K1P = 32                          # conv1 im2col depth padded to a clean vector width
K2 = 9 * C1_OUT                   # 144 : conv2 im2col depth
FC1_PAD = 512                     # 400 -> 512 (lane-dense)
FC2_PAD = 384                     # 300 -> 384 (lane-dense)


# ---------------- the fused kernel ----------------
def actor_kernel(
    vec_ref, im1_ref,
    w1_ref, w2_ref, wt_ref, vw_ref,
    fw1a_ref, fw1b_ref, fw2_ref, fw3_ref,
    ch_ref, fcb_ref,
    out_ref,
    y1_ref, xp2_ref, ph2_ref,
):
    f32 = jnp.float32
    n = vec_ref.shape[0]
    m1 = n * H1 * W1                                  # 512
    m2 = n * H2 * W2                                  # 128

    # ---- packed per-channel / bias params (one (8,128) tile + one (3,512) tile) ----
    b1  = ch_ref[0:1, 0:C1_OUT]
    g1  = ch_ref[1:2, 0:C1_OUT]
    be1 = ch_ref[2:3, 0:C1_OUT]
    b2  = ch_ref[3:4, 0:C2_OUT]
    g2  = ch_ref[4:5, 0:C2_OUT]
    be2 = ch_ref[5:6, 0:C2_OUT]
    bt  = ch_ref[6:7, 0:HIDDEN_SIZE]
    vb  = ch_ref[7:8, 0:HIDDEN_SIZE]
    fb1 = fcb_ref[0:1, :]
    fb2 = fcb_ref[1:2, 0:FC2_PAD]
    fb3 = fcb_ref[2:3, 0:ACTION_SIZE]

    # ---- conv1: single K=32 GEMM on the pre-built (zero-padded) im2col ----
    y1_ref[...] = (jnp.dot(im1_ref[...], w1_ref[...], preferred_element_type=f32)
                   + b1)                                           # (n*256, 16)

    # ---- maxpool(2,2) + ReLU #1, vectorized ----
    # w-pairs: two whole-tensor stride-2 reads; h-pairs: 8-aligned reshape + static index.
    w_even = y1_ref[pl.ds(0, m1 // 2, 2), :]                       # (256, 16)
    w_odd  = y1_ref[pl.ds(1, m1 // 2, 2), :]
    pw1 = jnp.maximum(w_even, w_odd).reshape(n, H2, 2, W2, C1_OUT)
    p1 = jnp.maximum(jnp.maximum(pw1[:, :, 0, :, :], pw1[:, :, 1, :, :]), 0.0)
    # p1: (n, H2, W2, 16)

    # ---- BatchNorm2d #1 (training-mode batch stats, single pass) ----
    flat1 = p1.reshape(n * H2 * W2, C1_OUT)
    inv_cnt1 = 1.0 / float(n * H2 * W2)
    mu1 = jnp.sum(flat1, axis=0, keepdims=True) * inv_cnt1
    var1 = jnp.sum(flat1 * flat1, axis=0, keepdims=True) * inv_cnt1 - mu1 * mu1
    scale1 = jax.lax.rsqrt(var1 + EPS) * g1
    shift1 = be1 - mu1 * scale1
    xp2_ref[...] = jnp.zeros(xp2_ref.shape, f32)                   # zero padding ring
    xp2_ref[:, 1:1 + H2, 1:1 + W2, :] = p1 * scale1 + shift1       # single interior store

    # ---- conv2: lane-concat the 9 taps -> one K=144 GEMM ----
    taps = [xp2_ref[:, dy:dy + H2, dx:dx + W2, :]
            for dy in range(3) for dx in range(3)]                 # each (n,8,8,16)
    im2 = jnp.concatenate(taps, axis=-1).reshape(m2, K2)           # (n*64, 144)
    acc2 = (jnp.dot(im2, w2_ref[...], preferred_element_type=f32)
            + b2)                                                  # (n*64, 32)

    # ---- maxpool(2,2) + ReLU #2, vectorized ----
    # h-pairs first (8-aligned reshape + static index), then w-pairs via stride-2 reads.
    r2 = acc2.reshape(n, H3, 2, W2, C2_OUT)
    ph2_ref[...] = jnp.maximum(r2[:, :, 0, :, :],
                               r2[:, :, 1, :, :]).reshape(n * H3 * W2, C2_OUT)
    w_even2 = ph2_ref[pl.ds(0, n * H3 * W3, 2), :]                 # (32, 32)
    w_odd2  = ph2_ref[pl.ds(1, n * H3 * W3, 2), :]
    p2 = jnp.maximum(jnp.maximum(w_even2, w_odd2), 0.0)            # (n*16, 32)

    # ---- BatchNorm2d #2 (single pass) ----
    inv_cnt2 = 1.0 / float(n * H3 * W3)
    mu2 = jnp.sum(p2, axis=0, keepdims=True) * inv_cnt2
    var2 = jnp.sum(p2 * p2, axis=0, keepdims=True) * inv_cnt2 - mu2 * mu2
    scale2 = jax.lax.rsqrt(var2 + EPS) * g2
    shift2 = be2 - mu2 * scale2
    z2 = (p2 * scale2 + shift2).reshape(n, H3 * W3, C2_OUT)        # (n, 16, 32)

    # ---- cnn-tail Linear(512, 32): one K=512 GEMM ----
    # torch's NCHW flatten is folded into wt's row layout (r*32 + c); the flatten
    # itself is a 16-piece lane concat.
    z2_flat = jnp.concatenate([z2[:, r, :] for r in range(H3 * W3)], axis=-1)  # (n, 512)
    ifeat = jnp.dot(z2_flat, wt_ref[...], preferred_element_type=f32) + bt

    # ---- vector branch: Linear(8, 32) + ReLU ----
    vfeat = jnp.maximum(
        jnp.dot(vec_ref[...], vw_ref[...], preferred_element_type=f32) + vb, 0.0)

    # ---- fc head (concat folded into split fc1; lane-padded widths) ----
    h = (jnp.dot(vfeat, fw1a_ref[...], preferred_element_type=f32)
         + jnp.dot(ifeat, fw1b_ref[...], preferred_element_type=f32) + fb1)
    h = jnp.where(h > 0, h, NEG_SLOPE * h)
    h = jnp.dot(h, fw2_ref[...], preferred_element_type=f32) + fb2
    h = jnp.where(h > 0, h, NEG_SLOPE * h)
    h = jnp.dot(h, fw3_ref[...], preferred_element_type=f32) + fb3
    out_ref[...] = jnp.tanh(h)


# ---------------- wrapper ----------------
@jax.jit
def actor_forward(params, vec_state, img_state_nchw):
    n = vec_state.shape[0]
    # Input-side layout plumbing only: NCHW -> NHWC, zero pad, conv1 im2col (K=27 -> 32).
    img_pad = jnp.pad(jnp.transpose(img_state_nchw, (0, 2, 3, 1)),
                      ((0, 0), (1, 1), (1, 1), (0, 0)))
    taps = [img_pad[:, dy:dy + H1, dx:dx + W1, :]
            for dy in range(3) for dx in range(3)]
    im1 = jnp.concatenate(taps, axis=-1)                           # (n,16,16,27)
    im1 = jnp.pad(im1, ((0, 0), (0, 0), (0, 0), (0, K1P - K1)))
    im1 = im1.reshape(n * H1 * W1, K1P)

    args = (
        vec_state, im1,
        params["w1"], params["w2"], params["tail_wk"], params["vec_w"],
        params["fc1_wa"], params["fc1_wb"], params["fc2_wp"], params["fc3_wp"],
        params["ch_pack"], params["fcb_pack"],
    )
    vspec = pl.BlockSpec(memory_space=pltpu.MemorySpace.VMEM)
    return pl.pallas_call(
        actor_kernel,
        out_shape=jax.ShapeDtypeStruct((n, ACTION_SIZE), jnp.float32),
        in_specs=[vspec] * len(args),
        out_specs=vspec,
        scratch_shapes=[
            pltpu.VMEM((n * H1 * W1, C1_OUT), jnp.float32),         # conv1 out / pool1 staging
            pltpu.VMEM((n, H2 + 2, W2 + 2, C1_OUT), jnp.float32),   # padded conv2 input
            pltpu.VMEM((n * H3 * W2, C2_OUT), jnp.float32),         # pool2 h-stage
        ],
    )(*args)


# ---------------- deterministic parameter init (torch-equivalent layouts) ----------------
def init_params(key):
    ks = jax.random.split(key, 12)

    def u(k, shape, lim):
        return jax.random.uniform(k, shape, jnp.float32, -lim, lim)

    p = {}
    # vector backbone Linear(VEC_DIM, HIDDEN_SIZE)
    lim = 1.0 / math.sqrt(VEC_DIM)
    p["vec_w"] = u(ks[0], (VEC_DIM, HIDDEN_SIZE), lim)
    p["vec_b"] = u(ks[1], (1, HIDDEN_SIZE), lim)

    # conv1: 3 -> 16, conv2: 16 -> 32 (weights stored as (kh, kw, cin, cout))
    lim = 1.0 / math.sqrt(C1_IN * 9)
    p["conv1_w"] = u(ks[2], (3, 3, C1_IN, C1_OUT), lim)
    p["conv1_b"] = u(ks[3], (1, C1_OUT), lim)
    p["bn1_g"] = jnp.ones((1, C1_OUT), jnp.float32)
    p["bn1_b"] = jnp.zeros((1, C1_OUT), jnp.float32)
    lim = 1.0 / math.sqrt(C1_OUT * 9)
    p["conv2_w"] = u(ks[4], (3, 3, C1_OUT, C2_OUT), lim)
    p["conv2_b"] = u(ks[5], (1, C2_OUT), lim)
    p["bn2_g"] = jnp.ones((1, C2_OUT), jnp.float32)
    p["bn2_b"] = jnp.zeros((1, C2_OUT), jnp.float32)

    # cnn_tail Linear(512, HIDDEN_SIZE); rows in torch NCHW flatten order (c*16 + h*4 + w)
    lim = 1.0 / math.sqrt(AFTER_CONV_SIZE)
    p["tail_w"] = u(ks[6], (AFTER_CONV_SIZE, HIDDEN_SIZE), lim)
    p["tail_b"] = u(ks[7], (1, HIDDEN_SIZE), lim)

    # fc_body (layer_init quirk: lim = 1/sqrt(out_features); biases = 0)
    h1, h2 = HIDDEN_UNITS
    p["fc1_w"] = u(ks[8], (SUM_HIDDEN_DIM, h1), 1.0 / math.sqrt(h1))
    p["fc1_b"] = jnp.zeros((1, h1), jnp.float32)
    p["fc2_w"] = u(ks[9], (h1, h2), 1.0 / math.sqrt(h2))
    p["fc2_b"] = jnp.zeros((1, h2), jnp.float32)
    p["fc3_w"] = u(ks[10], (h2, ACTION_SIZE), 0.003 / math.sqrt(ACTION_SIZE))
    p["fc3_b"] = jnp.zeros((1, ACTION_SIZE), jnp.float32)
    return p


def prepare_params(p):
    """One-time rearrangement into the layouts the fused kernel consumes."""
    h1, h2 = HIDDEN_UNITS
    q = {"vec_w": p["vec_w"]}

    # conv weights as im2col GEMM matrices (row = (dy*3+dx)*Cin + cin)
    w1 = p["conv1_w"].reshape(K1, C1_OUT)
    q["w1"] = jnp.pad(w1, ((0, K1P - K1), (0, 0)))                 # (32, 16)
    q["w2"] = p["conv2_w"].reshape(K2, C2_OUT)                     # (144, 32)

    # Fold torch's NCHW flatten (k = c*H3*W3 + h*W3 + w) into the tail weight:
    # kernel layout is row = r*C2_OUT + c with r = h*W3 + w.
    q["tail_wk"] = jnp.transpose(
        p["tail_w"].reshape(C2_OUT, H3 * W3, HIDDEN_SIZE), (1, 0, 2)
    ).reshape(AFTER_CONV_SIZE, HIDDEN_SIZE)                        # (512, 32)

    # Split fc1 so concat([vfeat, ifeat]) @ fc1_w == vfeat @ a + ifeat @ b, pad 400->512.
    q["fc1_wa"] = jnp.pad(p["fc1_w"][:HIDDEN_SIZE], ((0, 0), (0, FC1_PAD - h1)))
    q["fc1_wb"] = jnp.pad(p["fc1_w"][HIDDEN_SIZE:], ((0, 0), (0, FC1_PAD - h1)))
    # fc2 padded to (512, 384), fc3 rows padded to 384 (padded activations are exactly 0).
    q["fc2_wp"] = jnp.pad(p["fc2_w"], ((0, FC1_PAD - h1), (0, FC2_PAD - h2)))
    q["fc3_wp"] = jnp.pad(p["fc3_w"], ((0, FC2_PAD - h2), (0, 0)))

    # Pack the tiny per-channel params into one (8,128) tile.
    def row(v):
        v = v.reshape(-1)
        return jnp.pad(v, (0, 128 - v.size))

    q["ch_pack"] = jnp.stack([
        row(p["conv1_b"]), row(p["bn1_g"]), row(p["bn1_b"]),
        row(p["conv2_b"]), row(p["bn2_g"]), row(p["bn2_b"]),
        row(p["tail_b"]), row(p["vec_b"]),
    ])

    # Pack the fc biases (zero at init per layer_init, kept for generality) into (3, 512).
    def frow(v):
        v = v.reshape(-1)
        return jnp.pad(v, (0, FC1_PAD - v.size))

    q["fcb_pack"] = jnp.stack([frow(p["fc1_b"]), frow(p["fc2_b"]), frow(p["fc3_b"])])
    return q


if __name__ == "__main__":
    key = jax.random.PRNGKey(0)
    pkey, vkey, ikey = jax.random.split(key, 3)
    params = prepare_params(init_params(pkey))

    # state = (vector state, image state); the numpy object-array plumbing of the
    # original Backbones.forward is replaced by explicit per-branch arrays.
    vec_state = jax.random.normal(vkey, (BATCH, VEC_DIM), jnp.float32)
    img_state = jax.random.normal(ikey, (BATCH, 3, IMG_SIZE, IMG_SIZE), jnp.float32)

    out = jax.block_until_ready(actor_forward(params, vec_state, img_state))
    assert out.shape == (BATCH, ACTION_SIZE)
    assert bool(jnp.all(jnp.isfinite(out))) and bool(jnp.all(jnp.abs(out) <= 1.0))
    print("KERNEL_OK")
</pallas_src>

<mosaic_0001>
module attributes {stable_mosaic.version = 11 : i64} {
  func.func @actor_kernel(%arg0: memref<2x8xf32, #tpu.memory_space<vmem>>, %arg1: memref<512x32xf32, #tpu.memory_space<vmem>>, %arg2: memref<32x16xf32, #tpu.memory_space<vmem>>, %arg3: memref<144x32xf32, #tpu.memory_space<vmem>>, %arg4: memref<512x32xf32, #tpu.memory_space<vmem>>, %arg5: memref<8x32xf32, #tpu.memory_space<vmem>>, %arg6: memref<32x512xf32, #tpu.memory_space<vmem>>, %arg7: memref<32x512xf32, #tpu.memory_space<vmem>>, %arg8: memref<512x384xf32, #tpu.memory_space<vmem>>, %arg9: memref<384x4xf32, #tpu.memory_space<vmem>>, %arg10: memref<8x128xf32, #tpu.memory_space<vmem>>, %arg11: memref<3x512xf32, #tpu.memory_space<vmem>>, %arg12: memref<2x4xf32, #tpu.memory_space<vmem>>, %arg13: memref<512x16xf32, #tpu.memory_space<vmem>>, %arg14: memref<2x10x10x16xf32, #tpu.memory_space<vmem>>, %arg15: memref<64x32xf32, #tpu.memory_space<vmem>>) attributes {dimension_semantics = [], scalar_prefetch = 0 : i64, scratch_operands = 3 : i64, tpu.core_type = #tpu.core_type<tc>} {
    %c0 = arith.constant 0 : index
    %c0_0 = arith.constant 0 : index
    %0 = vector.load %arg10[%c0, %c0_0] : memref<8x128xf32, #tpu.memory_space<vmem>>, vector<1x16xf32>
    %c1 = arith.constant 1 : index
    %c0_1 = arith.constant 0 : index
    %1 = vector.load %arg10[%c1, %c0_1] : memref<8x128xf32, #tpu.memory_space<vmem>>, vector<1x16xf32>
    %c2 = arith.constant 2 : index
    %c0_2 = arith.constant 0 : index
    %2 = vector.load %arg10[%c2, %c0_2] : memref<8x128xf32, #tpu.memory_space<vmem>>, vector<1x16xf32>
    %c3 = arith.constant 3 : index
    %c0_3 = arith.constant 0 : index
    %3 = vector.load %arg10[%c3, %c0_3] : memref<8x128xf32, #tpu.memory_space<vmem>>, vector<1x32xf32>
    %c4 = arith.constant 4 : index
    %c0_4 = arith.constant 0 : index
    %4 = vector.load %arg10[%c4, %c0_4] : memref<8x128xf32, #tpu.memory_space<vmem>>, vector<1x32xf32>
    %c5 = arith.constant 5 : index
    %c0_5 = arith.constant 0 : index
    %5 = vector.load %arg10[%c5, %c0_5] : memref<8x128xf32, #tpu.memory_space<vmem>>, vector<1x32xf32>
    %c6 = arith.constant 6 : index
    %c0_6 = arith.constant 0 : index
    %6 = vector.load %arg10[%c6, %c0_6] : memref<8x128xf32, #tpu.memory_space<vmem>>, vector<1x32xf32>
    %c7 = arith.constant 7 : index
    %c0_7 = arith.constant 0 : index
    %7 = vector.load %arg10[%c7, %c0_7] : memref<8x128xf32, #tpu.memory_space<vmem>>, vector<1x32xf32>
    %c0_8 = arith.constant 0 : index
    %c0_9 = arith.constant 0 : index
    %8 = vector.load %arg11[%c0_8, %c0_9] : memref<3x512xf32, #tpu.memory_space<vmem>>, vector<1x512xf32>
    %c1_10 = arith.constant 1 : index
    %c0_11 = arith.constant 0 : index
    %9 = vector.load %arg11[%c1_10, %c0_11] : memref<3x512xf32, #tpu.memory_space<vmem>>, vector<1x384xf32>
    %c2_12 = arith.constant 2 : index
    %c0_13 = arith.constant 0 : index
    %10 = vector.load %arg11[%c2_12, %c0_13] : memref<3x512xf32, #tpu.memory_space<vmem>>, vector<1x4xf32>
    %c0_14 = arith.constant 0 : index
    %c0_15 = arith.constant 0 : index
    %11 = vector.load %arg1[%c0_14, %c0_15] : memref<512x32xf32, #tpu.memory_space<vmem>>, vector<512x32xf32>
    %c0_16 = arith.constant 0 : index
    %c0_17 = arith.constant 0 : index
    %12 = vector.load %arg2[%c0_16, %c0_17] : memref<32x16xf32, #tpu.memory_space<vmem>>, vector<32x16xf32>
    %cst = arith.constant dense<0.000000e+00> : vector<512x16xf32>
    %13 = tpu.matmul %11, %12, %cst {dimension_numbers = #tpu.dot_dimension_numbers<[1], [0], [0], [1], [0, 0, 1, 1], [], []>} : vector<512x32xf32>, vector<32x16xf32>, vector<512x16xf32> -> vector<512x16xf32>
    %14 = vector.broadcast %0 : vector<1x16xf32> to vector<512x16xf32>
    %15 = arith.addf %13, %14 : vector<512x16xf32>
    %c0_18 = arith.constant 0 : index
    %c0_19 = arith.constant 0 : index
    %16 = vector.load %arg13[%c0_18, %c0_19] : memref<512x16xf32, #tpu.memory_space<vmem>>, vector<512x16xf32>
    tpu.vector_store %arg13[%c0_18, %c0_19], %15 {strides = array<i32>} : memref<512x16xf32, #tpu.memory_space<vmem>>, vector<512x16xf32>,
    %c0_20 = arith.constant 0 : index
    %c0_21 = arith.constant 0 : index
    %17 = tpu.strided_load %arg13[%c0_20, %c0_21] {strides = array<i32: 2, 1>} : memref<512x16xf32, #tpu.memory_space<vmem>>, vector<256x16xf32>
    %c1_22 = arith.constant 1 : index
    %c0_23 = arith.constant 0 : index
    %18 = tpu.strided_load %arg13[%c1_22, %c0_23] {strides = array<i32: 2, 1>} : memref<512x16xf32, #tpu.memory_space<vmem>>, vector<256x16xf32>
    %19 = arith.maximumf %17, %18 : vector<256x16xf32>
    %20 = vector.shape_cast %19 : vector<256x16xf32> to vector<2x8x2x8x16xf32>
    %21 = vector.extract_strided_slice %20 {offsets = [0, 0, 0, 0, 0], sizes = [2, 8, 1, 8, 16], strides = [1, 1, 1, 1, 1]} : vector<2x8x2x8x16xf32> to vector<2x8x1x8x16xf32>
    %22 = vector.shape_cast %21 : vector<2x8x1x8x16xf32> to vector<2x8x8x16xf32>
    %23 = vector.extract_strided_slice %20 {offsets = [0, 0, 1, 0, 0], sizes = [2, 8, 1, 8, 16], strides = [1, 1, 1, 1, 1]} : vector<2x8x2x8x16xf32> to vector<2x8x1x8x16xf32>
    %24 = vector.shape_cast %23 : vector<2x8x1x8x16xf32> to vector<2x8x8x16xf32>
    %25 = arith.maximumf %22, %24 : vector<2x8x8x16xf32>
    %cst_24 = arith.constant 0.000000e+00 : f32
    %26 = vector.broadcast %cst_24 : f32 to vector<2x8x8x16xf32>
    %27 = arith.maximumf %25, %26 : vector<2x8x8x16xf32>
    %28 = vector.shape_cast %27 : vector<2x8x8x16xf32> to vector<128x16xf32>
    %cst_25 = arith.constant dense<0.000000e+00> : vector<16xf32>
    %29 = vector.multi_reduction <add>, %28, %cst_25 [0] : vector<128x16xf32> to vector<16xf32>
    %30 = vector.shape_cast %29 : vector<16xf32> to vector<1x16xf32>
    %cst_26 = arith.constant 7.812500e-03 : f32
    %31 = vector.broadcast %cst_26 : f32 to vector<1x16xf32>
    %32 = arith.mulf %30, %31 : vector<1x16xf32>
    %33 = arith.mulf %28, %28 : vector<128x16xf32>
    %cst_27 = arith.constant dense<0.000000e+00> : vector<16xf32>
    %34 = vector.multi_reduction <add>, %33, %cst_27 [0] : vector<128x16xf32> to vector<16xf32>
    %35 = vector.shape_cast %34 : vector<16xf32> to vector<1x16xf32>
    %cst_28 = arith.constant 7.812500e-03 : f32
    %36 = vector.broadcast %cst_28 : f32 to vector<1x16xf32>
    %37 = arith.mulf %35, %36 : vector<1x16xf32>
    %38 = arith.mulf %32, %32 : vector<1x16xf32>
    %39 = arith.subf %37, %38 : vector<1x16xf32>
    %cst_29 = arith.constant 9.99999974E-6 : f32
    %40 = vector.broadcast %cst_29 : f32 to vector<1x16xf32>
    %41 = arith.addf %39, %40 : vector<1x16xf32>
    %42 = math.rsqrt %41 : vector<1x16xf32>
    %43 = arith.mulf %42, %1 : vector<1x16xf32>
    %44 = arith.mulf %32, %43 : vector<1x16xf32>
    %45 = arith.subf %2, %44 : vector<1x16xf32>
    %cst_30 = arith.constant 0.000000e+00 : f32
    %46 = vector.broadcast %cst_30 : f32 to vector<2x10x10x16xf32>
    %c0_31 = arith.constant 0 : index
    %c0_32 = arith.constant 0 : index
    %c0_33 = arith.constant 0 : index
    %c0_34 = arith.constant 0 : index
    %47 = vector.load %arg14[%c0_31, %c0_32, %c0_33, %c0_34] : memref<2x10x10x16xf32, #tpu.memory_space<vmem>>, vector<2x10x10x16xf32>
    tpu.vector_store %arg14[%c0_31, %c0_32, %c0_33, %c0_34], %46 {strides = array<i32>} : memref<2x10x10x16xf32, #tpu.memory_space<vmem>>, vector<2x10x10x16xf32>,
    %48 = vector.shape_cast %43 : vector<1x16xf32> to vector<1x1x1x16xf32>
    %49 = vector.broadcast %48 : vector<1x1x1x16xf32> to vector<2x8x8x16xf32>
    %50 = arith.mulf %27, %49 : vector<2x8x8x16xf32>
    %51 = vector.shape_cast %45 : vector<1x16xf32> to vector<1x1x1x16xf32>
    %52 = vector.broadcast %51 : vector<1x1x1x16xf32> to vector<2x8x8x16xf32>
    %53 = arith.addf %50, %52 : vector<2x8x8x16xf32>
    %c0_35 = arith.constant 0 : index
    %c1_36 = arith.constant 1 : index
    %c1_37 = arith.constant 1 : index
    %c0_38 = arith.constant 0 : index
    %54 = vector.load %arg14[%c0_35, %c1_36, %c1_37, %c0_38] : memref<2x10x10x16xf32, #tpu.memory_space<vmem>>, vector<2x8x8x16xf32>
    tpu.vector_store %arg14[%c0_35, %c1_36, %c1_37, %c0_38], %53 {strides = array<i32>} : memref<2x10x10x16xf32, #tpu.memory_space<vmem>>, vector<2x8x8x16xf32>,
    %c0_39 = arith.constant 0 : index
    %c0_40 = arith.constant 0 : index
    %c0_41 = arith.constant 0 : index
    %c0_42 = arith.constant 0 : index
    %55 = vector.load %arg14[%c0_39, %c0_40, %c0_41, %c0_42] : memref<2x10x10x16xf32, #tpu.memory_space<vmem>>, vector<2x8x8x16xf32>
    %c0_43 = arith.constant 0 : index
    %c0_44 = arith.constant 0 : index
    %c1_45 = arith.constant 1 : index
    %c0_46 = arith.constant 0 : index
    %56 = vector.load %arg14[%c0_43, %c0_44, %c1_45, %c0_46] : memref<2x10x10x16xf32, #tpu.memory_space<vmem>>, vector<2x8x8x16xf32>
    %c0_47 = arith.constant 0 : index
    %c0_48 = arith.constant 0 : index
    %c2_49 = arith.constant 2 : index
    %c0_50 = arith.constant 0 : index
    %57 = vector.load %arg14[%c0_47, %c0_48, %c2_49, %c0_50] : memref<2x10x10x16xf32, #tpu.memory_space<vmem>>, vector<2x8x8x16xf32>
    %c0_51 = arith.constant 0 : index
    %c1_52 = arith.constant 1 : index
    %c0_53 = arith.constant 0 : index
    %c0_54 = arith.constant 0 : index
    %58 = vector.load %arg14[%c0_51, %c1_52, %c0_53, %c0_54] : memref<2x10x10x16xf32, #tpu.memory_space<vmem>>, vector<2x8x8x16xf32>
    %c0_55 = arith.constant 0 : index
    %c1_56 = arith.constant 1 : index
    %c1_57 = arith.constant 1 : index
    %c0_58 = arith.constant 0 : index
    %59 = vector.load %arg14[%c0_55, %c1_56, %c1_57, %c0_58] : memref<2x10x10x16xf32, #tpu.memory_space<vmem>>, vector<2x8x8x16xf32>
    %c0_59 = arith.constant 0 : index
    %c1_60 = arith.constant 1 : index
    %c2_61 = arith.constant 2 : index
    %c0_62 = arith.constant 0 : index
    %60 = vector.load %arg14[%c0_59, %c1_60, %c2_61, %c0_62] : memref<2x10x10x16xf32, #tpu.memory_space<vmem>>, vector<2x8x8x16xf32>
    %c0_63 = arith.constant 0 : index
    %c2_64 = arith.constant 2 : index
    %c0_65 = arith.constant 0 : index
    %c0_66 = arith.constant 0 : index
    %61 = vector.load %arg14[%c0_63, %c2_64, %c0_65, %c0_66] : memref<2x10x10x16xf32, #tpu.memory_space<vmem>>, vector<2x8x8x16xf32>
    %c0_67 = arith.constant 0 : index
    %c2_68 = arith.constant 2 : index
    %c1_69 = arith.constant 1 : index
    %c0_70 = arith.constant 0 : index
    %62 = vector.load %arg14[%c0_67, %c2_68, %c1_69, %c0_70] : memref<2x10x10x16xf32, #tpu.memory_space<vmem>>, vector<2x8x8x16xf32>
    %c0_71 = arith.constant 0 : index
    %c2_72 = arith.constant 2 : index
    %c2_73 = arith.constant 2 : index
    %c0_74 = arith.constant 0 : index
    %63 = vector.load %arg14[%c0_71, %c2_72, %c2_73, %c0_74] : memref<2x10x10x16xf32, #tpu.memory_space<vmem>>, vector<2x8x8x16xf32>
    %64 = tpu.concatenate %55, %56, %57, %58, %59, %60, %61, %62, %63 in 3 : vector<2x8x8x16xf32>, vector<2x8x8x16xf32>, vector<2x8x8x16xf32>, vector<2x8x8x16xf32>, vector<2x8x8x16xf32>, vector<2x8x8x16xf32>, vector<2x8x8x16xf32>, vector<2x8x8x16xf32>, vector<2x8x8x16xf32> -> vector<2x8x8x144xf32>
    %65 = vector.shape_cast %64 : vector<2x8x8x144xf32> to vector<128x144xf32>
    %c0_75 = arith.constant 0 : index
    %c0_76 = arith.constant 0 : index
    %66 = vector.load %arg3[%c0_75, %c0_76] : memref<144x32xf32, #tpu.memory_space<vmem>>, vector<144x32xf32>
    %cst_77 = arith.constant dense<0.000000e+00> : vector<128x32xf32>
    %67 = tpu.matmul %65, %66, %cst_77 {dimension_numbers = #tpu.dot_dimension_numbers<[1], [0], [0], [1], [0, 0, 1, 1], [], []>} : vector<128x144xf32>, vector<144x32xf32>, vector<128x32xf32> -> vector<128x32xf32>
    %68 = vector.broadcast %3 : vector<1x32xf32> to vector<128x32xf32>
    %69 = arith.addf %67, %68 : vector<128x32xf32>
    %70 = vector.shape_cast %69 : vector<128x32xf32> to vector<2x4x2x8x32xf32>
    %71 = vector.extract_strided_slice %70 {offsets = [0, 0, 0, 0, 0], sizes = [2, 4, 1, 8, 32], strides = [1, 1, 1, 1, 1]} : vector<2x4x2x8x32xf32> to vector<2x4x1x8x32xf32>
    %72 = vector.shape_cast %71 : vector<2x4x1x8x32xf32> to vector<2x4x8x32xf32>
    %73 = vector.extract_strided_slice %70 {offsets = [0, 0, 1, 0, 0], sizes = [2, 4, 1, 8, 32], strides = [1, 1, 1, 1, 1]} : vector<2x4x2x8x32xf32> to vector<2x4x1x8x32xf32>
    %74 = vector.shape_cast %73 : vector<2x4x1x8x32xf32> to vector<2x4x8x32xf32>
    %75 = arith.maximumf %72, %74 : vector<2x4x8x32xf32>
    %76 = vector.shape_cast %75 : vector<2x4x8x32xf32> to vector<64x32xf32>
    %c0_78 = arith.constant 0 : index
    %c0_79 = arith.constant 0 : index
    %77 = vector.load %arg15[%c0_78, %c0_79] : memref<64x32xf32, #tpu.memory_space<vmem>>, vector<64x32xf32>
    tpu.vector_store %arg15[%c0_78, %c0_79], %76 {strides = array<i32>} : memref<64x32xf32, #tpu.memory_space<vmem>>, vector<64x32xf32>,
    %c0_80 = arith.constant 0 : index
    %c0_81 = arith.constant 0 : index
    %78 = tpu.strided_load %arg15[%c0_80, %c0_81] {strides = array<i32: 2, 1>} : memref<64x32xf32, #tpu.memory_space<vmem>>, vector<32x32xf32>
    %c1_82 = arith.constant 1 : index
    %c0_83 = arith.constant 0 : index
    %79 = tpu.strided_load %arg15[%c1_82, %c0_83] {strides = array<i32: 2, 1>} : memref<64x32xf32, #tpu.memory_space<vmem>>, vector<32x32xf32>
    %80 = arith.maximumf %78, %79 : vector<32x32xf32>
    %cst_84 = arith.constant 0.000000e+00 : f32
    %81 = vector.broadcast %cst_84 : f32 to vector<32x32xf32>
    %82 = arith.maximumf %80, %81 : vector<32x32xf32>
    %cst_85 = arith.constant dense<0.000000e+00> : vector<32xf32>
    %83 = vector.multi_reduction <add>, %82, %cst_85 [0] : vector<32x32xf32> to vector<32xf32>
    %84 = vector.shape_cast %83 : vector<32xf32> to vector<1x32xf32>
    %cst_86 = arith.constant 3.125000e-02 : f32
    %85 = vector.broadcast %cst_86 : f32 to vector<1x32xf32>
    %86 = arith.mulf %84, %85 : vector<1x32xf32>
    %87 = arith.mulf %82, %82 : vector<32x32xf32>
    %cst_87 = arith.constant dense<0.000000e+00> : vector<32xf32>
    %88 = vector.multi_reduction <add>, %87, %cst_87 [0] : vector<32x32xf32> to vector<32xf32>
    %89 = vector.shape_cast %88 : vector<32xf32> to vector<1x32xf32>
    %cst_88 = arith.constant 3.125000e-02 : f32
    %90 = vector.broadcast %cst_88 : f32 to vector<1x32xf32>
    %91 = arith.mulf %89, %90 : vector<1x32xf32>
    %92 = arith.mulf %86, %86 : vector<1x32xf32>
    %93 = arith.subf %91, %92 : vector<1x32xf32>
    %cst_89 = arith.constant 9.99999974E-6 : f32
    %94 = vector.broadcast %cst_89 : f32 to vector<1x32xf32>
    %95 = arith.addf %93, %94 : vector<1x32xf32>
    %96 = math.rsqrt %95 : vector<1x32xf32>
    %97 = arith.mulf %96, %4 : vector<1x32xf32>
    %98 = arith.mulf %86, %97 : vector<1x32xf32>
    %99 = arith.subf %5, %98 : vector<1x32xf32>
    %100 = vector.broadcast %97 : vector<1x32xf32> to vector<32x32xf32>
    %101 = arith.mulf %82, %100 : vector<32x32xf32>
    %102 = vector.broadcast %99 : vector<1x32xf32> to vector<32x32xf32>
    %103 = arith.addf %101, %102 : vector<32x32xf32>
    %104 = vector.shape_cast %103 : vector<32x32xf32> to vector<2x16x32xf32>
    %105 = vector.extract_strided_slice %104 {offsets = [0, 0, 0], sizes = [2, 1, 32], strides = [1, 1, 1]} : vector<2x16x32xf32> to vector<2x1x32xf32>
    %106 = vector.shape_cast %105 : vector<2x1x32xf32> to vector<2x32xf32>
    %107 = vector.extract_strided_slice %104 {offsets = [0, 1, 0], sizes = [2, 1, 32], strides = [1, 1, 1]} : vector<2x16x32xf32> to vector<2x1x32xf32>
    %108 = vector.shape_cast %107 : vector<2x1x32xf32> to vector<2x32xf32>
    %109 = vector.extract_strided_slice %104 {offsets = [0, 2, 0], sizes = [2, 1, 32], strides = [1, 1, 1]} : vector<2x16x32xf32> to vector<2x1x32xf32>
    %110 = vector.shape_cast %109 : vector<2x1x32xf32> to vector<2x32xf32>
    %111 = vector.extract_strided_slice %104 {offsets = [0, 3, 0], sizes = [2, 1, 32], strides = [1, 1, 1]} : vector<2x16x32xf32> to vector<2x1x32xf32>
    %112 = vector.shape_cast %111 : vector<2x1x32xf32> to vector<2x32xf32>
    %113 = vector.extract_strided_slice %104 {offsets = [0, 4, 0], sizes = [2, 1, 32], strides = [1, 1, 1]} : vector<2x16x32xf32> to vector<2x1x32xf32>
    %114 = vector.shape_cast %113 : vector<2x1x32xf32> to vector<2x32xf32>
    %115 = vector.extract_strided_slice %104 {offsets = [0, 5, 0], sizes = [2, 1, 32], strides = [1, 1, 1]} : vector<2x16x32xf32> to vector<2x1x32xf32>
    %116 = vector.shape_cast %115 : vector<2x1x32xf32> to vector<2x32xf32>
    %117 = vector.extract_strided_slice %104 {offsets = [0, 6, 0], sizes = [2, 1, 32], strides = [1, 1, 1]} : vector<2x16x32xf32> to vector<2x1x32xf32>
    %118 = vector.shape_cast %117 : vector<2x1x32xf32> to vector<2x32xf32>
    %119 = vector.extract_strided_slice %104 {offsets = [0, 7, 0], sizes = [2, 1, 32], strides = [1, 1, 1]} : vector<2x16x32xf32> to vector<2x1x32xf32>
    %120 = vector.shape_cast %119 : vector<2x1x32xf32> to vector<2x32xf32>
    %121 = vector.extract_strided_slice %104 {offsets = [0, 8, 0], sizes = [2, 1, 32], strides = [1, 1, 1]} : vector<2x16x32xf32> to vector<2x1x32xf32>
    %122 = vector.shape_cast %121 : vector<2x1x32xf32> to vector<2x32xf32>
    %123 = vector.extract_strided_slice %104 {offsets = [0, 9, 0], sizes = [2, 1, 32], strides = [1, 1, 1]} : vector<2x16x32xf32> to vector<2x1x32xf32>
    %124 = vector.shape_cast %123 : vector<2x1x32xf32> to vector<2x32xf32>
    %125 = vector.extract_strided_slice %104 {offsets = [0, 10, 0], sizes = [2, 1, 32], strides = [1, 1, 1]} : vector<2x16x32xf32> to vector<2x1x32xf32>
    %126 = vector.shape_cast %125 : vector<2x1x32xf32> to vector<2x32xf32>
    %127 = vector.extract_strided_slice %104 {offsets = [0, 11, 0], sizes = [2, 1, 32], strides = [1, 1, 1]} : vector<2x16x32xf32> to vector<2x1x32xf32>
    %128 = vector.shape_cast %127 : vector<2x1x32xf32> to vector<2x32xf32>
    %129 = vector.extract_strided_slice %104 {offsets = [0, 12, 0], sizes = [2, 1, 32], strides = [1, 1, 1]} : vector<2x16x32xf32> to vector<2x1x32xf32>
    %130 = vector.shape_cast %129 : vector<2x1x32xf32> to vector<2x32xf32>
    %131 = vector.extract_strided_slice %104 {offsets = [0, 13, 0], sizes = [2, 1, 32], strides = [1, 1, 1]} : vector<2x16x32xf32> to vector<2x1x32xf32>
    %132 = vector.shape_cast %131 : vector<2x1x32xf32> to vector<2x32xf32>
    %133 = vector.extract_strided_slice %104 {offsets = [0, 14, 0], sizes = [2, 1, 32], strides = [1, 1, 1]} : vector<2x16x32xf32> to vector<2x1x32xf32>
    %134 = vector.shape_cast %133 : vector<2x1x32xf32> to vector<2x32xf32>
    %135 = vector.extract_strided_slice %104 {offsets = [0, 15, 0], sizes = [2, 1, 32], strides = [1, 1, 1]} : vector<2x16x32xf32> to vector<2x1x32xf32>
    %136 = vector.shape_cast %135 : vector<2x1x32xf32> to vector<2x32xf32>
    %137 = tpu.concatenate %106, %108, %110, %112, %114, %116, %118, %120, %122, %124, %126, %128, %130, %132, %134, %136 in 1 : vector<2x32xf32>, vector<2x32xf32>, vector<2x32xf32>, vector<2x32xf32>, vector<2x32xf32>, vector<2x32xf32>, vector<2x32xf32>, vector<2x32xf32>, vector<2x32xf32>, vector<2x32xf32>, vector<2x32xf32>, vector<2x32xf32>, vector<2x32xf32>, vector<2x32xf32>, vector<2x32xf32>, vector<2x32xf32> -> vector<2x512xf32>
    %c0_90 = arith.constant 0 : index
    %c0_91 = arith.constant 0 : index
    %138 = vector.load %arg4[%c0_90, %c0_91] : memref<512x32xf32, #tpu.memory_space<vmem>>, vector<512x32xf32>
    %cst_92 = arith.constant dense<0.000000e+00> : vector<2x32xf32>
    %139 = tpu.matmul %137, %138, %cst_92 {dimension_numbers = #tpu.dot_dimension_numbers<[1], [0], [0], [1], [0, 0, 1, 1], [], []>} : vector<2x512xf32>, vector<512x32xf32>, vector<2x32xf32> -> vector<2x32xf32>
    %140 = vector.broadcast %6 : vector<1x32xf32> to vector<2x32xf32>
    %141 = arith.addf %139, %140 : vector<2x32xf32>
    %c0_93 = arith.constant 0 : index
    %c0_94 = arith.constant 0 : index
    %142 = vector.load %arg0[%c0_93, %c0_94] : memref<2x8xf32, #tpu.memory_space<vmem>>, vector<2x8xf32>
    %c0_95 = arith.constant 0 : index
    %c0_96 = arith.constant 0 : index
    %143 = vector.load %arg5[%c0_95, %c0_96] : memref<8x32xf32, #tpu.memory_space<vmem>>, vector<8x32xf32>
    %cst_97 = arith.constant dense<0.000000e+00> : vector<2x32xf32>
    %144 = tpu.matmul %142, %143, %cst_97 {dimension_numbers = #tpu.dot_dimension_numbers<[1], [0], [0], [1], [0, 0, 1, 1], [], []>} : vector<2x8xf32>, vector<8x32xf32>, vector<2x32xf32> -> vector<2x32xf32>
    %145 = vector.broadcast %7 : vector<1x32xf32> to vector<2x32xf32>
    %146 = arith.addf %144, %145 : vector<2x32xf32>
    %cst_98 = arith.constant 0.000000e+00 : f32
    %147 = vector.broadcast %cst_98 : f32 to vector<2x32xf32>
    %148 = arith.maximumf %146, %147 : vector<2x32xf32>
    %c0_99 = arith.constant 0 : index
    %c0_100 = arith.constant 0 : index
    %149 = vector.load %arg6[%c0_99, %c0_100] : memref<32x512xf32, #tpu.memory_space<vmem>>, vector<32x512xf32>
    %cst_101 = arith.constant dense<0.000000e+00> : vector<2x512xf32>
    %150 = tpu.matmul %148, %149, %cst_101 {dimension_numbers = #tpu.dot_dimension_numbers<[1], [0], [0], [1], [0, 0, 1, 1], [], []>} : vector<2x32xf32>, vector<32x512xf32>, vector<2x512xf32> -> vector<2x512xf32>
    %c0_102 = arith.constant 0 : index
    %c0_103 = arith.constant 0 : index
    %151 = vector.load %arg7[%c0_102, %c0_103] : memref<32x512xf32, #tpu.memory_space<vmem>>, vector<32x512xf32>
    %cst_104 = arith.constant dense<0.000000e+00> : vector<2x512xf32>
    %152 = tpu.matmul %141, %151, %cst_104 {dimension_numbers = #tpu.dot_dimension_numbers<[1], [0], [0], [1], [0, 0, 1, 1], [], []>} : vector<2x32xf32>, vector<32x512xf32>, vector<2x512xf32> -> vector<2x512xf32>
    %153 = arith.addf %150, %152 : vector<2x512xf32>
    %154 = vector.broadcast %8 : vector<1x512xf32> to vector<2x512xf32>
    %155 = arith.addf %153, %154 : vector<2x512xf32>
    %cst_105 = arith.constant 0.000000e+00 : f32
    %156 = vector.broadcast %cst_105 : f32 to vector<2x512xf32>
    %157 = arith.cmpf ogt, %155, %156 : vector<2x512xf32>
    %cst_106 = arith.constant 0.00999999977 : f32
    %158 = vector.broadcast %cst_106 : f32 to vector<2x512xf32>
    %159 = arith.mulf %158, %155 : vector<2x512xf32>
    %160 = arith.select %157, %155, %159 : vector<2x512xi1>, vector<2x512xf32>
    %c0_107 = arith.constant 0 : index
    %c0_108 = arith.constant 0 : index
    %161 = vector.load %arg8[%c0_107, %c0_108] : memref<512x384xf32, #tpu.memory_space<vmem>>, vector<512x384xf32>
    %cst_109 = arith.constant dense<0.000000e+00> : vector<2x384xf32>
    %162 = tpu.matmul %160, %161, %cst_109 {dimension_numbers = #tpu.dot_dimension_numbers<[1], [0], [0], [1], [0, 0, 1, 1], [], []>} : vector<2x512xf32>, vector<512x384xf32>, vector<2x384xf32> -> vector<2x384xf32>
    %163 = vector.broadcast %9 : vector<1x384xf32> to vector<2x384xf32>
    %164 = arith.addf %162, %163 : vector<2x384xf32>
    %cst_110 = arith.constant 0.000000e+00 : f32
    %165 = vector.broadcast %cst_110 : f32 to vector<2x384xf32>
    %166 = arith.cmpf ogt, %164, %165 : vector<2x384xf32>
    %cst_111 = arith.constant 0.00999999977 : f32
    %167 = vector.broadcast %cst_111 : f32 to vector<2x384xf32>
    %168 = arith.mulf %167, %164 : vector<2x384xf32>
    %169 = arith.select %166, %164, %168 : vector<2x384xi1>, vector<2x384xf32>
    %c0_112 = arith.constant 0 : index
    %c0_113 = arith.constant 0 : index
    %170 = vector.load %arg9[%c0_112, %c0_113] : memref<384x4xf32, #tpu.memory_space<vmem>>, vector<384x4xf32>
    %cst_114 = arith.constant dense<0.000000e+00> : vector<2x4xf32>
    %171 = tpu.matmul %169, %170, %cst_114 {dimension_numbers = #tpu.dot_dimension_numbers<[1], [0], [0], [1], [0, 0, 1, 1], [], []>} : vector<2x384xf32>, vector<384x4xf32>, vector<2x4xf32> -> vector<2x4xf32>
    %172 = vector.broadcast %10 : vector<1x4xf32> to vector<2x4xf32>
    %173 = arith.addf %171, %172 : vector<2x4xf32>
    %174 = math.tanh %173 : vector<2x4xf32>
    %c0_115 = arith.constant 0 : index
    %c0_116 = arith.constant 0 : index
    %175 = vector.load %arg12[%c0_115, %c0_116] : memref<2x4xf32, #tpu.memory_space<vmem>>, vector<2x4xf32>
    tpu.vector_store %arg12[%c0_115, %c0_116], %174 {strides = array<i32>} : memref<2x4xf32, #tpu.memory_space<vmem>>, vector<2x4xf32>,
    return
  }
}

</mosaic_0001>

<bundles_post_ra>
// kernel: actor_forward.1
= control target key start
LH: loop header
LB: loop body
LE: loop exit
PB: predicated region body
PF: predicated region fallthrough
CT: control target
= control target key end

     0   :  { %s5790_s0 = inlined_call_operand.vmem [shape: f32[2,8], index: 0, kind: input, shape index: {}]   ;;  %s5791_s1 = inlined_call_operand.vmem [shape: f32[512,32], index: 1, kind: input, shape index: {}]   ;;  %s5792_s2 = inlined_call_operand.vmem [shape: f32[32,16], index: 2, kind: input, shape index: {}]   ;;  %s5793_s3 = inlined_call_operand.vmem [shape: f32[144,32], index: 3, kind: input, shape index: {}]   ;;  %s5794_s4 = inlined_call_operand.vmem [shape: f32[512,32], index: 4, kind: input, shape index: {}]   ;;  %s5795_s5 = inlined_call_operand.vmem [shape: f32[8,32], index: 5, kind: input, shape index: {}]   ;;  %s5796_s6 = inlined_call_operand.vmem [shape: f32[32,512], index: 6, kind: input, shape index: {}]   ;;  %s5797_s7 = inlined_call_operand.vmem [shape: f32[32,512], index: 7, kind: input, shape index: {}]   ;;  %s5798_s8 = inlined_call_operand.vmem [shape: f32[512,384], index: 8, kind: input, shape index: {}]   ;;  %s5799_s9 = inlined_call_operand.vmem [shape: f32[384,4], index: 9, kind: input, shape index: {}]   ;;  %s5800_s10 = inlined_call_operand.vmem [shape: f32[8,128], index: 10, kind: input, shape index: {}]   ;;  %s5801_s11 = inlined_call_operand.vmem [shape: f32[3,512], index: 11, kind: input, shape index: {}]   ;;  %s5802_s12 = inlined_call_operand.hbm [shape: f32[2,4], index: 12, kind: output, shape index: {}]  }
   0x1   :  { %v121_v0 = vld [vmem:[%s5792_s2 + $0x18] sm:$0xff]  ;;  %v120_v1 = vld [vmem:[%s5792_s2 + $0x10] sm:$0xff]  ;;  %v119_v2 = vld [vmem:[%s5792_s2 + $0x8] sm:$0xff] }
   0x2   :  { %328 = vmatpush.msra.mxu0 %v121_v0  ;;  %3150 = vmatpush.msra.mxu3 %v121_v0  ;;  %v118_v3 = vld [vmem:[%s5792_s2] sm:$0xff] }
   0x3   :  { %3149 = vmatpush.msra.mxu2 %v121_v0  ;;  %3148 = vmatpush.msra.mxu1 %v121_v0 }
   0x4   :  { %329 = vmatpush.msra.mxu0 %v120_v1  ;;  %3153 = vmatpush.msra.mxu3 %v120_v1 }
   0x5   :  { %3152 = vmatpush.msra.mxu2 %v120_v1  ;;  %3151 = vmatpush.msra.mxu1 %v120_v1 }
   0x6   :  { %17 = vsyncpa [#allocation6], 0  ;;  %330 = vmatpush.msra.mxu0 %v119_v2  ;;  %v54_v4 = vld [vmem:[%s5791_s1] sm:$0xff]  ;;  %vm123_vm0 = vcmask 261120   ;;  %3156 = vmatpush.msra.mxu3 %v119_v2  ;;  %v55_v5 = vld [vmem:[%s5791_s1 + $0x8] sm:$0xff]  ;;  %vm525_vm1 = vcmask 130048  }
   0x7   :  { %3155 = vmatpush.msra.mxu2 %v119_v2  ;;  %3154 = vmatpush.msra.mxu1 %v119_v2  ;;  %v56_v6 = vld [vmem:[%s5791_s1 + $0x10] sm:$0xff]  ;;  %v57_v7 = vld [vmem:[%s5791_s1 + $0x18] sm:$0xff]  ;;  %v58_v8 = vld [vmem:[%s5791_s1 + $0x20] sm:$0xff]  ;;  %vm890_vm2 = vcmask 123904   ;;  %s3472_s14 = smov 80   ;;  %s3473_s15 = smov 48  }
   0x8   :  { %331 = vmatpush.msra.mxu0 %v118_v3  ;;  %3159 = vmatpush.msra.mxu3 %v118_v3  ;;  %v59_v9 = vld [vmem:[%s5791_s1 + $0x28] sm:$0xff]  ;;  %v60_v10 = vld [vmem:[%s5791_s1 + $0x30] sm:$0xff]  ;;  %v61_v11 = vld [vmem:[%s5791_s1 + $0x38] sm:$0xff]  ;;  %s3474_s16 = smov 16   ;;  %s3475_s17 = smov 96   ;;  %vm1606_vm6 = vcmask 392192  }
   0x9   :  { %3059 = vmatmul.msk.f32.vlgmr.msra.gmra.mxu0 %vm123_vm0, %v54_v4  ;;  %3158 = vmatpush.msra.mxu2 %v118_v3  ;;  %v62_v12 = vld [vmem:[%s5791_s1 + $0x40] sm:$0xff]  ;;  %v63_v13 = vld [vmem:[%s5791_s1 + $0x48] sm:$0xff]  ;;  %v64_v14 = vld [vmem:[%s5791_s1 + $0x50] sm:$0xff]  ;;  %s3476_s18 = smov 64   ;;  %s3477_s19 = smov 32   ;;  %vm1623_vm7 = vcmask 523264  }
   0xa   :  { %3157 = vmatpush.msra.mxu1 %v118_v3  ;;  %v65_v15 = vld [vmem:[%s5791_s1 + $0x58] sm:$0xff]  ;;  %v66_v16 = vld [vmem:[%s5791_s1 + $0x60] sm:$0xff]  ;;  %v67_v17 = vld [vmem:[%s5791_s1 + $0x68] sm:$0xff]  ;;  %s3478_s20 = smov 112   ;;  %vm1640_vm8 = vcmask 654336   ;;  %vm1657_vm9 = vcmask 785408  }
   0xb   :  { %v68_v18 = vld [vmem:[%s5791_s1 + $0x70] sm:$0xff]  ;;  %v69_v19 = vld [vmem:[%s5791_s1 + $0x78] sm:$0xff]  ;;  %v3624_v20 = vld [vmem:[%s5800_s10] ss:$0 sm:$0xff]  ;;  %vm1674_vm10 = vcmask 916480   ;;  %vm1988_vm14 = vcmask 1041409  }
   0xc   :  { %v70_v22 = vld [vmem:[%s5791_s1 + $0x80] sm:$0xff]  ;;  %v71_v25 = vld [vmem:[%s5791_s1 + $0x88] sm:$0xff]  ;;  %v72_v28 = vld [vmem:[%s5791_s1 + $0x90] sm:$0xff]  ;;  %vm2234_vm15 = vcmask 64512  }
   0xd   :  { %v73_v31 = vld [vmem:[%s5791_s1 + $0x98] sm:$0xff]  ;;  %v74_v34 = vld [vmem:[%s5791_s1 + $0xa0] sm:$0xff]  ;;  %v75_v37 = vld [vmem:[%s5791_s1 + $0xa8] sm:$0xff] }
   0xe   :  { %v76_v40 = vld [vmem:[%s5791_s1 + $0xb0] sm:$0xff]  ;;  %v77_v43 = vld [vmem:[%s5791_s1 + $0xb8] sm:$0xff]  ;;  %v78_v46 = vld [vmem:[%s5791_s1 + $0xc0] sm:$0xff] }
   0xf   :  { %v79_v49 = vld [vmem:[%s5791_s1 + $0xc8] sm:$0xff]  ;;  %v80_v52 = vld [vmem:[%s5791_s1 + $0xd0] sm:$0xff]  ;;  %v81_v55 = vld [vmem:[%s5791_s1 + $0xd8] sm:$0xff] }
  0x10   :  { %v82_v58 = vld [vmem:[%s5791_s1 + $0xe0] sm:$0xff]  ;;  %v83_v61 = vld [vmem:[%s5791_s1 + $0xe8] sm:$0xff]  ;;  %v84_v0 = vld [vmem:[%s5791_s1 + $0xf0] sm:$0xff] }
  0x11   :  { %3060 = vmatmul.msk.f32.gmra.mxu0 %vm123_vm0, %v55_v5  ;;  %v85_v3 = vld [vmem:[%s5791_s1 + $0xf8] sm:$0xff]  ;;  %v110_v5 = vld [vmem:[%s5791_s1 + $0x1c0] sm:$0xff] }
  0x12   :  { %3115 = vmatmul.msk.f32.vlgmr.msra.gmra.mxu3 %vm123_vm0, %v110_v5 }
  0x19   :  { %3061 = vmatmul.msk.f32.gmra.mxu0 %vm123_vm0, %v56_v6 }
  0x21   :  { %3062 = vmatmul.msk.f32.gmra.mxu0 %vm123_vm0, %v57_v7  ;;  %v86_v7 = vld [vmem:[%s5791_s1 + $0x100] sm:$0xff] }
  0x29   :  { %3063 = vmatmul.msk.f32.gmra.mxu0 %vm123_vm0, %v58_v8 }
  0x31   :  { %3064 = vmatmul.msk.f32.gmra.mxu0 %vm123_vm0, %v59_v9  ;;  %v111_v9 = vld [vmem:[%s5791_s1 + $0x1c8] sm:$0xff] }
  0x32   :  { %3116 = vmatmul.msk.f32.gmra.mxu3 %vm123_vm0, %v111_v9 }
  0x39   :  { %3065 = vmatmul.msk.f32.gmra.mxu0 %vm123_vm0, %v60_v10 }
  0x41   :  { %3066 = vmatmul.msk.f32.gmra.mxu0 %vm123_vm0, %v61_v11  ;;  %v87_v11 = vld [vmem:[%s5791_s1 + $0x108] sm:$0xff] }
  0x49   :  { %3067 = vmatmul.msk.f32.gmra.mxu0 %vm123_vm0, %v62_v12  ;;  %v104_v12 = vld [vmem:[%s5791_s1 + $0x190] sm:$0xff] }
  0x4a   :  { %3109 = vmatmul.msk.f32.vlgmr.msra.gmra.mxu2 %vm123_vm0, %v104_v12 }
  0x51   :  { %3068 = vmatmul.msk.f32.gmra.mxu0 %vm123_vm0, %v63_v13 }
  0x59   :  { %3069 = vmatmul.msk.f32.gmra.mxu0 %vm123_vm0, %v64_v14  ;;  %v112_v14 = vld [vmem:[%s5791_s1 + $0x1d0] sm:$0xff] }
  0x5a   :  { %3117 = vmatmul.msk.f32.gmra.mxu3 %vm123_vm0, %v112_v14 }
  0x61   :  { %3070 = vmatmul.msk.f32.gmra.mxu0 %vm123_vm0, %v65_v15  ;;  %v100_v15 = vld [vmem:[%s5791_s1 + $0x170] sm:$0xff] }
  0x62   :  { %3105 = vmatmul.msk.f32.vlgmr.msra.gmra.mxu1 %vm123_vm0, %v100_v15 }
  0x69   :  { %3071 = vmatmul.msk.f32.gmra.mxu0 %vm123_vm0, %v66_v16 }
  0x71   :  { %3072 = vmatmul.msk.f32.gmra.mxu0 %vm123_vm0, %v67_v17  ;;  %v88_v17 = vld [vmem:[%s5791_s1 + $0x110] sm:$0xff] }
  0x79   :  { %3073 = vmatmul.msk.f32.gmra.mxu0 %vm123_vm0, %v68_v18  ;;  %v105_v18 = vld [vmem:[%s5791_s1 + $0x198] sm:$0xff] }
  0x7a   :  { %3110 = vmatmul.msk.f32.gmra.mxu2 %vm123_vm0, %v105_v18 }
  0x81   :  { %3074 = vmatmul.msk.f32.gmra.mxu0 %vm123_vm0, %v69_v19 }
  0x86   :  { %v333_v21 = vpop.f32.mrf.mxu0 }
  0x87   :  { %v334_v23 = vadd.f32 %v3624_v20, %v333_v21  ;;  %v113_v21 = vld [vmem:[%s5791_s1 + $0x1d8] sm:$0xff] }
  0x88   :  { %3118 = vmatmul.msk.f32.gmra.mxu3 %vm123_vm0, %v113_v21 }
  0x89   :  { %526 = vst.msk [vmem:[#allocation2] sm:$0xff] %vm525_vm1, %v334_v23  ;;  %3075 = vmatmul.msk.f32.gmra.mxu0 %vm123_vm0, %v70_v22  ;;  %v101_v22 = vld [vmem:[%s5791_s1 + $0x178] sm:$0xff] }
  0x8a   :  { %3106 = vmatmul.msk.f32.gmra.mxu1 %vm123_vm0, %v101_v22 }
  0x8e   :  { %v336_v24 = vpop.f32.mrf.mxu0 }
  0x8f   :  { %v337_v26 = vadd.f32 %v3624_v20, %v336_v24  ;;  %v89_v24 = vld [vmem:[%s5791_s1 + $0x118] sm:$0xff] }
  0x91   :  { %527 = vst.msk [vmem:[#allocation2 + $0x8] sm:$0xff] %vm525_vm1, %v337_v26  ;;  %3076 = vmatmul.msk.f32.gmra.mxu0 %vm123_vm0, %v71_v25  ;;  %v106_v25 = vld [vmem:[%s5791_s1 + $0x1a0] sm:$0xff] }
  0x92   :  { %3111 = vmatmul.msk.f32.gmra.mxu2 %vm123_vm0, %v106_v25 }
  0x96   :  { %v339_v27 = vpop.f32.mrf.mxu0 }
  0x97   :  { %v340_v29 = vadd.f32 %v3624_v20, %v339_v27  ;;  %v114_v27 = vld [vmem:[%s5791_s1 + $0x1e0] sm:$0xff] }
  0x98   :  { %3119 = vmatmul.msk.f32.gmra.mxu3 %vm123_vm0, %v114_v27 }
  0x99   :  { %528 = vst.msk [vmem:[#allocation2 + $0x10] sm:$0xff] %vm525_vm1, %v340_v29  ;;  %3077 = vmatmul.msk.f32.gmra.mxu0 %vm123_vm0, %v72_v28  ;;  %v102_v28 = vld [vmem:[%s5791_s1 + $0x180] sm:$0xff] }
  0x9a   :  { %3107 = vmatmul.msk.f32.gmra.mxu1 %vm123_vm0, %v102_v28 }
  0x9e   :  { %v342_v30 = vpop.f32.mrf.mxu0 }
  0x9f   :  { %v343_v32 = vadd.f32 %v3624_v20, %v342_v30  ;;  %v90_v30 = vld [vmem:[%s5791_s1 + $0x120] sm:$0xff] }
  0xa1   :  { %529 = vst.msk [vmem:[#allocation2 + $0x18] sm:$0xff] %vm525_vm1, %v343_v32  ;;  %3078 = vmatmul.msk.f32.gmra.mxu0 %vm123_vm0, %v73_v31  ;;  %v107_v31 = vld [vmem:[%s5791_s1 + $0x1a8] sm:$0xff] }
  0xa2   :  { %3112 = vmatmul.msk.f32.gmra.mxu2 %vm123_vm0, %v107_v31 }
  0xa6   :  { %v345_v33 = vpop.f32.mrf.mxu0 }
  0xa7   :  { %v346_v35 = vadd.f32 %v3624_v20, %v345_v33  ;;  %v115_v33 = vld [vmem:[%s5791_s1 + $0x1e8] sm:$0xff] }
  0xa8   :  { %3120 = vmatmul.msk.f32.gmra.mxu3 %vm123_vm0, %v115_v33 }
  0xa9   :  { %530 = vst.msk [vmem:[#allocation2 + $0x20] sm:$0xff] %vm525_vm1, %v346_v35  ;;  %3079 = vmatmul.msk.f32.gmra.mxu0 %vm123_vm0, %v74_v34  ;;  %v103_v34 = vld [vmem:[%s5791_s1 + $0x188] sm:$0xff] }
  0xaa   :  { %3108 = vmatmul.msk.f32.gmra.mxu1 %vm123_vm0, %v103_v34 }
  0xae   :  { %v348_v36 = vpop.f32.mrf.mxu0 }
  0xaf   :  { %v349_v38 = vadd.f32 %v3624_v20, %v348_v36  ;;  %v91_v36 = vld [vmem:[%s5791_s1 + $0x128] sm:$0xff] }
  0xb1   :  { %531 = vst.msk [vmem:[#allocation2 + $0x28] sm:$0xff] %vm525_vm1, %v349_v38  ;;  %3080 = vmatmul.msk.f32.gmra.mxu0 %vm123_vm0, %v75_v37  ;;  %v108_v37 = vld [vmem:[%s5791_s1 + $0x1b0] sm:$0xff] }
  0xb2   :  { %3113 = vmatmul.msk.f32.gmra.mxu2 %vm123_vm0, %v108_v37 }
  0xb6   :  { %v351_v39 = vpop.f32.mrf.mxu0 }
  0xb7   :  { %v352_v41 = vadd.f32 %v3624_v20, %v351_v39  ;;  %v116_v39 = vld [vmem:[%s5791_s1 + $0x1f0] sm:$0xff] }
  0xb8   :  { %3121 = vmatmul.msk.f32.gmra.mxu3 %vm123_vm0, %v116_v39 }
  0xb9   :  { %532 = vst.msk [vmem:[#allocation2 + $0x30] sm:$0xff] %vm525_vm1, %v352_v41  ;;  %3081 = vmatmul.msk.f32.gmra.mxu0 %vm123_vm0, %v76_v40  ;;  %v92_v41 = vld [vmem:[%s5791_s1 + $0x130] sm:$0xff] }
  0xbe   :  { %v354_v42 = vpop.f32.mrf.mxu0 }
  0xbf   :  { %v355_v44 = vadd.f32 %v3624_v20, %v354_v42  ;;  %v109_v42 = vld [vmem:[%s5791_s1 + $0x1b8] sm:$0xff] }
  0xc0   :  { %3114 = vmatmul.msk.f32.gmra.mxu2 %vm123_vm0, %v109_v42 }
  0xc1   :  { %533 = vst.msk [vmem:[#allocation2 + $0x38] sm:$0xff] %vm525_vm1, %v355_v44  ;;  %3082 = vmatmul.msk.f32.gmra.mxu0 %vm123_vm0, %v77_v43  ;;  %v117_v44 = vld [vmem:[%s5791_s1 + $0x1f8] sm:$0xff] }
  0xc2   :  { %3122 = vmatmul.msk.f32.gmra.mxu3 %vm123_vm0, %v117_v44 }
  0xc6   :  { %v357_v45 = vpop.f32.mrf.mxu0 }
  0xc7   :  { %v358_v47 = vadd.f32 %v3624_v20, %v357_v45 }
  0xc9   :  { %534 = vst.msk [vmem:[#allocation2 + $0x40] sm:$0xff] %vm525_vm1, %v358_v47  ;;  %3083 = vmatmul.msk.f32.gmra.mxu0 %vm123_vm0, %v78_v46  ;;  %v93_v46 = vld [vmem:[%s5791_s1 + $0x138] sm:$0xff] }
  0xcd   :  { %v483_v14 = vpop.f32.mrf.mxu2 }
  0xce   :  { %v360_v48 = vpop.f32.mrf.mxu0  ;;  %v484_v21 = vadd.f32 %v3624_v20, %v483_v14 }
  0xcf   :  { %v361_v50 = vadd.f32 %v3624_v20, %v360_v48 }
  0xd0   :  { %576 = vst.msk [vmem:[#allocation2 + $0x190] sm:$0xff] %vm525_vm1, %v484_v21 }
  0xd1   :  { %535 = vst.msk [vmem:[#allocation2 + $0x48] sm:$0xff] %vm525_vm1, %v361_v50  ;;  %3084 = vmatmul.msk.f32.gmra.mxu0 %vm123_vm0, %v79_v49  ;;  %v94_v49 = vld [vmem:[%s5791_s1 + $0x140] sm:$0xff] }
  0xd6   :  { %v363_v51 = vpop.f32.mrf.mxu0 }
  0xd7   :  { %v364_v53 = vadd.f32 %v3624_v20, %v363_v51 }
  0xd9   :  { %536 = vst.msk [vmem:[#allocation2 + $0x50] sm:$0xff] %vm525_vm1, %v364_v53  ;;  %3085 = vmatmul.msk.f32.gmra.mxu0 %vm123_vm0, %v80_v52  ;;  %v95_v52 = vld [vmem:[%s5791_s1 + $0x148] sm:$0xff] }
  0xde   :  { %v366_v54 = vpop.f32.mrf.mxu0 }
  0xdf   :  { %v367_v56 = vadd.f32 %v3624_v20, %v366_v54 }
  0xe1   :  { %537 = vst.msk [vmem:[#allocation2 + $0x58] sm:$0xff] %vm525_vm1, %v367_v56  ;;  %3086 = vmatmul.msk.f32.gmra.mxu0 %vm123_vm0, %v81_v55  ;;  %v96_v55 = vld [vmem:[%s5791_s1 + $0x150] sm:$0xff] }
  0xe6   :  { %v369_v57 = vpop.f32.mrf.mxu0 }
  0xe7   :  { %v370_v59 = vadd.f32 %v3624_v20, %v369_v57 }
  0xe9   :  { %538 = vst.msk [vmem:[#allocation2 + $0x60] sm:$0xff] %vm525_vm1, %v370_v59  ;;  %3087 = vmatmul.msk.f32.gmra.mxu0 %vm123_vm0, %v82_v58  ;;  %v97_v58 = vld [vmem:[%s5791_s1 + $0x158] sm:$0xff] }
  0xee   :  { %v372_v60 = vpop.f32.mrf.mxu0 }
  0xef   :  { %v373_v62 = vadd.f32 %v3624_v20, %v372_v60 }
  0xf1   :  { %539 = vst.msk [vmem:[#allocation2 + $0x68] sm:$0xff] %vm525_vm1, %v373_v62  ;;  %3088 = vmatmul.msk.f32.gmra.mxu0 %vm123_vm0, %v83_v61  ;;  %v98_v61 = vld [vmem:[%s5791_s1 + $0x160] sm:$0xff] }
  0xf6   :  { %v375_v63 = vpop.f32.mrf.mxu0 }
  0xf7   :  { %v376_v1 = vadd.f32 %v3624_v20, %v375_v63 }
  0xf8   :  { %v602_v21 = vld [vmem:[#allocation2 + $0x60] ss:$2 sm:$0xff] }
  0xf9   :  { %540 = vst.msk [vmem:[#allocation2 + $0x70] sm:$0xff] %vm525_vm1, %v376_v1  ;;  %3089 = vmatmul.msk.f32.gmra.mxu0 %vm123_vm0, %v84_v0  ;;  %v99_v0 = vld [vmem:[%s5791_s1 + $0x168] sm:$0xff] }
  0xfe   :  { %v378_v2 = vpop.f32.mrf.mxu0 }
  0xff   :  { %v379_v4 = vadd.f32 %v3624_v20, %v378_v2 }
 0x101   :  { %541 = vst.msk [vmem:[#allocation2 + $0x78] sm:$0xff] %vm525_vm1, %v379_v4  ;;  %3090 = vmatmul.msk.f32.gmra.mxu0 %vm123_vm0, %v85_v3 }
 0x106   :  { %v381_v6 = vpop.f32.mrf.mxu0 }
 0x107   :  { %v382_v8 = vadd.f32 %v3624_v20, %v381_v6 }
 0x108   :  { %v668_v14 = vld [vmem:[#allocation2 + $0x71] ss:$2 sm:$0xff] }
 0x109   :  { %542 = vst.msk [vmem:[#allocation2 + $0x80] sm:$0xff] %vm525_vm1, %v382_v8  ;;  %3091 = vmatmul.msk.f32.gmra.mxu0 %vm123_vm0, %v86_v7  ;;  %v501_v7 = vpop.f32.mrf.mxu3 }
 0x10a   :  { %v502_v12 = vadd.f32 %v3624_v20, %v501_v7  ;;  %v590_v7 = vld [vmem:[#allocation2] ss:$2 sm:$0xff] }
 0x10c   :  { %582 = vst.msk [vmem:[#allocation2 + $0x1c0] sm:$0xff] %vm525_vm1, %v502_v12  ;;  %v662_v12 = vld [vmem:[#allocation2 + $0x41] ss:$2 sm:$0xff] }
 0x10e   :  { %v384_v10 = vpop.f32.mrf.mxu0 }
 0x10f   :  { %v385_v13 = vadd.f32 %v3624_v20, %v384_v10 }
 0x111   :  { %543 = vst.msk [vmem:[#allocation2 + $0x88] sm:$0xff] %vm525_vm1, %v385_v13  ;;  %3092 = vmatmul.msk.f32.gmra.mxu0 %vm123_vm0, %v87_v11  ;;  %v504_v10 = vpop.f32.mrf.mxu3  ;;  %v471_v13 = vpop.f32.mrf.mxu1 }
 0x112   :  { %v505_v18 = vadd.f32 %v3624_v20, %v504_v10  ;;  %v598_v10 = vld [vmem:[#allocation2 + $0x40] ss:$2 sm:$0xff] }
 0x114   :  { %583 = vst.msk [vmem:[#allocation2 + $0x1c8] sm:$0xff] %vm525_vm1, %v505_v18 }
 0x116   :  { %v387_v16 = vpop.f32.mrf.mxu0 }
 0x117   :  { %v388_v19 = vadd.f32 %v3624_v20, %v387_v16 }
 0x119   :  { %544 = vst.msk [vmem:[#allocation2 + $0x90] sm:$0xff] %vm525_vm1, %v388_v19  ;;  %3093 = vmatmul.msk.f32.gmra.mxu0 %vm123_vm0, %v88_v17  ;;  %v507_v16 = vpop.f32.mrf.mxu3  ;;  %v472_v19 = vadd.f32 %v3624_v20, %v471_v13  ;;  %v604_v13 = vld [vmem:[#allocation2 + $0x70] ss:$2 sm:$0xff] }
 0x11a   :  { %v508_v22 = vadd.f32 %v3624_v20, %v507_v16 }
 0x11b   :  { %572 = vst.msk [vmem:[#allocation2 + $0x170] sm:$0xff] %vm525_vm1, %v472_v19 }
 0x11c   :  { %584 = vst.msk [vmem:[#allocation2 + $0x1d0] sm:$0xff] %vm525_vm1, %v508_v22  ;;  %v666_v22 = vld [vmem:[#allocation2 + $0x61] ss:$2 sm:$0xff] }
 0x11e   :  { %v390_v23 = vpop.f32.mrf.mxu0 }
 0x11f   :  { %v391_v26 = vadd.f32 %v3624_v20, %v390_v23  ;;  %v474_v23 = vpop.f32.mrf.mxu1 }
 0x120   :  { %v475_v25 = vadd.f32 %v3624_v20, %v474_v23 }
 0x121   :  { %545 = vst.msk [vmem:[#allocation2 + $0x98] sm:$0xff] %vm525_vm1, %v391_v26  ;;  %3094 = vmatmul.msk.f32.gmra.mxu0 %vm123_vm0, %v89_v24  ;;  %v486_v24 = vpop.f32.mrf.mxu2  ;;  %v510_v28 = vpop.f32.mrf.mxu3 }
 0x122   :  { %v487_v26 = vadd.f32 %v3624_v20, %v486_v24  ;;  %573 = vst.msk [vmem:[#allocation2 + $0x178] sm:$0xff] %vm525_vm1, %v475_v25  ;;  %v721_v24 = vmax.f32 %v598_v10, %v662_v12  ;;  %v724_v25 = vmax.f32 %v604_v13, %v668_v14 }
 0x124   :  { %577 = vst.msk [vmem:[#allocation2 + $0x198] sm:$0xff] %vm525_vm1, %v487_v26 }
 0x126   :  { %v393_v29 = vpop.f32.mrf.mxu0 }
 0x127   :  { %v394_v32 = vadd.f32 %v3624_v20, %v393_v29  ;;  %v477_v31 = vpop.f32.mrf.mxu1 }
 0x129   :  { %546 = vst.msk [vmem:[#allocation2 + $0xa0] sm:$0xff] %vm525_vm1, %v394_v32  ;;  %3095 = vmatmul.msk.f32.gmra.mxu0 %vm123_vm0, %v90_v30  ;;  %v511_v30 = vadd.f32 %v3624_v20, %v510_v28  ;;  %v489_v32 = vpop.f32.mrf.mxu2  ;;  %v513_v34 = vpop.f32.mrf.mxu3  ;;  %v672_v28 = vld [vmem:[#allocation2 + $0x91] ss:$2 sm:$0xff] }
 0x12a   :  { %v514_v44 = vadd.f32 %v3624_v20, %v513_v34  ;;  %v670_v34 = vld [vmem:[#allocation2 + $0x81] ss:$2 sm:$0xff] }
 0x12b   :  { %585 = vst.msk [vmem:[#allocation2 + $0x1d8] sm:$0xff] %vm525_vm1, %v511_v30  ;;  %v723_v30 = vmax.f32 %v602_v21, %v666_v22 }
 0x12c   :  { %586 = vst.msk [vmem:[#allocation2 + $0x1e0] sm:$0xff] %vm525_vm1, %v514_v44 }
 0x12e   :  { %v396_v35 = vpop.f32.mrf.mxu0 }
 0x12f   :  { %v397_v38 = vadd.f32 %v3624_v20, %v396_v35 }
 0x131   :  { %547 = vst.msk [vmem:[#allocation2 + $0xa8] sm:$0xff] %vm525_vm1, %v397_v38  ;;  %3096 = vmatmul.msk.f32.gmra.mxu0 %vm123_vm0, %v91_v36  ;;  %v480_v36 = vpop.f32.mrf.mxu1  ;;  %v492_v37 = vpop.f32.mrf.mxu2  ;;  %v478_v38 = vadd.f32 %v3624_v20, %v477_v31 }
 0x132   :  { %v481_v39 = vadd.f32 %v3624_v20, %v480_v36  ;;  %v752_v36 = vmax.f32 %v723_v30, %v724_v25 }
 0x133   :  { %574 = vst.msk [vmem:[#allocation2 + $0x180] sm:$0xff] %vm525_vm1, %v478_v38 }
 0x134   :  { %575 = vst.msk [vmem:[#allocation2 + $0x188] sm:$0xff] %vm525_vm1, %v481_v39 }
 0x136   :  { %v399_v40 = vpop.f32.mrf.mxu0 }
 0x137   :  { %v400_v43 = vadd.f32 %v3624_v20, %v399_v40 }
 0x138   :  { %v610_v38 = vld [vmem:[#allocation2 + $0xa0] ss:$2 sm:$0xff]  ;;  %v674_v39 = vld [vmem:[#allocation2 + $0xa1] ss:$2 sm:$0xff] }
 0x139   :  { %548 = vst.msk [vmem:[#allocation2 + $0xb0] sm:$0xff] %vm525_vm1, %v400_v43  ;;  %3097 = vmatmul.msk.f32.gmra.mxu0 %vm123_vm0, %v92_v41  ;;  %v516_v41 = vpop.f32.mrf.mxu3  ;;  %v490_v43 = vadd.f32 %v3624_v20, %v489_v32 }
 0x13b   :  { %578 = vst.msk [vmem:[#allocation2 + $0x1a0] sm:$0xff] %vm525_vm1, %v490_v43 }
 0x13e   :  { %v402_v45 = vpop.f32.mrf.mxu0 }
 0x13f   :  { %v403_v47 = vadd.f32 %v3624_v20, %v402_v45  ;;  %v495_v45 = vpop.f32.mrf.mxu2 }
 0x141   :  { %549 = vst.msk [vmem:[#allocation2 + $0xb8] sm:$0xff] %vm525_vm1, %v403_v47  ;;  %3098 = vmatmul.msk.f32.gmra.mxu0 %vm123_vm0, %v93_v46  ;;  %v493_v46 = vadd.f32 %v3624_v20, %v492_v37 }
 0x143   :  { %579 = vst.msk [vmem:[#allocation2 + $0x1a8] sm:$0xff] %vm525_vm1, %v493_v46 }
 0x146   :  { %v405_v48 = vpop.f32.mrf.mxu0 }
 0x147   :  { %v406_v50 = vadd.f32 %v3624_v20, %v405_v48  ;;  %v519_v48 = vpop.f32.mrf.mxu3 }
 0x148   :  { %v612_v31 = vld [vmem:[#allocation2 + $0xb0] ss:$2 sm:$0xff]  ;;  %v676_v32 = vld [vmem:[#allocation2 + $0xb1] ss:$2 sm:$0xff] }
 0x149   :  { %550 = vst.msk [vmem:[#allocation2 + $0xc0] sm:$0xff] %vm525_vm1, %v406_v50  ;;  %3099 = vmatmul.msk.f32.gmra.mxu0 %vm123_vm0, %v94_v49  ;;  %v517_v50 = vadd.f32 %v3624_v20, %v516_v41  ;;  %v728_v41 = vmax.f32 %v612_v31, %v676_v32 }
 0x14b   :  { %587 = vst.msk [vmem:[#allocation2 + $0x1e8] sm:$0xff] %vm525_vm1, %v517_v50 }
 0x14e   :  { %v408_v51 = vpop.f32.mrf.mxu0 }
 0x14f   :  { %v409_v53 = vadd.f32 %v3624_v20, %v408_v51  ;;  %v496_v51 = vadd.f32 %v3624_v20, %v495_v45 }
 0x151   :  { %551 = vst.msk [vmem:[#allocation2 + $0xc8] sm:$0xff] %vm525_vm1, %v409_v53  ;;  %3100 = vmatmul.msk.f32.gmra.mxu0 %vm123_vm0, %v95_v52  ;;  %v520_v52 = vadd.f32 %v3624_v20, %v519_v48  ;;  %v498_v53 = vpop.f32.mrf.mxu2  ;;  %v727_v48 = vmax.f32 %v610_v38, %v674_v39 }
 0x152   :  { %580 = vst.msk [vmem:[#allocation2 + $0x1b0] sm:$0xff] %vm525_vm1, %v496_v51 }
 0x153   :  { %588 = vst.msk [vmem:[#allocation2 + $0x1f0] sm:$0xff] %vm525_vm1, %v520_v52  ;;  %v3949_v52 = vmax.f32 %v752_v36, 0.0 }
 0x156   :  { %v411_v54 = vpop.f32.mrf.mxu0 }
 0x157   :  { %v412_v56 = vadd.f32 %v3624_v20, %v411_v54  ;;  %v499_v54 = vadd.f32 %v3624_v20, %v498_v53 }
 0x158   :  { %v678_v50 = vld [vmem:[#allocation2 + $0xc1] ss:$2 sm:$0xff] }
 0x159   :  { %552 = vst.msk [vmem:[#allocation2 + $0xd0] sm:$0xff] %vm525_vm1, %v412_v56  ;;  %3101 = vmatmul.msk.f32.gmra.mxu0 %vm123_vm0, %v96_v55  ;;  %v522_v56 = vpop.f32.mrf.mxu3 }
 0x15a   :  { %581 = vst.msk [vmem:[#allocation2 + $0x1b8] sm:$0xff] %vm525_vm1, %v499_v54 }
 0x15e   :  { %v414_v57 = vpop.f32.mrf.mxu0 }
 0x15f   :  { %v415_v59 = vadd.f32 %v3624_v20, %v414_v57 }
 0x161   :  { %553 = vst.msk [vmem:[#allocation2 + $0xd8] sm:$0xff] %vm525_vm1, %v415_v59  ;;  %3102 = vmatmul.msk.f32.gmra.mxu0 %vm123_vm0, %v97_v58  ;;  %v523_v58 = vadd.f32 %v3624_v20, %v522_v56  ;;  %v754_v56 = vmax.f32 %v727_v48, %v728_v41 }
 0x163   :  { %589 = vst.msk [vmem:[#allocation2 + $0x1f8] sm:$0xff] %vm525_vm1, %v523_v58 }
 0x166   :  { %v417_v60 = vpop.f32.mrf.mxu0 }
 0x167   :  { %v418_v62 = vadd.f32 %v3624_v20, %v417_v60 }
 0x168   :  { %v680_v43 = vld [vmem:[#allocation2 + $0xd1] ss:$2 sm:$0xff] }
 0x169   :  { %554 = vst.msk [vmem:[#allocation2 + $0xe0] sm:$0xff] %vm525_vm1, %v418_v62  ;;  %3103 = vmatmul.msk.f32.gmra.mxu0 %vm123_vm0, %v98_v61 }
 0x16e   :  { %v420_v63 = vpop.f32.mrf.mxu0 }
 0x16f   :  { %v421_v1 = vadd.f32 %v3624_v20, %v420_v63  ;;  %v596_v63 = vld [vmem:[#allocation2 + $0x30] ss:$2 sm:$0xff] }
 0x171   :  { %555 = vst.msk [vmem:[#allocation2 + $0xe8] sm:$0xff] %vm525_vm1, %v421_v1  ;;  %3104 = vmatmul.msk.f32.gmra.mxu0 %vm123_vm0, %v99_v0  ;;  %v660_v0 = vld [vmem:[#allocation2 + $0x31] ss:$2 sm:$0xff]  ;;  %v592_v1 = vld [vmem:[#allocation2 + $0x10] ss:$2 sm:$0xff] }
 0x176   :  { %v423_v2 = vpop.f32.mrf.mxu0 }
 0x177   :  { %v424_v3 = vadd.f32 %v3624_v20, %v423_v2  ;;  %v656_v2 = vld [vmem:[#allocation2 + $0x11] ss:$2 sm:$0xff] }
 0x179   :  { %556 = vst.msk [vmem:[#allocation2 + $0xf0] sm:$0xff] %vm525_vm1, %v424_v3  ;;  %v594_v3 = vld [vmem:[#allocation2 + $0x20] ss:$2 sm:$0xff] }
 0x17e   :  { %v426_v4 = vpop.f32.mrf.mxu0 }
 0x17f   :  { %v427_v5 = vadd.f32 %v3624_v20, %v426_v4  ;;  %v658_v4 = vld [vmem:[#allocation2 + $0x21] ss:$2 sm:$0xff] }
 0x180   :  { %v719_v16 = vmax.f32 %v594_v3, %v658_v4 }
 0x181   :  { %557 = vst.msk [vmem:[#allocation2 + $0xf8] sm:$0xff] %vm525_vm1, %v427_v5  ;;  %v600_v5 = vld [vmem:[#allocation2 + $0x50] ss:$2 sm:$0xff] }
 0x186   :  { %v429_v6 = vpop.f32.mrf.mxu0 }
 0x187   :  { %v430_v8 = vadd.f32 %v3624_v20, %v429_v6  ;;  %v664_v6 = vld [vmem:[#allocation2 + $0x51] ss:$2 sm:$0xff] }
 0x189   :  { %558 = vst.msk [vmem:[#allocation2 + $0x100] sm:$0xff] %vm525_vm1, %v430_v8  ;;  %v654_v8 = vld [vmem:[#allocation2 + $0x1] ss:$2 sm:$0xff] }
 0x18a   :  { %v717_v19 = vmax.f32 %v590_v7, %v654_v8  ;;  %v3966_v8 = vmax.f32 %v754_v56, 0.0 }
 0x18c   :  { %v824_v31 = vmul.f32 %v3966_v8, %v3966_v8 }
 0x18e   :  { %v432_v9 = vpop.f32.mrf.mxu0 }
 0x18f   :  { %v433_v11 = vadd.f32 %v3624_v20, %v432_v9  ;;  %v720_v9 = vmax.f32 %v596_v63, %v660_v0 }
 0x191   :  { %559 = vst.msk [vmem:[#allocation2 + $0x108] sm:$0xff] %vm525_vm1, %v433_v11  ;;  %v718_v11 = vmax.f32 %v592_v1, %v656_v2  ;;  %v750_v23 = vmax.f32 %v719_v16, %v720_v9  ;;  %v822_v2 = vmul.f32 %v3949_v52, %v3949_v52 }
 0x193   :  { %v749_v26 = vmax.f32 %v717_v19, %v718_v11  ;;  %v786_v19 = vsel %vm525_vm1, %v3949_v52, 0.0 }
 0x196   :  { %v435_v15 = vpop.f32.mrf.mxu0 }
 0x197   :  { %v436_v17 = vadd.f32 %v3624_v20, %v435_v15 }
 0x198   :  { %v622_v10 = vld [vmem:[#allocation2 + $0x100] ss:$2 sm:$0xff]  ;;  %v686_v11 = vld [vmem:[#allocation2 + $0x101] ss:$2 sm:$0xff] }
 0x199   :  { %560 = vst.msk [vmem:[#allocation2 + $0x110] sm:$0xff] %vm525_vm1, %v436_v17  ;;  %v722_v17 = vmax.f32 %v600_v5, %v664_v6  ;;  %v618_v5 = vld [vmem:[#allocation2 + $0xe0] ss:$2 sm:$0xff]  ;;  %v682_v6 = vld [vmem:[#allocation2 + $0xe1] ss:$2 sm:$0xff] }
 0x19a   :  { %v731_v21 = vmax.f32 %v618_v5, %v682_v6  ;;  %v644_v5 = vld [vmem:[#allocation2 + $0x1b0] ss:$2 sm:$0xff]  ;;  %v708_v6 = vld [vmem:[#allocation2 + $0x1b1] ss:$2 sm:$0xff] }
 0x19e   :  { %v438_v27 = vpop.f32.mrf.mxu0 }
 0x19f   :  { %v439_v29 = vadd.f32 %v3624_v20, %v438_v27  ;;  %v608_v27 = vld [vmem:[#allocation2 + $0x90] ss:$2 sm:$0xff] }
 0x1a0   :  { %v726_v37 = vmax.f32 %v608_v27, %v672_v28  ;;  %v733_v27 = vmax.f32 %v622_v10, %v686_v11 }
 0x1a1   :  { %561 = vst.msk [vmem:[#allocation2 + $0x118] sm:$0xff] %vm525_vm1, %v439_v29  ;;  %v751_v29 = vmax.f32 %v721_v24, %v722_v17  ;;  %v840_v24 = vsel %vm525_vm1, %v822_v2, 0.0  ;;  %v706_v2 = vld [vmem:[#allocation2 + $0x1a1] ss:$2 sm:$0xff] }
 0x1a3   :  { %v3944_v45 = vmax.f32 %v751_v29, 0.0 }
 0x1a5   :  { %v784_v13 = vsel %vm525_vm1, %v3944_v45, 0.0 }
 0x1a6   :  { %v441_v33 = vpop.f32.mrf.mxu0 }
 0x1a7   :  { %v442_v35 = vadd.f32 %v3624_v20, %v441_v33  ;;  %v606_v33 = vld [vmem:[#allocation2 + $0x80] ss:$2 sm:$0xff] }
 0x1a8   :  { %v725_v46 = vmax.f32 %v606_v33, %v670_v34  ;;  %v624_v63 = vld [vmem:[#allocation2 + $0x110] ss:$2 sm:$0xff]  ;;  %v688_v0 = vld [vmem:[#allocation2 + $0x111] ss:$2 sm:$0xff] }
 0x1a9   :  { %562 = vst.msk [vmem:[#allocation2 + $0x120] sm:$0xff] %vm525_vm1, %v442_v35  ;;  %v3940_v35 = vmax.f32 %v750_v23, 0.0 }
 0x1aa   :  { %v753_v53 = vmax.f32 %v725_v46, %v726_v37 }
 0x1ab   :  { %v820_v51 = vmul.f32 %v3940_v35, %v3940_v35 }
 0x1ac   :  { %v3963_v3 = vmax.f32 %v753_v53, 0.0 }
 0x1ad   :  { %v836_v1 = vsel %vm525_vm1, %v820_v51, 0.0 }
 0x1ae   :  { %v444_v40 = vpop.f32.mrf.mxu0  ;;  %v823_v25 = vmul.f32 %v3963_v3, %v3963_v3 }
 0x1af   :  { %v445_v42 = vadd.f32 %v3624_v20, %v444_v40  ;;  %v3942_v40 = vmax.f32 %v749_v26, 0.0 }
 0x1b0   :  { %v842_v46 = vsel %vm525_vm1, %v823_v25, 0.0 }
 0x1b1   :  { %563 = vst.msk [vmem:[#allocation2 + $0x128] sm:$0xff] %vm525_vm1, %v445_v42  ;;  %v616_v42 = vld [vmem:[#allocation2 + $0xd0] ss:$2 sm:$0xff] }
 0x1b2   :  { %v730_v54 = vmax.f32 %v616_v42, %v680_v43 }
 0x1b6   :  { %v447_v47 = vpop.f32.mrf.mxu0 }
 0x1b7   :  { %v448_v49 = vadd.f32 %v3624_v20, %v447_v47 }
 0x1b8   :  { %v626_v28 = vld [vmem:[#allocation2 + $0x120] ss:$2 sm:$0xff]  ;;  %v690_v33 = vld [vmem:[#allocation2 + $0x121] ss:$2 sm:$0xff] }
 0x1b9   :  { %564 = vst.msk [vmem:[#allocation2 + $0x130] sm:$0xff] %vm525_vm1, %v448_v49  ;;  %v614_v49 = vld [vmem:[#allocation2 + $0xc0] ss:$2 sm:$0xff] }
 0x1ba   :  { %v729_v58 = vmax.f32 %v614_v49, %v678_v50  ;;  %v790_v49 = vsel %vm525_vm1, %v3966_v8, 0.0  ;;  %v844_v50 = vsel %vm525_vm1, %v824_v31, 0.0 }
 0x1bc   :  { %v755_v4 = vmax.f32 %v729_v58, %v730_v54  ;;  %v640_v54 = vld [vmem:[#allocation2 + $0x190] ss:$2 sm:$0xff] }
 0x1be   :  { %v450_v55 = vpop.f32.mrf.mxu0  ;;  %v3977_v26 = vmax.f32 %v755_v4, 0.0 }
 0x1bf   :  { %v451_v57 = vadd.f32 %v3624_v20, %v450_v55  ;;  %v819_v55 = vmul.f32 %v3942_v40, %v3942_v40 }
 0x1c0   :  { %v825_v51 = vmul.f32 %v3977_v26, %v3977_v26  ;;  %v792_v4 = vsel %vm525_vm1, %v3977_v26, 0.0 }
 0x1c1   :  { %565 = vst.msk [vmem:[#allocation2 + $0x138] sm:$0xff] %vm525_vm1, %v451_v57  ;;  %v821_v57 = vmul.f32 %v3944_v45, %v3944_v45  ;;  %v835_v7 = vsel %vm525_vm1, %v819_v55, 0.0 }
 0x1c2   :  { %v846_v11 = vsel %vm525_vm1, %v825_v51, 0.0 }
 0x1c3   :  { %v838_v14 = vsel %vm525_vm1, %v821_v57, 0.0  ;;  %v704_v57 = vld [vmem:[#allocation2 + $0x191] ss:$2 sm:$0xff] }
 0x1c6   :  { %v453_v59 = vpop.f32.mrf.mxu0 }
 0x1c7   :  { %v454_v60 = vadd.f32 %v3624_v20, %v453_v59  ;;  %v620_v59 = vld [vmem:[#allocation2 + $0xf0] ss:$2 sm:$0xff] }
 0x1c8   :  { %v628_v22 = vld [vmem:[#allocation2 + $0x130] ss:$2 sm:$0xff]  ;;  %v692_v23 = vld [vmem:[#allocation2 + $0x131] ss:$2 sm:$0xff] }
 0x1c9   :  { %566 = vst.msk [vmem:[#allocation2 + $0x140] sm:$0xff] %vm525_vm1, %v454_v60  ;;  %v684_v60 = vld [vmem:[#allocation2 + $0xf1] ss:$2 sm:$0xff]  ;;  %v736_v38 = vmax.f32 %v628_v22, %v692_v23  ;;  %v636_v23 = vld [vmem:[#allocation2 + $0x170] ss:$2 sm:$0xff] }
 0x1ca   :  { %v732_v9 = vmax.f32 %v620_v59, %v684_v60  ;;  %v638_v59 = vld [vmem:[#allocation2 + $0x180] ss:$2 sm:$0xff] }
 0x1cc   :  { %v756_v32 = vmax.f32 %v731_v21, %v732_v9 }
 0x1ce   :  { %v456_v61 = vpop.f32.mrf.mxu0  ;;  %v3990_v53 = vmax.f32 %v756_v32, 0.0 }
 0x1cf   :  { %v457_v62 = vadd.f32 %v3624_v20, %v456_v61  ;;  %v781_v61 = vsel %vm525_vm1, %v3942_v40, 0.0 }
 0x1d1   :  { %567 = vst.msk [vmem:[#allocation2 + $0x148] sm:$0xff] %vm525_vm1, %v457_v62  ;;  %v782_v62 = vsel %vm525_vm1, %v3940_v35, 0.0 }
 0x1d2   :  { %v783_v17 = vadd.f32 %v782_v62, %v781_v61 }
 0x1d4   :  { %v785_v29 = vadd.f32 %v784_v13, %v783_v17  ;;  %v710_v13 = vld [vmem:[#allocation2 + $0x1c1] ss:$2 sm:$0xff]  ;;  %v648_v17 = vld [vmem:[#allocation2 + $0x1d0] ss:$2 sm:$0xff] }
 0x1d6   :  { %v459_v15 = vpop.f32.mrf.mxu0  ;;  %v787_v39 = vadd.f32 %v786_v19, %v785_v29  ;;  %v714_v29 = vld [vmem:[#allocation2 + $0x1e1] ss:$2 sm:$0xff] }
 0x1d7   :  { %v460_v18 = vadd.f32 %v3624_v20, %v459_v15  ;;  %v734_v15 = vmax.f32 %v624_v63, %v688_v0  ;;  %v702_v0 = vld [vmem:[#allocation2 + $0x181] ss:$2 sm:$0xff] }
 0x1d8   :  { %v630_v42 = vld [vmem:[#allocation2 + $0x140] ss:$2 sm:$0xff]  ;;  %v694_v43 = vld [vmem:[#allocation2 + $0x141] ss:$2 sm:$0xff]  ;;  %v741_v19 = vmax.f32 %v638_v59, %v702_v0 }
 0x1d9   :  { %568 = vst.msk [vmem:[#allocation2 + $0x150] sm:$0xff] %vm525_vm1, %v460_v18  ;;  %v837_v18 = vadd.f32 %v836_v1, %v835_v7  ;;  %v757_v37 = vmax.f32 %v733_v27, %v734_v15  ;;  %v737_v60 = vmax.f32 %v630_v42, %v694_v43  ;;  %v642_v1 = vld [vmem:[#allocation2 + $0x1a0] ss:$2 sm:$0xff]  ;;  %v742_v15 = vmax.f32 %v640_v54, %v704_v57 }
 0x1da   :  { %v743_v25 = vmax.f32 %v642_v1, %v706_v2  ;;  %v744_v27 = vmax.f32 %v644_v5, %v708_v6 }
 0x1db   :  { %v839_v30 = vadd.f32 %v838_v14, %v837_v18  ;;  %v3992_v56 = vmax.f32 %v757_v37, 0.0  ;;  %v826_v14 = vmul.f32 %v3990_v53, %v3990_v53  ;;  %v712_v18 = vld [vmem:[#allocation2 + $0x1d1] ss:$2 sm:$0xff]  ;;  %v761_v42 = vmax.f32 %v741_v19, %v742_v15 }
 0x1dc   :  { %v716_v37 = vld [vmem:[#allocation2 + $0x1f1] ss:$2 sm:$0xff] }
 0x1dd   :  { %v841_v41 = vadd.f32 %v840_v24, %v839_v30  ;;  %v827_v22 = vmul.f32 %v3992_v56, %v3992_v56  ;;  %v700_v24 = vld [vmem:[#allocation2 + $0x171] ss:$2 sm:$0xff] }
 0x1de   :  { %v462_v44 = vpop.f32.mrf.mxu0 }
 0x1df   :  { %v463_v47 = vadd.f32 %v3624_v20, %v462_v44  ;;  %v788_v44 = vsel %vm525_vm1, %v3963_v3, 0.0  ;;  %v843_v63 = vadd.f32 %v842_v46, %v841_v41  ;;  %v850_v43 = vsel %vm525_vm1, %v827_v22, 0.0 }
 0x1e0   :  { %v789_v62 = vadd.f32 %v788_v44, %v787_v39  ;;  %v796_v39 = vsel %vm525_vm1, %v3992_v56, 0.0  ;;  %v740_v44 = vmax.f32 %v636_v23, %v700_v24 }
 0x1e1   :  { %569 = vst.msk [vmem:[#allocation2 + $0x158] sm:$0xff] %vm525_vm1, %v463_v47  ;;  %v735_v47 = vmax.f32 %v626_v28, %v690_v33  ;;  %v845_v10 = vadd.f32 %v844_v50, %v843_v63  ;;  %v650_v28 = vld [vmem:[#allocation2 + $0x1e0] ss:$2 sm:$0xff] }
 0x1e2   :  { %v791_v9 = vadd.f32 %v790_v49, %v789_v62  ;;  %v747_v46 = vmax.f32 %v650_v28, %v714_v29 }
 0x1e3   :  { %v758_v58 = vmax.f32 %v735_v47, %v736_v38  ;;  %v847_v31 = vadd.f32 %v846_v11, %v845_v10  ;;  %v848_v38 = vsel %vm525_vm1, %v826_v14, 0.0  ;;  %v762_v47 = vmax.f32 %v743_v25, %v744_v27 }
 0x1e4   :  { %v793_v21 = vadd.f32 %v792_v4, %v791_v9 }
 0x1e5   :  { %v849_v57 = vadd.f32 %v848_v38, %v847_v31  ;;  %v4024_v2 = vmax.f32 %v762_v47, 0.0 }
 0x1e6   :  { %v465_v12 = vpop.f32.mrf.mxu0 }
 0x1e7   :  { %v466_v16 = vadd.f32 %v3624_v20, %v465_v12  ;;  %v646_v12 = vld [vmem:[#allocation2 + $0x1c0] ss:$2 sm:$0xff]  ;;  %v851_v0 = vadd.f32 %v850_v43, %v849_v57  ;;  %v806_v25 = vsel %vm525_vm1, %v4024_v2, 0.0 }
 0x1e8   :  { %v632_v34 = vld [vmem:[#allocation2 + $0x150] ss:$2 sm:$0xff]  ;;  %v696_v36 = vld [vmem:[#allocation2 + $0x151] ss:$2 sm:$0xff]  ;;  %v745_v33 = vmax.f32 %v646_v12, %v710_v13 }
 0x1e9   :  { %570 = vst.msk [vmem:[#allocation2 + $0x160] sm:$0xff] %vm525_vm1, %v466_v16  ;;  %v738_v48 = vmax.f32 %v632_v34, %v696_v36  ;;  %v4003_v16 = vmax.f32 %v758_v58, 0.0  ;;  %v746_v34 = vmax.f32 %v648_v17, %v712_v18  ;;  %v652_v36 = vld [vmem:[#allocation2 + $0x1f0] ss:$2 sm:$0xff]  ;;  %v832_v17 = vmul.f32 %v4024_v2, %v4024_v2 }
 0x1ea   :  { %v748_v54 = vmax.f32 %v652_v36, %v716_v37 }
 0x1eb   :  { %v759_v7 = vmax.f32 %v737_v60, %v738_v48  ;;  %v828_v41 = vmul.f32 %v4003_v16, %v4003_v16  ;;  %v798_v50 = vsel %vm525_vm1, %v4003_v16, 0.0  ;;  %v763_v59 = vmax.f32 %v745_v33, %v746_v34 }
 0x1ec   :  { %v764_v5 = vmax.f32 %v747_v46, %v748_v54  ;;  %v860_v31 = vsel %vm525_vm1, %v832_v17, 0.0 }
 0x1ed   :  { %v4007_v30 = vmax.f32 %v759_v7, 0.0  ;;  %v852_v60 = vsel %vm525_vm1, %v828_v41, 0.0  ;;  %v4029_v10 = vmax.f32 %v763_v59, 0.0 }
 0x1ee   :  { %v468_v55 = vpop.f32.mrf.mxu0  ;;  %v853_v7 = vadd.f32 %v852_v60, %v851_v0  ;;  %v4041_v18 = vmax.f32 %v764_v5, 0.0  ;;  %v1708_v60 = vld [vmem:[%s5793_s3 + $0x88] sm:$0xff] }
 0x1ef   :  { %v469_v61 = vadd.f32 %v3624_v20, %v468_v55  ;;  %v794_v20 = vsel %vm525_vm1, %v3990_v53, 0.0  ;;  %v829_v51 = vmul.f32 %v4007_v30, %v4007_v30  ;;  %v800_v62 = vsel %vm525_vm1, %v4007_v30, 0.0  ;;  %1837 = vmatpush.msrb.mxu2 %v1708_v60 }
 0x1f0   :  { %v795_v32 = vadd.f32 %v794_v20, %v793_v21  ;;  %v833_v23 = vmul.f32 %v4029_v10, %v4029_v10  ;;  %v808_v29 = vsel %vm525_vm1, %v4029_v10, 0.0  ;;  %v810_v37 = vsel %vm525_vm1, %v4041_v18, 0.0 }
 0x1f1   :  { %571 = vst.msk [vmem:[#allocation2 + $0x168] sm:$0xff] %vm525_vm1, %v469_v61  ;;  %v4020_v61 = vmax.f32 %v761_v42, 0.0  ;;  %v854_v4 = vsel %vm525_vm1, %v829_v51, 0.0 }
 0x1f2   :  { %v797_v58 = vadd.f32 %v796_v39, %v795_v32  ;;  %v855_v13 = vadd.f32 %v854_v4, %v853_v7  ;;  %v834_v32 = vmul.f32 %v4041_v18, %v4041_v18  ;;  %v862_v36 = vsel %vm525_vm1, %v833_v23, 0.0 }
 0x1f3   :  { %v831_v11 = vmul.f32 %v4020_v61, %v4020_v61  ;;  %v804_v15 = vsel %vm525_vm1, %v4020_v61, 0.0 }
 0x1f4   :  { %v799_v1 = vadd.f32 %v798_v50, %v797_v58  ;;  %v864_v41 = vsel %vm525_vm1, %v834_v32, 0.0 }
 0x1f5   :  { %v858_v24 = vsel %vm525_vm1, %v831_v11, 0.0 }
 0x1f6   :  { %v801_v9 = vadd.f32 %v800_v62, %v799_v1  ;;  %v1707_v62 = vld [vmem:[%s5793_s3 + $0x80] sm:$0xff] }
 0x1f7   :  { %1838 = vmatpush.msrb.mxu2 %v1707_v62 }
 0x1f8   :  { %v634_v48 = vld [vmem:[#allocation2 + $0x160] ss:$2 sm:$0xff]  ;;  %v698_v49 = vld [vmem:[#allocation2 + $0x161] ss:$2 sm:$0xff] }
 0x1f9   :  { %v739_v55 = vmax.f32 %v634_v48, %v698_v49 }
 0x1fb   :  { %v760_v63 = vmax.f32 %v739_v55, %v740_v44 }
 0x1fd   :  { %v4027_v6 = vmax.f32 %v760_v63, 0.0  ;;  %v3471_v63 = vmov 0.0  }
 0x1fe   :  { %894 = vst.msk [vmem:[#allocation3 + $0x20] sm:$0xff] %vm525_vm1, %v3471_v63 }
 0x1ff   :  { %v802_v20 = vsel %vm525_vm1, %v4027_v6, 0.0  ;;  %v830_v12 = vmul.f32 %v4027_v6, %v4027_v6  ;;  %895 = vst.msk [vmem:[#allocation3 + $0x28] sm:$0x3] %vm890_vm2, %v3471_v63 }
 0x200   :  { %v803_v14 = vadd.f32 %v802_v20, %v801_v9  ;;  %889 = vst.msk [vmem:[#allocation3] sm:$0xff] %vm525_vm1, %v3471_v63 }
 0x201   :  { %v856_v19 = vsel %vm525_vm1, %v830_v12, 0.0  ;;  %891 = vst.msk [vmem:[#allocation3 + $0x8] sm:$0x3] %vm890_vm2, %v3471_v63 }
 0x202   :  { %v805_v21 = vadd.f32 %v804_v15, %v803_v14  ;;  %v857_v22 = vadd.f32 %v856_v19, %v855_v13  ;;  %892 = vst.msk [vmem:[#allocation3 + $0x10] sm:$0xff] %vm525_vm1, %v3471_v63  ;;  %v43_v13 = vld [vmem:[%s5800_s10 + $0x1] sm:$0x1]  ;;  %v44_v19 = vld [vmem:[%s5800_s10 + $0x2] sm:$0x1] }
 0x203   :  { %893 = vst.msk [vmem:[#allocation3 + $0x18] sm:$0x3] %vm890_vm2, %v3471_v63 }
 0x204   :  { %v807_v27 = vadd.f32 %v806_v25, %v805_v21  ;;  %v859_v28 = vadd.f32 %v858_v24, %v857_v22  ;;  %896 = vst.msk [vmem:[#allocation3 + $0x30] sm:$0xff] %vm525_vm1, %v3471_v63 }
 0x205   :  { %897 = vst.msk [vmem:[#allocation3 + $0x38] sm:$0x3] %vm890_vm2, %v3471_v63 }
 0x206   :  { %v809_v33 = vadd.f32 %v808_v29, %v807_v27  ;;  %v861_v34 = vadd.f32 %v860_v31, %v859_v28  ;;  %898 = vst.msk [vmem:[#allocation3 + $0x40] sm:$0xff] %vm525_vm1, %v3471_v63 }
 0x207   :  { %899 = vst.msk [vmem:[#allocation3 + $0x48] sm:$0x3] %vm890_vm2, %v3471_v63 }
 0x208   :  { %v811_v38 = vadd.f32 %v810_v37, %v809_v33  ;;  %v863_v39 = vadd.f32 %v862_v36, %v861_v34  ;;  %900 = vst.msk [vmem:[#allocation3 + $0x50] sm:$0xff] %vm525_vm1, %v3471_v63  ;;  %v1013_v62 = vld [vmem:[#allocation3 + $0x2] sm:$0xff] }
 0x209   :  { %901 = vst.msk [vmem:[#allocation3 + $0x58] sm:$0x3] %vm890_vm2, %v3471_v63 }
 0x20a   :  { %v812_v42 = vrot.slane %v811_v38, 4  ;;  %v865_v43 = vadd.f32 %v864_v41, %v863_v39  ;;  %902 = vst.msk [vmem:[#allocation3 + $0x60] sm:$0xff] %vm525_vm1, %v3471_v63 }
 0x20b   :  { %903 = vst.msk [vmem:[#allocation3 + $0x68] sm:$0x3] %vm890_vm2, %v3471_v63 }
 0x20c   :  { %v813_v44 = vadd.f32 %v812_v42, %v811_v38  ;;  %v866_v46 = vrot.slane %v865_v43, 4  ;;  %904 = vst.msk [vmem:[#allocation3 + $0x70] sm:$0xff] %vm525_vm1, %v3471_v63 }
 0x20d   :  { %905 = vst.msk [vmem:[#allocation3 + $0x78] sm:$0x3] %vm890_vm2, %v3471_v63 }
 0x20e   :  { %v814_v47 = vrot.slane %v813_v44, 2  ;;  %v867_v48 = vadd.f32 %v866_v46, %v865_v43  ;;  %906 = vst.msk [vmem:[#allocation3 + $0x80] sm:$0xff] %vm525_vm1, %v3471_v63 }
 0x20f   :  { %907 = vst.msk [vmem:[#allocation3 + $0x88] sm:$0x3] %vm890_vm2, %v3471_v63 }
 0x210   :  { %v815_v49 = vadd.f32 %v814_v47, %v813_v44  ;;  %v868_v50 = vrot.slane %v867_v48, 2  ;;  %908 = vst.msk [vmem:[#allocation3 + $0x90] sm:$0xff] %vm525_vm1, %v3471_v63  ;;  %v997_v44 = vld [vmem:[#allocation3 + $0x1] sm:$0xff] }
 0x211   :  { %909 = vst.msk [vmem:[#allocation3 + $0x98] sm:$0x3] %vm890_vm2, %v3471_v63 }
 0x212   :  { %v816_v51 = vrot.slane %v815_v49, 1  ;;  %v869_v54 = vadd.f32 %v868_v50, %v867_v48  ;;  %910 = vst.msk [vmem:[#allocation3 + $0xa0] sm:$0xff] %vm525_vm1, %v3471_v63 }
 0x213   :  { %911 = vst.msk [vmem:[#allocation3 + $0xa8] sm:$0x3] %vm890_vm2, %v3471_v63 }
 0x214   :  { %v817_v55 = vadd.f32 %v816_v51, %v815_v49  ;;  %v870_v57 = vrot.slane %v869_v54, 1  ;;  %912 = vst.msk [vmem:[#allocation3 + $0xb0] sm:$0xff] %vm525_vm1, %v3471_v63 }
 0x215   :  { %913 = vst.msk [vmem:[#allocation3 + $0xb8] sm:$0x3] %vm890_vm2, %v3471_v63 }
 0x216   :  { %v818_v58 = vmul.f32 0.0078125, %v817_v55  ;;  %v871_v59 = vadd.f32 %v870_v57, %v869_v54  ;;  %914 = vst.msk [vmem:[#allocation3 + $0xc0] sm:$0xff] %vm525_vm1, %v3471_v63 }
 0x217   :  { %915 = vst.msk [vmem:[#allocation3 + $0xc8] sm:$0x3] %vm890_vm2, %v3471_v63 }
 0x218   :  { %v872_v0 = vmul.f32 0.0078125, %v871_v59  ;;  %v873_v1 = vmul.f32 %v818_v58, %v818_v58  ;;  %916 = vst.msk [vmem:[#allocation3 + $0xd0] sm:$0xff] %vm525_vm1, %v3471_v63 }
 0x219   :  { %917 = vst.msk [vmem:[#allocation3 + $0xd8] sm:$0x3] %vm890_vm2, %v3471_v63 }
 0x21a   :  { %v874_v4 = vsub.f32 %v872_v0, %v873_v1  ;;  %918 = vst.msk [vmem:[#allocation3 + $0xe0] sm:$0xff] %vm525_vm1, %v3471_v63 }
 0x21b   :  { %919 = vst.msk [vmem:[#allocation3 + $0xe8] sm:$0x3] %vm890_vm2, %v3471_v63 }
 0x21c   :  { %v875_v5 = vadd.f32 1e-05, %v874_v4  ;;  %920 = vst.msk [vmem:[#allocation3 + $0xf0] sm:$0xff] %vm525_vm1, %v3471_v63 }
 0x21d   :  { %921 = vst.msk [vmem:[#allocation3 + $0xf8] sm:$0x3] %vm890_vm2, %v3471_v63 }
 0x21e   :  { %3439 = vrsqrt.f32 %v875_v5  ;;  %vm882_vm4 = vweird.f32 %v875_v5  ;;  %922 = vst.msk [vmem:[#allocation3 + $0x100] sm:$0xff] %vm525_vm1, %v3471_v63 }
 0x21f   :  { %923 = vst.msk [vmem:[#allocation3 + $0x108] sm:$0x3] %vm890_vm2, %v3471_v63 }
 0x220   :  { %924 = vst.msk [vmem:[#allocation3 + $0x110] sm:$0xff] %vm525_vm1, %v3471_v63 }
 0x221   :  { %925 = vst.msk [vmem:[#allocation3 + $0x118] sm:$0x3] %vm890_vm2, %v3471_v63 }
 0x222   :  { %926 = vst.msk [vmem:[#allocation3 + $0x120] sm:$0xff] %vm525_vm1, %v3471_v63 }
 0x223   :  { %927 = vst.msk [vmem:[#allocation3 + $0x128] sm:$0x3] %vm890_vm2, %v3471_v63 }
 0x224   :  { %v3440_v7 = vpop.eup %3439  ;;  %928 = vst.msk [vmem:[#allocation3 + $0x130] sm:$0xff] %vm525_vm1, %v3471_v63 }
 0x225   :  { %v877_v9 = vmul.f32 %v3440_v7, %v875_v5  ;;  %vm883_vm3 = vweird.f32 %v3440_v7  ;;  %929 = vst.msk [vmem:[#allocation3 + $0x138] sm:$0x3] %vm890_vm2, %v3471_v63 }
 0x226   :  { %vm884_vm5 = vmor %vm882_vm4, %vm883_vm3 }
 0x227   :  { %v878_v11 = vmul.f32 %v3440_v7, %v877_v9 }
 0x229   :  { %v879_v20 = vmul.f32 0.5, %v878_v11 }
 0x22b   :  { %v880_v12 = vsub.f32 1.5, %v879_v20 }
 0x22d   :  { %v881_v14 = vmul.f32 %v3440_v7, %v880_v12 }
 0x22f   :  { %v885_v15 = vsel %vm884_vm5, %v3440_v7, %v881_v14 }
 0x230   :  { %v886_v17 = vmul.f32 %v885_v15, %v43_v13 }
 0x232   :  { %v887_v21 = vmul.f32 %v886_v17, %v818_v58  ;;  %v4124_v22 = vperm.slane %v886_v17, 0 }
 0x234   :  { %v888_v23 = vsub.f32 %v44_v19, %v887_v21  ;;  %v932_v25 = vmul.f32 %v4124_v22, %v3940_v35  ;;  %v931_v28 = vmul.f32 %v4124_v22, %v3942_v40  ;;  %v933_v35 = vmul.f32 %v4124_v22, %v3944_v45 }
 0x235   :  { %v934_v31 = vmul.f32 %v4124_v22, %v3949_v52  ;;  %v935_v40 = vmul.f32 %v4124_v22, %v3963_v3  ;;  %v936_v33 = vmul.f32 %v4124_v22, %v3966_v8  ;;  %v937_v34 = vmul.f32 %v4124_v22, %v3977_v26 }
 0x236   :  { %v4134_v24 = vperm.slane %v888_v23, 0  ;;  %v938_v36 = vmul.f32 %v4124_v22, %v3990_v53  ;;  %v940_v38 = vmul.f32 %v4124_v22, %v4003_v16  ;;  %v941_v39 = vmul.f32 %v4124_v22, %v4007_v30 }
 0x237   :  { %v939_v41 = vmul.f32 %v4124_v22, %v3992_v56  ;;  %v942_v16 = vmul.f32 %v4124_v22, %v4027_v6  ;;  %v943_v46 = vmul.f32 %v4124_v22, %v4020_v61  ;;  %v944_v56 = vmul.f32 %v4124_v22, %v4024_v2 }
 0x238   :  { %v949_v27 = vadd.f32 %v4134_v24, %v932_v25  ;;  %v948_v29 = vadd.f32 %v4134_v24, %v931_v28  ;;  %v950_v32 = vadd.f32 %v4134_v24, %v933_v35  ;;  %v951_v45 = vadd.f32 %v4134_v24, %v934_v31 }
 0x239   :  { %v952_v52 = vadd.f32 %v4134_v24, %v935_v40  ;;  %v953_v3 = vadd.f32 %v4134_v24, %v936_v33  ;;  %v954_v8 = vadd.f32 %v4134_v24, %v937_v34  ;;  %v955_v26 = vadd.f32 %v4134_v24, %v938_v36 }
 0x23a   :  { %966 = vst.msk [vmem:[#allocation3 + $0x21] sm:$0xff] %vm525_vm1, %v949_v27  ;;  %v957_v53 = vadd.f32 %v4134_v24, %v940_v38  ;;  %v958_v42 = vadd.f32 %v4134_v24, %v941_v39  ;;  %v956_v30 = vadd.f32 %v4134_v24, %v939_v41  ;;  %v959_v6 = vadd.f32 %v4134_v24, %v942_v16  ;;  %v1085_v38 = vld [vmem:[#allocation3 + $0x90] sm:$0xff] }
 0x23b   :  { %965 = vst.msk [vmem:[#allocation3 + $0x11] sm:$0xff] %vm525_vm1, %v948_v29  ;;  %v960_v50 = vadd.f32 %v4134_v24, %v943_v46  ;;  %v961_v51 = vadd.f32 %v4134_v24, %v944_v56  ;;  %v945_v61 = vmul.f32 %v4124_v22, %v4029_v10  ;;  %v946_v57 = vmul.f32 %v4124_v22, %v4041_v18  ;;  %v1706_v56 = vld [vmem:[%s5793_s3 + $0x78] sm:$0xff] }
 0x23c   :  { %967 = vst.msk [vmem:[#allocation3 + $0x31] sm:$0xff] %vm525_vm1, %v950_v32  ;;  %1758 = vmatpush.msrb.mxu1 %v1706_v56 }
 0x23d   :  { %968 = vst.msk [vmem:[#allocation3 + $0x41] sm:$0xff] %vm525_vm1, %v951_v45  ;;  %v962_v58 = vadd.f32 %v4134_v24, %v945_v61  ;;  %v963_v59 = vadd.f32 %v4134_v24, %v946_v57  ;;  %v1705_v61 = vld [vmem:[%s5793_s3 + $0x70] sm:$0xff] }
 0x23e   :  { %969 = vst.msk [vmem:[#allocation3 + $0x51] sm:$0xff] %vm525_vm1, %v952_v52  ;;  %v1117_v52 = vld [vmem:[#allocation3 + $0x92] sm:$0xff]  ;;  %1759 = vmatpush.msrb.mxu1 %v1705_v61 }
 0x23f   :  { %970 = vst.msk [vmem:[#allocation3 + $0x61] sm:$0xff] %vm525_vm1, %v953_v3 }
 0x240   :  { %971 = vst.msk [vmem:[#allocation3 + $0x71] sm:$0xff] %vm525_vm1, %v954_v8 }
 0x241   :  { %v4178_v37 = vld [vmem:[#allocation3 + $0x22] sm:$0xff]  ;;  %972 = vst.msk [vmem:[#allocation3 + $0x81] sm:$0xff] %vm525_vm1, %v955_v26 }
 0x242   :  { %3123 = vmatmul.msk.f32.vlgmr.msrb.gmra.mxu2 %vm525_vm1, %v4178_v37  ;;  %v4198_v43 = vld [vmem:[#allocation3 + $0x20] sm:$0xff]  ;;  %v1061_v47 = vld [vmem:[#allocation3 + $0x12] sm:$0xff]  ;;  %974 = vst.msk [vmem:[#allocation3 + $0xc1] sm:$0xff] %vm525_vm1, %v957_v53 }
 0x243   :  { %v4208_v48 = vld [vmem:[#allocation3 + $0x10] sm:$0xff]  ;;  %v3189_v54 = vpack.i.bf16 %v4178_v37, %v1061_v47  ;;  %975 = vst.msk [vmem:[#allocation3 + $0xd1] sm:$0xff] %vm525_vm1, %v958_v42  ;;  %v1046_v60 = vld [vmem:[#allocation3 + $0x21] sm:$0xff]  ;;  %v3174_v1 = vpack.i.bf16 %v1061_v47, %v1013_v62  ;;  %v1702_v62 = vld [vmem:[%s5793_s3 + $0x58] sm:$0xff] }
 0x244   :  { %v998_v49 = vld [vmem:[#allocation3 + $0x11] sm:$0xff]  ;;  %v3179_v2 = vpack.i.bf16 %v4198_v43, %v4208_v48  ;;  %973 = vst.msk [vmem:[#allocation3 + $0xb1] sm:$0xff] %vm525_vm1, %v956_v30  ;;  %v1112_v4 = vld [vmem:[#allocation3 + $0x42] sm:$0xff] }
 0x245   :  { %v3169_v55 = vpack.i.bf16 %v998_v49, %v997_v44  ;;  %3190 = vrot.lane.b32.xlu2 %v3189_v54, %s3472_s14  ;;  %v1111_v10 = vld [vmem:[#allocation3 + $0x32] sm:$0xff]  ;;  %976 = vst.msk [vmem:[#allocation3 + $0xe1] sm:$0xff] %vm525_vm1, %v959_v6  ;;  %v3184_v0 = vpack.i.bf16 %v1046_v60, %v998_v49  ;;  %v1048_v20 = vld [vmem:[#allocation3 + $0x41] sm:$0xff] }
 0x246   :  { %3180 = vrot.lane.b32.xlu1 %v3179_v2, %s3473_s15  ;;  %977 = vst.msk [vmem:[#allocation3 + $0xf1] sm:$0xff] %vm525_vm1, %v960_v50  ;;  %v4231_v18 = vld [vmem:[#allocation3 + $0x30] sm:$0xff]  ;;  %v3209_v7 = vpack.i.bf16 %v1111_v10, %v4178_v37  ;;  %v4246_v12 = vld [vmem:[#allocation3 + $0x40] sm:$0xff]  ;;  %v3224_v13 = vpack.i.bf16 %v1112_v4, %v1111_v10  ;;  %v1704_v2 = vld [vmem:[%s5793_s3 + $0x68] sm:$0xff] }
 0x247   :  { %3170 = vrot.lane.b32.xlu0 %v3169_v55, %s3474_s16  ;;  %978 = vst.msk [vmem:[#allocation3 + $0x101] sm:$0xff] %vm525_vm1, %v961_v51  ;;  %v3194_v63 = vpack.i.bf16 %v4231_v18, %v4198_v43  ;;  %v1000_v5 = vld [vmem:[#allocation3 + $0x31] sm:$0xff]  ;;  %v3214_v15 = vpack.i.bf16 %v4246_v12, %v4231_v18  ;;  %v1114_v17 = vld [vmem:[#allocation3 + $0x62] sm:$0xff]  ;;  %1760 = vmatpush.msrb.mxu1 %v1704_v2 }
 0x248   :  { %979 = vst.msk [vmem:[#allocation3 + $0x111] sm:$0xff] %vm525_vm1, %v962_v58  ;;  %v3204_v9 = vpack.i.bf16 %v1000_v5, %v1046_v60  ;;  %v1113_v11 = vld [vmem:[#allocation3 + $0x52] sm:$0xff]  ;;  %v3219_v14 = vpack.i.bf16 %v1048_v20, %v1000_v5  ;;  %v1050_v25 = vld [vmem:[#allocation3 + $0x61] sm:$0xff] }
 0x249   :  { %980 = vst.msk [vmem:[#allocation3 + $0x121] sm:$0xff] %vm525_vm1, %v963_v59  ;;  %v1002_v19 = vld [vmem:[#allocation3 + $0x51] sm:$0xff]  ;;  %v4262_v27 = vld [vmem:[#allocation3 + $0x60] sm:$0xff]  ;;  %v3244_v29 = vpack.i.bf16 %v1113_v11, %v1112_v4  ;;  %v3259_v34 = vpack.i.bf16 %v1114_v17, %v1113_v11 }
 0x24a   :  { %3124 = vmatmul.msk.f32.gmra.mxu2 %vm525_vm1, %v1111_v10  ;;  %v4254_v21 = vld [vmem:[#allocation3 + $0x50] sm:$0xff]  ;;  %v3239_v22 = vpack.i.bf16 %v1002_v19, %v1048_v20  ;;  %v3254_v28 = vpack.i.bf16 %v1050_v25, %v1002_v19  ;;  %v1116_v31 = vld [vmem:[#allocation3 + $0x82] sm:$0xff] }
 0x24b   :  { %v3229_v23 = vpack.i.bf16 %v4254_v21, %v4246_v12  ;;  %v1115_v24 = vld [vmem:[#allocation3 + $0x72] sm:$0xff]  ;;  %v3249_v35 = vpack.i.bf16 %v4262_v27, %v4254_v21  ;;  %v1036_v3 = vld [vmem:[#allocation3 + $0x80] sm:$0xff] }
 0x24c   :  { %v1099_v32 = vld [vmem:[#allocation3 + $0x71] sm:$0xff]  ;;  %v3279_v37 = vpack.i.bf16 %v1115_v24, %v1114_v17  ;;  %v4281_v8 = vld [vmem:[#allocation3 + $0xc2] sm:$0xff]  ;;  %v3299_v39 = vpack.i.bf16 %v1085_v38, %v1036_v3  ;;  %v3294_v53 = vpack.i.bf16 %v1116_v31, %v1115_v24 }
 0x24d   :  { %3195 = vrot.lane.b32.xlu2 %v3194_v63, %s3475_s17  ;;  %v4270_v40 = vld [vmem:[#allocation3 + $0x70] sm:$0xff]  ;;  %v3269_v45 = vpack.i.bf16 %v1099_v32, %v1050_v25  ;;  %v1052_v26 = vld [vmem:[#allocation3 + $0x81] sm:$0xff] }
 0x24e   :  { %3185 = vrot.lane.b32.xlu1 %v3184_v0, %s3476_s18  ;;  %v3264_v33 = vpack.i.bf16 %v4270_v40, %v4262_v27  ;;  %v3284_v36 = vpack.i.bf16 %v1036_v3, %v4270_v40  ;;  %v3289_v41 = vpack.i.bf16 %v1052_v26, %v1099_v32  ;;  %v4288_v16 = vld [vmem:[#allocation3 + $0xd2] sm:$0xff]  ;;  %v1021_v42 = vld [vmem:[#allocation3 + $0xa2] sm:$0xff] }
 0x24f   :  { %3175 = vrot.lane.b32.xlu0 %v3174_v1, %s3477_s19  ;;  %v1005_v44 = vld [vmem:[#allocation3 + $0xa1] sm:$0xff]  ;;  %v1022_v30 = vld [vmem:[#allocation3 + $0xb2] sm:$0xff] }
 0x250   :  { %v1006_v46 = vld [vmem:[#allocation3 + $0xb1] sm:$0xff]  ;;  %v3314_v47 = vpack.i.bf16 %v1022_v30, %v1021_v42  ;;  %v4298_v51 = vld [vmem:[#allocation3 + $0xe2] sm:$0xff]  ;;  %v3329_v10 = vpack.i.bf16 %v4281_v8, %v1022_v30 }
 0x251   :  { %v1101_v6 = vld [vmem:[#allocation3 + $0x91] sm:$0xff]  ;;  %v3309_v49 = vpack.i.bf16 %v1006_v46, %v1005_v44  ;;  %v1054_v54 = vld [vmem:[#allocation3 + $0xc1] sm:$0xff] }
 0x252   :  { %3125 = vmatmul.msk.f32.gmra.mxu2 %vm525_vm1, %v1112_v4  ;;  %v3304_v50 = vpack.i.bf16 %v1101_v6, %v1052_v26  ;;  %v1703_v55 = vld [vmem:[%s5793_s3 + $0x60] sm:$0xff]  ;;  %v4312_v57 = vld [vmem:[#allocation3 + $0xb0] sm:$0xff]  ;;  %v3324_v59 = vpack.i.bf16 %v1054_v54, %v1006_v46  ;;  %v1696_v25 = vld [vmem:[%s5793_s3 + $0x28] sm:$0xff] }
 0x253   :  { %v4314_v58 = vld [vmem:[#allocation3 + $0xc0] sm:$0xff]  ;;  %1761 = vmatpush.msrb.mxu1 %v1703_v55  ;;  %v4324_v63 = vld [vmem:[#allocation3 + $0xf2] sm:$0xff] }
 0x254   :  { %v3319_v60 = vpack.i.bf16 %v4314_v58, %v4312_v57  ;;  %v1701_v0 = vld [vmem:[%s5793_s3 + $0x50] sm:$0xff]  ;;  %v4344_v20 = vld [vmem:[#allocation3 + $0x102] sm:$0xff] }
 0x255   :  { %3210 = vrot.lane.b32.xlu2 %v3209_v7, %s3477_s19  ;;  %1762 = vmatpush.msrb.mxu1 %v1702_v62  ;;  %v1008_v1 = vld [vmem:[#allocation3 + $0xd1] sm:$0xff]  ;;  %v1700_v7 = vld [vmem:[%s5793_s3 + $0x48] sm:$0xff]  ;;  %v4402_v38 = vld [vmem:[#allocation3 + $0x100] sm:$0xff]  ;;  %v3399_v56 = vpack.i.bf16 %v4344_v20, %v4324_v63 }
 0x256   :  { %3205 = vrot.lane.b32.xlu1 %v3204_v9, %s3474_s16  ;;  %v4332_v4 = vld [vmem:[#allocation3 + $0xd0] sm:$0xff]  ;;  %v3344_v5 = vpack.i.bf16 %v1008_v1, %v1054_v54  ;;  %v1691_v26 = vld [vmem:[%s5793_s3] sm:$0xff] }
 0x257   :  { %3200 = vrot.lane.b32.xlu0 %v3204_v9, %s3478_s20  ;;  %1763 = vmatpush.msrb.mxu1 %v1701_v0  ;;  %v3334_v9 = vpack.i.bf16 %v4332_v4, %v4314_v58  ;;  %v1697_v19 = vld [vmem:[%s5793_s3 + $0x30] sm:$0xff]  ;;  %v1058_v30 = vld [vmem:[#allocation3 + $0x101] sm:$0xff] }
 0x258   :  { %v4378_v32 = vld [vmem:[#allocation3 + $0xf0] sm:$0xff] }
 0x259   :  { %1764 = vmatpush.msrb.mxu1 %v1700_v7  ;;  %v1693_v3 = vld [vmem:[%s5793_s3 + $0x10] sm:$0xff] }
 0x25a   :  { %3126 = vmatmul.msk.f32.gmra.mxu2 %vm525_vm1, %v1113_v11  ;;  %v1699_v11 = vld [vmem:[%s5793_s3 + $0x40] sm:$0xff]  ;;  %v4414_v42 = vld [vmem:[#allocation3 + $0x110] sm:$0xff] }
 0x25b   :  { %1765 = vmatpush.msrb.mxu1 %v1699_v11  ;;  %v3404_v46 = vpack.i.bf16 %v4414_v42, %v4402_v38  ;;  %v1012_v61 = vld [vmem:[#allocation3 + $0x111] sm:$0xff] }
 0x25d   :  { %3225 = vrot.lane.b32.xlu2 %v3224_v13, %s3472_s14  ;;  %v1698_v13 = vld [vmem:[%s5793_s3 + $0x38] sm:$0xff] }
 0x25e   :  { %3220 = vrot.lane.b32.xlu1 %v3219_v14, %s3476_s18  ;;  %1766 = vmatpush.msrb.mxu1 %v1698_v13 }
 0x25f   :  { %3215 = vrot.lane.b32.xlu0 %v3214_v15, %s3473_s15  ;;  %v1056_v15 = vld [vmem:[#allocation3 + $0xe1] sm:$0xff] }
 0x260   :  { %1767 = vmatpush.msrb.mxu1 %v1697_v19 }
 0x262   :  { %3127 = vmatmul.msk.f32.gmra.mxu2 %vm525_vm1, %v1114_v17  ;;  %v4354_v17 = vld [vmem:[#allocation3 + $0xe0] sm:$0xff]  ;;  %1768 = vmatpush.msrb.mxu1 %v1696_v25 }
 0x265   :  { %3240 = vrot.lane.b32.xlu2 %v3239_v22, %s3474_s16 }
 0x266   :  { %3235 = vrot.lane.b32.xlu1 %v3239_v22, %s3478_s20  ;;  %v3359_v22 = vpack.i.bf16 %v1056_v15, %v1008_v1  ;;  %v3414_v1 = vpack.i.bf16 %v1012_v61, %v1058_v30 }
 0x267   :  { %3230 = vrot.lane.b32.xlu0 %v3229_v23, %s3475_s17  ;;  %v3354_v23 = vpack.i.bf16 %v4354_v17, %v4332_v4 }
 0x26a   :  { %3128 = vmatmul.msk.f32.gmra.mxu2 %vm525_vm1, %v1115_v24  ;;  %v3349_v24 = vpack.i.bf16 %v4288_v16, %v4281_v8 }
 0x26d   :  { %3255 = vrot.lane.b32.xlu2 %v3254_v28, %s3476_s18  ;;  %v4368_v28 = vld [vmem:[#allocation3 + $0x112] sm:$0xff] }
 0x26e   :  { %3250 = vrot.lane.b32.xlu1 %v3249_v35, %s3473_s15  ;;  %v1695_v35 = vld [vmem:[%s5793_s3 + $0x20] sm:$0xff]  ;;  %v3419_v0 = vpack.i.bf16 %v4368_v28, %v4344_v20 }
 0x26f   :  { %3245 = vrot.lane.b32.xlu0 %v3244_v29, %s3477_s19  ;;  %1769 = vmatpush.msrb.mxu1 %v1695_v35  ;;  %v1044_v35 = vld [vmem:[#allocation3 + $0x120] sm:$0xff] }
 0x272   :  { %3129 = vmatmul.msk.f32.gmra.mxu2 %vm525_vm1, %v1116_v31  ;;  %v1105_v31 = vld [vmem:[#allocation3 + $0xf1] sm:$0xff] }
 0x273   :  { %v3394_v6 = vpack.i.bf16 %v1058_v30, %v1105_v31 }
 0x275   :  { %3270 = vrot.lane.b32.xlu2 %v3269_v45, %s3478_s20 }
 0x276   :  { %3265 = vrot.lane.b32.xlu1 %v3264_v33, %s3475_s17  ;;  %v3374_v33 = vpack.i.bf16 %v1105_v31, %v1056_v15 }
 0x277   :  { %3260 = vrot.lane.b32.xlu0 %v3259_v34, %s3472_s14  ;;  %v3364_v34 = vpack.i.bf16 %v4298_v51, %v4288_v16 }
 0x27a   :  { %3130 = vmatmul.msk.f32.gmra.mxu2 %vm525_vm1, %v1117_v52  ;;  %v3369_v52 = vpack.i.bf16 %v4378_v32, %v4354_v17 }
 0x27d   :  { %3285 = vrot.lane.b32.xlu2 %v3284_v36, %s3473_s15  ;;  %v4392_v36 = vld [vmem:[#allocation3 + $0x122] sm:$0xff] }
 0x27e   :  { %3280 = vrot.lane.b32.xlu1 %v3279_v37, %s3477_s19  ;;  %v1692_v37 = vld [vmem:[%s5793_s3 + $0x8] sm:$0xff] }
 0x27f   :  { %3275 = vrot.lane.b32.xlu0 %v3269_v45, %s3474_s16  ;;  %v1694_v45 = vld [vmem:[%s5793_s3 + $0x18] sm:$0xff] }
 0x280   :  { %1770 = vmatpush.msrb.mxu1 %v1694_v45 }
 0x282   :  { %3131 = vmatmul.msk.f32.gmra.mxu2 %vm525_vm1, %v4281_v8  ;;  %1771 = vmatpush.msrb.mxu1 %v1693_v3  ;;  %v3424_v3 = vpack.i.bf16 %v1044_v35, %v4414_v42 }
 0x284   :  { %1772 = vmatpush.msrb.mxu1 %v1692_v37 }
 0x285   :  { %3300 = vrot.lane.b32.xlu2 %v3299_v39, %s3475_s17  ;;  %v3389_v39 = vpack.i.bf16 %v4402_v38, %v4378_v32 }
 0x286   :  { %3295 = vrot.lane.b32.xlu1 %v3294_v53, %s3472_s14  ;;  %v3384_v53 = vpack.i.bf16 %v4324_v63, %v4298_v51  ;;  %1773 = vmatpush.msrb.mxu1 %v1691_v26 }
 0x287   :  { %3290 = vrot.lane.b32.xlu0 %v3289_v41, %s3476_s18 }
 0x28a   :  { %3132 = vmatmul.msk.f32.gmra.mxu2 %vm525_vm1, %v4288_v16 }
 0x28d   :  { %3315 = vrot.lane.b32.xlu2 %v3314_v47, %s3477_s19 }
 0x28e   :  { %3310 = vrot.lane.b32.xlu1 %v3309_v49, %s3474_s16  ;;  %v981_v49 = vld [vmem:[#allocation3] sm:$0xff] }
 0x28f   :  { %3305 = vrot.lane.b32.xlu0 %v3304_v50, %s3478_s20 }
 0x292   :  { %3133 = vmatmul.msk.f32.gmra.mxu2 %vm525_vm1, %v4298_v51 }
 0x295   :  { %3330 = vrot.lane.b32.xlu2 %v3329_v10, %s3472_s14 }
 0x296   :  { %3325 = vrot.lane.b32.xlu1 %v3324_v59, %s3476_s18 }
 0x297   :  { %3320 = vrot.lane.b32.xlu0 %v3319_v60, %s3473_s15 }
 0x29a   :  { %3134 = vmatmul.msk.f32.gmra.mxu2 %vm525_vm1, %v4324_v63 }
 0x29d   :  { %3345 = vrot.lane.b32.xlu2 %v3344_v5, %s3474_s16 }
 0x29e   :  { %3340 = vrot.lane.b32.xlu1 %v3344_v5, %s3478_s20 }
 0x29f   :  { %3335 = vrot.lane.b32.xlu0 %v3334_v9, %s3475_s17  ;;  %v4352_v14 = vpop.permute.xlu2 %3190 }
 0x2a0   :  { %v3192_v7 = vunpack.i.l.bf16 %v4352_v14  ;;  %v3193_v26 = vunpack.i.h.bf16 %v4352_v14 }
 0x2a2   :  { %3135 = vmatmul.msk.f32.gmra.mxu2 %vm525_vm1, %v4344_v20 }
 0x2a5   :  { %3360 = vrot.lane.b32.xlu2 %v3359_v22, %s3476_s18 }
 0x2a6   :  { %3355 = vrot.lane.b32.xlu1 %v3354_v23, %s3473_s15 }
 0x2a7   :  { %3350 = vrot.lane.b32.xlu0 %v3349_v24, %s3477_s19  ;;  %v4376_v29 = vpop.permute.xlu2 %3195 }
 0x2a8   :  { %v3197_v22 = vunpack.i.l.bf16 %v4376_v29  ;;  %v3198_v30 = vunpack.i.h.bf16 %v4376_v29 }
 0x2aa   :  { %3136 = vmatmul.msk.f32.gmra.mxu2 %vm525_vm1, %v4368_v28 }
 0x2ad   :  { %3375 = vrot.lane.b32.xlu2 %v3374_v33, %s3478_s20 }
 0x2ae   :  { %3370 = vrot.lane.b32.xlu1 %v3369_v52, %s3475_s17 }
 0x2af   :  { %3365 = vrot.lane.b32.xlu0 %v3364_v34, %s3472_s14  ;;  %v4400_v8 = vpop.permute.xlu2 %3210 }
 0x2b0   :  { %v3212_v14 = vunpack.i.l.bf16 %v4400_v8 }
 0x2b2   :  { %3137 = vmatmul.msk.f32.gmra.mxu2 %vm525_vm1, %v4392_v36 }
 0x2b5   :  { %3390 = vrot.lane.b32.xlu2 %v3389_v39, %s3473_s15 }
 0x2b6   :  { %3385 = vrot.lane.b32.xlu1 %v3384_v53, %s3477_s19 }
 0x2b7   :  { %3380 = vrot.lane.b32.xlu0 %v3374_v33, %s3474_s16  ;;  %v4416_v44 = vpop.permute.xlu2 %3225 }
 0x2b8   :  { %v3181_v41 = vpop.permute.xlu1 %3180 }
 0x2b9   :  { %v3171_v16 = vpop.permute.xlu0 %3170  ;;  %v3182_v55 = vunpack.i.l.bf16 %v3181_v41  ;;  %v3183_v20 = vunpack.i.h.bf16 %v3181_v41 }
 0x2ba   :  { %v3172_v47 = vunpack.i.l.bf16 %v3171_v16  ;;  %v3173_v54 = vunpack.i.h.bf16 %v3171_v16 }
 0x2bc   :  { %v1574_v10 = vsel %vm525_vm1, %v981_v49, %v3172_v47  ;;  %v1575_v9 = vsel %vm525_vm1, %v4208_v48, %v3173_v54  ;;  %v1060_v48 = vld [vmem:[#allocation3 + $0x121] sm:$0xff]  ;;  %v3213_v54 = vunpack.i.h.bf16 %v4400_v8 }
 0x2bd   :  { %3405 = vrot.lane.b32.xlu2 %v3404_v46, %s3475_s17  ;;  %v3429_v52 = vpack.i.bf16 %v1060_v48, %v1012_v61 }
 0x2be   :  { %3400 = vrot.lane.b32.xlu1 %v3399_v56, %s3472_s14 }
 0x2bf   :  { %3395 = vrot.lane.b32.xlu0 %v3394_v6, %s3476_s18  ;;  %v4426_v60 = vpop.permute.xlu2 %3240 }
 0x2c0   :  { %v3186_v50 = vpop.permute.xlu1 %3185 }
 0x2c1   :  { %v3176_v51 = vpop.permute.xlu0 %3175  ;;  %v3187_v62 = vunpack.i.l.bf16 %v3186_v50  ;;  %v3188_v31 = vunpack.i.h.bf16 %v3186_v50 }
 0x2c2   :  { %v3177_v2 = vunpack.i.l.bf16 %v3176_v51  ;;  %v3178_v59 = vunpack.i.h.bf16 %v3176_v51 }
 0x2c4   :  { %v1590_v63 = vsel %vm123_vm0, %v1574_v10, %v3177_v2  ;;  %v1591_v13 = vsel %vm123_vm0, %v1575_v9, %v3178_v59  ;;  %v3227_v59 = vunpack.i.l.bf16 %v4416_v44  ;;  %v1093_v9 = vld [vmem:[#allocation3 + $0x130] sm:$0xff] }
 0x2c5   :  { %v1607_v5 = vsel %vm1606_vm6, %v1590_v63, %v3182_v55  ;;  %3420 = vrot.lane.b32.xlu2 %v3419_v0, %s3477_s19  ;;  %v1608_v24 = vsel %vm1606_vm6, %v1591_v13, %v3183_v20 }
 0x2c6   :  { %3415 = vrot.lane.b32.xlu1 %v3414_v1, %s3474_s16  ;;  %v1624_v11 = vsel %vm1623_vm7, %v1607_v5, %v3187_v62  ;;  %v1625_v37 = vsel %vm1623_vm7, %v1608_v24, %v3188_v31 }
 0x2c7   :  { %3410 = vrot.lane.b32.xlu0 %v3414_v1, %s3478_s20  ;;  %v1641_v19 = vsel %vm1640_vm8, %v1624_v11, %v3192_v7  ;;  %v4448_v39 = vpop.permute.xlu2 %3255  ;;  %v1642_v16 = vsel %vm1640_vm8, %v1625_v37, %v3193_v26  ;;  %v1109_v7 = vld [vmem:[#allocation3 + $0x131] sm:$0xff] }
 0x2c8   :  { %v3206_v15 = vpop.permute.xlu1 %3205  ;;  %v1658_v45 = vsel %vm1657_vm9, %v1641_v19, %v3197_v22  ;;  %v3242_v19 = vunpack.i.l.bf16 %v4426_v60 }
 0x2c9   :  { %v3201_v23 = vpop.permute.xlu0 %3200  ;;  %v3207_v34 = vunpack.i.l.bf16 %v3206_v15  ;;  %v3208_v47 = vunpack.i.h.bf16 %v3206_v15  ;;  %v3228_v15 = vunpack.i.h.bf16 %v4416_v44 }
 0x2ca   :  { %v3202_v25 = vunpack.i.l.bf16 %v3201_v23  ;;  %v3203_v53 = vunpack.i.h.bf16 %v3201_v23 }
 0x2cb   :  { %v1576_v46 = vsel %vm525_vm1, %v4198_v43, %v3207_v34  ;;  %v1577_v43 = vsel %vm525_vm1, %v4231_v18, %v3208_v47 }
 0x2cc   :  { %v1675_v33 = vsel %vm1674_vm10, %v1658_v45, %v3202_v25  ;;  %v1592_v50 = vsel %vm123_vm0, %v1576_v46, %v3212_v14  ;;  %v1593_v0 = vsel %vm123_vm0, %v1577_v43, %v3213_v54  ;;  %v3243_v45 = vunpack.i.h.bf16 %v4426_v60 }
 0x2cd   :  { %1774 = vmatmul.f32.vlgmr.msrb.gmra.mxu1 %v1675_v33  ;;  %1426 = vrot.lane.b32.xlu2 %v4368_v28, %s3472_s14  ;;  %v1659_v28 = vsel %vm1657_vm9, %v1642_v16, %v3198_v30  ;;  %v1578_v33 = vsel %vm525_vm1, %v4246_v12, %v3242_v19  ;;  %v3257_v16 = vunpack.i.l.bf16 %v4448_v39 }
 0x2ce   :  { %3430 = vrot.lane.b32.xlu1 %v3429_v52, %s3476_s18  ;;  %v1676_v51 = vsel %vm1674_vm10, %v1659_v28, %v3203_v53  ;;  %v1579_v37 = vsel %vm525_vm1, %v4254_v21, %v3243_v45 }
 0x2cf   :  { %3425 = vrot.lane.b32.xlu0 %v3424_v3, %s3473_s15  ;;  %v4470_v2 = vpop.permute.xlu2 %3270 }
 0x2d0   :  { %v3221_v41 = vpop.permute.xlu1 %3220  ;;  %v3272_v14 = vunpack.i.l.bf16 %v4470_v2 }
 0x2d1   :  { %v3216_v56 = vpop.permute.xlu0 %3215  ;;  %v3222_v49 = vunpack.i.l.bf16 %v3221_v41 }
 0x2d2   :  { %v3217_v6 = vunpack.i.l.bf16 %v3216_v56  ;;  %v3218_v29 = vunpack.i.h.bf16 %v3216_v56 }
 0x2d4   :  { %v1609_v61 = vsel %vm1606_vm6, %v1592_v50, %v3217_v6  ;;  %v1610_v18 = vsel %vm1606_vm6, %v1593_v0, %v3218_v29 }
 0x2d5   :  { %1777 = vmatmul.f32.gmra.mxu1 %v1676_v51  ;;  %1428 = vrot.lane.b32.xlu2 %v4392_v36, %s3472_s14  ;;  %v1626_v10 = vsel %vm1623_vm7, %v1609_v61, %v3222_v49  ;;  %v3223_v36 = vunpack.i.h.bf16 %v3221_v41  ;;  %v3258_v49 = vunpack.i.h.bf16 %v4448_v39 }
 0x2d6   :  { %1554 = vrot.lane.b32.xlu1 %v1060_v48, %s3478_s20  ;;  %v1643_v5 = vsel %vm1640_vm8, %v1626_v10, %v3227_v59 }
 0x2d7   :  { %1490 = vrot.lane.b32.xlu0 %v1044_v35, %s3475_s17  ;;  %v1627_v20 = vsel %vm1623_vm7, %v1610_v18, %v3223_v36  ;;  %v4485_v25 = vpop.permute.xlu2 %3285 }
 0x2d8   :  { %v3236_v55 = vpop.permute.xlu1 %3235  ;;  %v1644_v24 = vsel %vm1640_vm8, %v1627_v20, %v3228_v15 }
 0x2d9   :  { %v3237_v62 = vunpack.i.l.bf16 %v3236_v55  ;;  %v3231_v63 = vpop.permute.xlu0 %3230  ;;  %v3238_v23 = vunpack.i.h.bf16 %v3236_v55 }
 0x2da   :  { %v3232_v1 = vunpack.i.l.bf16 %v3231_v63  ;;  %v3233_v13 = vunpack.i.h.bf16 %v3231_v63 }
 0x2dc   :  { %v1660_v8 = vsel %vm1657_vm9, %v1643_v5, %v3232_v1  ;;  %v1661_v31 = vsel %vm1657_vm9, %v1644_v24, %v3233_v13 }
 0x2dd   :  { %v1677_v11 = vsel %vm1674_vm10, %v1660_v8, %v3237_v62  ;;  %v1678_v3 = vsel %vm1674_vm10, %v1661_v31, %v3238_v23  ;;  %v3273_v62 = vunpack.i.h.bf16 %v4470_v2  ;;  %v3288_v31 = vunpack.i.h.bf16 %v4485_v25 }
 0x2de   :  { %1780 = vmatmul.f32.gmra.mxu1 %v1677_v11  ;;  %1556 = vrot.lane.b32.xlu1 %v1109_v7, %s3478_s20  ;;  %v3287_v7 = vunpack.i.l.bf16 %v4485_v25 }
 0x2df   :  { %1492 = vrot.lane.b32.xlu0 %v1093_v9, %s3475_s17  ;;  %v3301_v6 = vpop.permute.xlu2 %3300 }
 0x2e0   :  { %v3251_v22 = vpop.permute.xlu1 %3250  ;;  %v3302_v23 = vunpack.i.l.bf16 %v3301_v6 }
 0x2e1   :  { %v3246_v48 = vpop.permute.xlu0 %3245  ;;  %v3252_v44 = vunpack.i.l.bf16 %v3251_v22  ;;  %v3253_v26 = vunpack.i.h.bf16 %v3251_v22 }
 0x2e2   :  { %v3247_v35 = vunpack.i.l.bf16 %v3246_v48  ;;  %v3248_v52 = vunpack.i.h.bf16 %v3246_v48 }
 0x2e4   :  { %v1594_v34 = vsel %vm123_vm0, %v1578_v33, %v3247_v35  ;;  %v1595_v60 = vsel %vm123_vm0, %v1579_v37, %v3248_v52  ;;  %v989_v37 = vld [vmem:[#allocation3 + $0xa0] sm:$0xff] }
 0x2e5   :  { %v1611_v53 = vsel %vm1606_vm6, %v1594_v34, %v3252_v44  ;;  %v1612_v47 = vsel %vm1606_vm6, %v1595_v60, %v3253_v26 }
 0x2e6   :  { %1783 = vmatmul.f32.gmra.mxu1 %v1678_v3  ;;  %v1628_v56 = vsel %vm1623_vm7, %v1611_v53, %v3257_v16  ;;  %v1629_v43 = vsel %vm1623_vm7, %v1612_v47, %v3258_v49  ;;  %v3303_v16 = vunpack.i.h.bf16 %v3301_v6 }
 0x2e7   :  { %v3316_v36 = vpop.permute.xlu2 %3315 }
 0x2e8   :  { %v3266_v41 = vpop.permute.xlu1 %3265 }
 0x2e9   :  { %v3267_v30 = vunpack.i.l.bf16 %v3266_v41  ;;  %v3261_v12 = vpop.permute.xlu0 %3260  ;;  %v3268_v61 = vunpack.i.h.bf16 %v3266_v41 }
 0x2ea   :  { %v3262_v46 = vunpack.i.l.bf16 %v3261_v12  ;;  %v3263_v28 = vunpack.i.h.bf16 %v3261_v12 }
 0x2ec   :  { %v1645_v21 = vsel %vm1640_vm8, %v1628_v56, %v3262_v46  ;;  %v1646_v54 = vsel %vm1640_vm8, %v1629_v43, %v3263_v28 }
 0x2ed   :  { %v1662_v50 = vsel %vm1657_vm9, %v1645_v21, %v3267_v30  ;;  %v1663_v59 = vsel %vm1657_vm9, %v1646_v54, %v3268_v61  ;;  %v3317_v30 = vunpack.i.l.bf16 %v3316_v36 }
 0x2ee   :  { %v1679_v51 = vsel %vm1674_vm10, %v1662_v50, %v3272_v14  ;;  %v1680_v0 = vsel %vm1674_vm10, %v1663_v59, %v3273_v62 }
 0x2ef   :  { %1786 = vmatmul.f32.gmra.mxu1 %v1679_v51  ;;  %v3331_v15 = vpop.permute.xlu2 %3330  ;;  %v3318_v51 = vunpack.i.h.bf16 %v3316_v36 }
 0x2f0   :  { %v3281_v29 = vpop.permute.xlu1 %3280 }
 0x2f1   :  { %v3276_v55 = vpop.permute.xlu0 %3275  ;;  %v3282_v63 = vunpack.i.l.bf16 %v3281_v29  ;;  %v3283_v2 = vunpack.i.h.bf16 %v3281_v29  ;;  %v3332_v29 = vunpack.i.l.bf16 %v3331_v15 }
 0x2f2   :  { %v3277_v10 = vunpack.i.l.bf16 %v3276_v55  ;;  %v3278_v8 = vunpack.i.h.bf16 %v3276_v55 }
 0x2f4   :  { %v1580_v39 = vsel %vm525_vm1, %v4262_v27, %v3277_v10  ;;  %v1581_v27 = vsel %vm525_vm1, %v4270_v40, %v3278_v8 }
 0x2f5   :  { %v1596_v18 = vsel %vm123_vm0, %v1580_v39, %v3282_v63  ;;  %v1597_v48 = vsel %vm123_vm0, %v1581_v27, %v3283_v2 }
 0x2f6   :  { %v1613_v13 = vsel %vm1606_vm6, %v1596_v18, %v3287_v7  ;;  %v1614_v52 = vsel %vm1606_vm6, %v1597_v48, %v3288_v31 }
 0x2f7   :  { %1789 = vmatmul.f32.gmra.mxu1 %v1680_v0  ;;  %v3346_v12 = vpop.permute.xlu2 %3345 }
 0x2f8   :  { %v3296_v1 = vpop.permute.xlu1 %3295  ;;  %v3347_v7 = vunpack.i.l.bf16 %v3346_v12  ;;  %v3348_v27 = vunpack.i.h.bf16 %v3346_v12 }
 0x2f9   :  { %v3291_v5 = vpop.permute.xlu0 %3290  ;;  %v3297_v11 = vunpack.i.l.bf16 %v3296_v1  ;;  %v3298_v44 = vunpack.i.h.bf16 %v3296_v1 }
 0x2fa   :  { %v3292_v9 = vunpack.i.l.bf16 %v3291_v5  ;;  %v3293_v24 = vunpack.i.h.bf16 %v3291_v5  ;;  %v3333_v5 = vunpack.i.h.bf16 %v3331_v15 }
 0x2fc   :  { %v1630_v20 = vsel %vm1623_vm7, %v1613_v13, %v3292_v9  ;;  %v1631_v40 = vsel %vm1623_vm7, %v1614_v52, %v3293_v24 }
 0x2fd   :  { %v1647_v22 = vsel %vm1640_vm8, %v1630_v20, %v3297_v11  ;;  %v1648_v41 = vsel %vm1640_vm8, %v1631_v40, %v3298_v44 }
 0x2fe   :  { %v1664_v33 = vsel %vm1657_vm9, %v1647_v22, %v3302_v23  ;;  %v1665_v14 = vsel %vm1657_vm9, %v1648_v41, %v3303_v16 }
 0x2ff   :  { %v3361_v0 = vpop.permute.xlu2 %3360 }
 0x300   :  { %v3311_v19 = vpop.permute.xlu1 %3310  ;;  %v3362_v44 = vunpack.i.l.bf16 %v3361_v0  ;;  %v3363_v16 = vunpack.i.h.bf16 %v3361_v0 }
 0x301   :  { %v3306_v35 = vpop.permute.xlu0 %3305  ;;  %v3312_v3 = vunpack.i.l.bf16 %v3311_v19  ;;  %v3313_v56 = vunpack.i.h.bf16 %v3311_v19  ;;  %v1584_v19 = vsel %vm525_vm1, %v4314_v58, %v3347_v7 }
 0x302   :  { %v3307_v45 = vunpack.i.l.bf16 %v3306_v35  ;;  %v3308_v26 = vunpack.i.h.bf16 %v3306_v35  ;;  %v1585_v35 = vsel %vm525_vm1, %v4332_v4, %v3348_v27 }
 0x303   :  { %v1582_v25 = vsel %vm525_vm1, %v989_v37, %v3312_v3  ;;  %v1583_v6 = vsel %vm525_vm1, %v4312_v57, %v3313_v56 }
 0x304   :  { %v1681_v34 = vsel %vm1674_vm10, %v1664_v33, %v3307_v45  ;;  %v1598_v28 = vsel %vm123_vm0, %v1582_v25, %v3317_v30  ;;  %v1682_v21 = vsel %vm1674_vm10, %v1665_v14, %v3308_v26  ;;  %v1599_v59 = vsel %vm123_vm0, %v1583_v6, %v3318_v51  ;;  %v1125_v6 = vld [vmem:[#allocation3 + $0x132] sm:$0xff] }
 0x305   :  { %1792 = vmatmul.f32.gmra.mxu1 %v1681_v34  ;;  %3138 = vmatmul.msk.f32.gmra.mxu2 %vm525_vm1, %v1125_v6 }
 0x307   :  { %v3376_v15 = vpop.permute.xlu2 %3375 }
 0x308   :  { %v3326_v53 = vpop.permute.xlu1 %3325  ;;  %v3377_v37 = vunpack.i.l.bf16 %v3376_v15 }
 0x309   :  { %v3321_v60 = vpop.permute.xlu0 %3320  ;;  %v3327_v47 = vunpack.i.l.bf16 %v3326_v53  ;;  %v3328_v10 = vunpack.i.h.bf16 %v3326_v53 }
 0x30a   :  { %v3322_v46 = vunpack.i.l.bf16 %v3321_v60  ;;  %v3323_v50 = vunpack.i.h.bf16 %v3321_v60 }
 0x30c   :  { %v1615_v49 = vsel %vm1606_vm6, %v1598_v28, %v3322_v46  ;;  %v1616_v63 = vsel %vm1606_vm6, %v1599_v59, %v3323_v50 }
 0x30d   :  { %1795 = vmatmul.f32.gmra.mxu1 %v1682_v21  ;;  %v1632_v43 = vsel %vm1623_vm7, %v1615_v49, %v3327_v47  ;;  %v1633_v18 = vsel %vm1623_vm7, %v1616_v63, %v3328_v10  ;;  %v3378_v21 = vunpack.i.h.bf16 %v3376_v15 }
 0x30e   :  { %v1649_v39 = vsel %vm1640_vm8, %v1632_v43, %v3332_v29  ;;  %v1650_v13 = vsel %vm1640_vm8, %v1633_v18, %v3333_v5 }
 0x30f   :  { %v3391_v12 = vpop.permute.xlu2 %3390 }
 0x310   :  { %v3341_v61 = vpop.permute.xlu1 %3340 }
 0x311   :  { %v3342_v54 = vunpack.i.l.bf16 %v3341_v61  ;;  %v3336_v55 = vpop.permute.xlu0 %3335  ;;  %v3343_v9 = vunpack.i.h.bf16 %v3341_v61 }
 0x312   :  { %v3337_v62 = vunpack.i.l.bf16 %v3336_v55  ;;  %v3338_v36 = vunpack.i.h.bf16 %v3336_v55 }
 0x314   :  { %v1666_v1 = vsel %vm1657_vm9, %v1649_v39, %v3337_v62  ;;  %v1667_v20 = vsel %vm1657_vm9, %v1650_v13, %v3338_v36 }
 0x315   :  { %v1683_v57 = vsel %vm1674_vm10, %v1666_v1, %v3342_v54  ;;  %v1684_v24 = vsel %vm1674_vm10, %v1667_v20, %v3343_v9  ;;  %v3392_v54 = vunpack.i.l.bf16 %v3391_v12 }
 0x316   :  { %1798 = vmatmul.f32.gmra.mxu1 %v1683_v57 }
 0x317   :  { %v3406_v55 = vpop.permute.xlu2 %3405 }
 0x318   :  { %v3356_v8 = vpop.permute.xlu1 %3355  ;;  %v3407_v36 = vunpack.i.l.bf16 %v3406_v55 }
 0x319   :  { %v3351_v11 = vpop.permute.xlu0 %3350  ;;  %v3357_v22 = vunpack.i.l.bf16 %v3356_v8  ;;  %v3358_v31 = vunpack.i.h.bf16 %v3356_v8  ;;  %v3393_v8 = vunpack.i.h.bf16 %v3391_v12 }
 0x31a   :  { %v3352_v2 = vunpack.i.l.bf16 %v3351_v11  ;;  %v3353_v23 = vunpack.i.h.bf16 %v3351_v11 }
 0x31c   :  { %v1600_v48 = vsel %vm123_vm0, %v1584_v19, %v3352_v2  ;;  %v1601_v52 = vsel %vm123_vm0, %v1585_v35, %v3353_v23  ;;  %v3408_v35 = vunpack.i.h.bf16 %v3406_v55 }
 0x31d   :  { %v1617_v45 = vsel %vm1606_vm6, %v1600_v48, %v3357_v22  ;;  %v1618_v26 = vsel %vm1606_vm6, %v1601_v52, %v3358_v31  ;;  %v1840_v22 = vpop.f32.mrf.mxu2 }
 0x31e   :  { %1801 = vmatmul.f32.gmra.mxu1 %v1684_v24  ;;  %v1634_v3 = vsel %vm1623_vm7, %v1617_v45, %v3362_v44  ;;  %v1635_v30 = vsel %vm1623_vm7, %v1618_v26, %v3363_v16 }
 0x31f   :  { %v3421_v13 = vpop.permute.xlu2 %3420 }
 0x320   :  { %v3371_v33 = vpop.permute.xlu1 %3370  ;;  %v3422_v31 = vunpack.i.l.bf16 %v3421_v13  ;;  %v3423_v16 = vunpack.i.h.bf16 %v3421_v13 }
 0x321   :  { %v3372_v34 = vunpack.i.l.bf16 %v3371_v33  ;;  %v3366_v58 = vpop.permute.xlu0 %3365  ;;  %v3373_v60 = vunpack.i.h.bf16 %v3371_v33 }
 0x322   :  { %v3367_v40 = vunpack.i.l.bf16 %v3366_v58  ;;  %v3368_v53 = vunpack.i.h.bf16 %v3366_v58 }
 0x324   :  { %v1651_v41 = vsel %vm1640_vm8, %v1634_v3, %v3367_v40  ;;  %v1652_v56 = vsel %vm1640_vm8, %v1635_v30, %v3368_v53 }
 0x325   :  { %v1668_v4 = vsel %vm1657_vm9, %v1651_v41, %v3372_v34  ;;  %v1669_v28 = vsel %vm1657_vm9, %v1652_v56, %v3373_v60  ;;  %v1843_v41 = vpop.f32.mrf.mxu2 }
 0x326   :  { %v1685_v25 = vsel %vm1674_vm10, %v1668_v4, %v3377_v37  ;;  %v1686_v51 = vsel %vm1674_vm10, %v1669_v28, %v3378_v21 }
 0x327   :  { %1804 = vmatmul.f32.gmra.mxu1 %v1685_v25 }
 0x328   :  { %v3386_v46 = vpop.permute.xlu1 %3385 }
 0x329   :  { %v3381_v14 = vpop.permute.xlu0 %3380  ;;  %v3387_v49 = vunpack.i.l.bf16 %v3386_v46  ;;  %v3388_v39 = vunpack.i.h.bf16 %v3386_v46 }
 0x32a   :  { %v3382_v47 = vunpack.i.l.bf16 %v3381_v14  ;;  %v3383_v10 = vunpack.i.h.bf16 %v3381_v14 }
 0x32c   :  { %v1586_v50 = vsel %vm525_vm1, %v4354_v17, %v3382_v47  ;;  %v1587_v17 = vsel %vm525_vm1, %v4378_v32, %v3383_v10 }
 0x32d   :  { %v1602_v43 = vsel %vm123_vm0, %v1586_v50, %v3387_v49  ;;  %v1603_v18 = vsel %vm123_vm0, %v1587_v17, %v3388_v39 }
 0x32e   :  { %v1619_v63 = vsel %vm1606_vm6, %v1602_v43, %v3392_v54  ;;  %v1620_v20 = vsel %vm1606_vm6, %v1603_v18, %v3393_v8 }
 0x32f   :  { %1807 = vmatmul.f32.gmra.mxu1 %v1686_v51 }
 0x330   :  { %v3401_v61 = vpop.permute.xlu1 %3400 }
 0x331   :  { %v3396_v29 = vpop.permute.xlu0 %3395  ;;  %v3402_v62 = vunpack.i.l.bf16 %v3401_v61  ;;  %v3403_v2 = vunpack.i.h.bf16 %v3401_v61  ;;  %v1846_v61 = vpop.f32.mrf.mxu2 }
 0x332   :  { %v3397_v59 = vunpack.i.l.bf16 %v3396_v29  ;;  %v3398_v5 = vunpack.i.h.bf16 %v3396_v29 }
 0x334   :  { %v1636_v0 = vsel %vm1623_vm7, %v1619_v63, %v3397_v59  ;;  %v1637_v32 = vsel %vm1623_vm7, %v1620_v20, %v3398_v5 }
 0x335   :  { %v1653_v57 = vsel %vm1640_vm8, %v1636_v0, %v3402_v62  ;;  %v1654_v15 = vsel %vm1640_vm8, %v1637_v32, %v3403_v2 }
 0x336   :  { %v1670_v11 = vsel %vm1657_vm9, %v1653_v57, %v3407_v36  ;;  %v1671_v58 = vsel %vm1657_vm9, %v1654_v15, %v3408_v35 }
 0x338   :  { %v3416_v1 = vpop.permute.xlu1 %3415 }
 0x339   :  { %v3411_v7 = vpop.permute.xlu0 %3410  ;;  %v3417_v27 = vunpack.i.l.bf16 %v3416_v1  ;;  %v3418_v52 = vunpack.i.h.bf16 %v3416_v1  ;;  %v1849_v39 = vpop.f32.mrf.mxu2 }
 0x33a   :  { %v3412_v9 = vunpack.i.l.bf16 %v3411_v7  ;;  %v3413_v48 = vunpack.i.h.bf16 %v3411_v7 }
 0x33b   :  { %v1588_v23 = vsel %vm525_vm1, %v4402_v38, %v3417_v27  ;;  %v1427_v38 = vpop.permute.xlu2 %1426  ;;  %v1589_v26 = vsel %vm525_vm1, %v4414_v42, %v3418_v52  ;;  %v4591_v42 = vld [vmem:[%s5800_s10 + $0x3] ss:$0 sm:$0xff] }
 0x33c   :  { %v1687_v19 = vsel %vm1674_vm10, %v1670_v11, %v3412_v9  ;;  %v1604_v34 = vsel %vm123_vm0, %v1588_v23, %v3422_v31  ;;  %v1688_v3 = vsel %vm1674_vm10, %v1671_v58, %v3413_v48  ;;  %v1605_v12 = vsel %vm123_vm0, %v1589_v26, %v3423_v16 }
 0x33d   :  { %1810 = vmatmul.f32.gmra.mxu1 %v1687_v19 }
 0x340   :  { %v3431_v24 = vpop.permute.xlu1 %3430 }
 0x341   :  { %v3426_v45 = vpop.permute.xlu0 %3425  ;;  %v3432_v33 = vunpack.i.l.bf16 %v3431_v24  ;;  %v3433_v30 = vunpack.i.h.bf16 %v3431_v24  ;;  %v1852_v57 = vpop.f32.mrf.mxu2 }
 0x342   :  { %v3427_v44 = vunpack.i.l.bf16 %v3426_v45  ;;  %v3428_v53 = vunpack.i.h.bf16 %v3426_v45 }
 0x343   :  { %v1429_v21 = vpop.permute.xlu2 %1428 }
 0x344   :  { %v1621_v40 = vsel %vm1606_vm6, %v1604_v34, %v3427_v44  ;;  %v1622_v14 = vsel %vm1606_vm6, %v1605_v12, %v3428_v53 }
 0x345   :  { %1813 = vmatmul.f32.gmra.mxu1 %v1688_v3  ;;  %v1638_v37 = vsel %vm1623_vm7, %v1621_v40, %v3432_v33  ;;  %v1639_v28 = vsel %vm1623_vm7, %v1622_v14, %v3433_v30 }
 0x346   :  { %v1655_v60 = vsel %vm1640_vm8, %v1638_v37, %v1427_v38  ;;  %v1656_v51 = vsel %vm1640_vm8, %v1639_v28, %v1429_v21 }
 0x348   :  { %v1555_v4 = vpop.permute.xlu1 %1554 }
 0x349   :  { %v1491_v25 = vpop.permute.xlu0 %1490  ;;  %v1855_v8 = vpop.f32.mrf.mxu2 }
 0x34a   :  { %v1672_v46 = vsel %vm1657_vm9, %v1655_v60, %v1491_v25  ;;  %v1775_v56 = vpop.f32.mrf.mxu1 }
 0x34b   :  { %v1689_v47 = vsel %vm1674_vm10, %v1672_v46, %v1555_v4  ;;  %v1776_v6 = vadd.f32 %v4591_v42, %v1775_v56 }
 0x34d   :  { %1816 = vmatmul.f32.gmra.mxu1 %v1689_v47  ;;  %v1841_v10 = vadd.f32 %v1840_v22, %v1776_v6 }
 0x350   :  { %v1557_v49 = vpop.permute.xlu1 %1556 }
 0x351   :  { %v1493_v50 = vpop.permute.xlu0 %1492  ;;  %v1858_v19 = vpop.f32.mrf.mxu2 }
 0x352   :  { %v1673_v43 = vsel %vm1657_vm9, %v1656_v51, %v1493_v50  ;;  %v1778_v29 = vpop.f32.mrf.mxu1 }
 0x353   :  { %v1779_v54 = vadd.f32 %v4591_v42, %v1778_v29  ;;  %v1690_v55 = vsel %vm1674_vm10, %v1673_v43, %v1557_v49 }
 0x355   :  { %v1844_v59 = vadd.f32 %v1843_v41, %v1779_v54  ;;  %1819 = vmatmul.f32.gmra.mxu1 %v1690_v55 }
 0x357   :  { %v1888_v62 = vmax.f32 %v1841_v10, %v1844_v59 }
 0x359   :  { %1896 = vst.msk [vmem:[#allocation4] sm:$0xff] %vm123_vm0, %v1888_v62  ;;  %v1861_v22 = vpop.f32.mrf.mxu2 }
 0x35b   :  { %v1781_v63 = vpop.f32.mrf.mxu1 }
 0x35c   :  { %v1782_v0 = vadd.f32 %v4591_v42, %v1781_v63 }
 0x35e   :  { %v1847_v36 = vadd.f32 %v1846_v61, %v1782_v0 }
 0x361   :  { %v1864_v31 = vpop.f32.mrf.mxu2 }
 0x363   :  { %v1784_v17 = vpop.f32.mrf.mxu1 }
 0x364   :  { %v1785_v1 = vadd.f32 %v4591_v42, %v1784_v17 }
 0x366   :  { %v1850_v18 = vadd.f32 %v1849_v39, %v1785_v1 }
 0x368   :  { %v1889_v5 = vmax.f32 %v1847_v36, %v1850_v18 }
 0x369   :  { %v1867_v44 = vpop.f32.mrf.mxu2 }
 0x36a   :  { %1897 = vst.msk [vmem:[#allocation4 + $0x8] sm:$0xff] %vm123_vm0, %v1889_v5 }
 0x36c   :  { %v1787_v7 = vpop.f32.mrf.mxu1 }
 0x36d   :  { %v1788_v9 = vadd.f32 %v4591_v42, %v1787_v7 }
 0x36f   :  { %v1853_v2 = vadd.f32 %v1852_v57, %v1788_v9 }
 0x371   :  { %v1870_v37 = vpop.f32.mrf.mxu2  ;;  %v1904_v10 = vld [vmem:[#allocation4] ss:$2 sm:$0xff]  ;;  %v1912_v62 = vld [vmem:[#allocation4 + $0x1] ss:$2 sm:$0xff] }
 0x372   :  { %v1919_v57 = vmax.f32 %v1904_v10, %v1912_v62 }
 0x374   :  { %v1790_v11 = vpop.f32.mrf.mxu1  ;;  %v1923_v7 = vmax.f32 %v1919_v57, 0.0 }
 0x375   :  { %v1791_v13 = vadd.f32 %v4591_v42, %v1790_v11 }
 0x376   :  { %v1941_v11 = vmul.f32 %v1923_v7, %v1923_v7 }
 0x377   :  { %v1856_v20 = vadd.f32 %v1855_v8, %v1791_v13 }
 0x379   :  { %v1890_v27 = vmax.f32 %v1853_v2, %v1856_v20  ;;  %v1873_v41 = vpop.f32.mrf.mxu2 }
 0x37b   :  { %1898 = vst.msk [vmem:[#allocation4 + $0x10] sm:$0xff] %vm123_vm0, %v1890_v27  ;;  %v1927_v27 = vsel %vm123_vm0, %v1923_v7, 0.0 }
 0x381   :  { %v1876_v12 = vpop.f32.mrf.mxu2 }
 0x382   :  { %v1793_v32 = vpop.f32.mrf.mxu1 }
 0x383   :  { %v1794_v23 = vadd.f32 %v4591_v42, %v1793_v32 }
 0x385   :  { %v1859_v15 = vadd.f32 %v1858_v19, %v1794_v23 }
 0x389   :  { %v1879_v56 = vpop.f32.mrf.mxu2 }
 0x38a   :  { %v1796_v48 = vpop.f32.mrf.mxu1 }
 0x38b   :  { %v1797_v24 = vadd.f32 %v4591_v42, %v1796_v48  ;;  %v1945_v48 = vsel %vm123_vm0, %v1941_v11, 0.0 }
 0x38d   :  { %v1862_v35 = vadd.f32 %v1861_v22, %v1797_v24 }
 0x38f   :  { %v1891_v45 = vmax.f32 %v1859_v15, %v1862_v35 }
 0x391   :  { %1899 = vst.msk [vmem:[#allocation4 + $0x18] sm:$0xff] %vm123_vm0, %v1891_v45  ;;  %v1882_v50 = vpop.f32.mrf.mxu2 }
 0x393   :  { %v1799_v33 = vpop.f32.mrf.mxu1 }
 0x394   :  { %v1800_v52 = vadd.f32 %v4591_v42, %v1799_v33 }
 0x396   :  { %v1865_v40 = vadd.f32 %v1864_v31, %v1800_v52 }
 0x398   :  { %v1906_v43 = vld [vmem:[#allocation4 + $0x10] ss:$2 sm:$0xff]  ;;  %v1914_v29 = vld [vmem:[#allocation4 + $0x11] ss:$2 sm:$0xff] }
 0x399   :  { %v1885_v55 = vpop.f32.mrf.mxu2  ;;  %v1920_v0 = vmax.f32 %v1906_v43, %v1914_v29 }
 0x39b   :  { %v1802_v34 = vpop.f32.mrf.mxu1  ;;  %v4620_v5 = vmax.f32 %v1920_v0, 0.0  ;;  %v2101_v0 = vld [vmem:[%s5794_s4 + $0x78] sm:$0xff] }
 0x39c   :  { %v1803_v58 = vadd.f32 %v4591_v42, %v1802_v34  ;;  %2151 = vmatpush.msrb.mxu3 %v2101_v0 }
 0x39d   :  { %v1942_v9 = vmul.f32 %v4620_v5, %v4620_v5 }
 0x39e   :  { %v1868_v3 = vadd.f32 %v1867_v44, %v1803_v58 }
 0x39f   :  { %v1946_v19 = vsel %vm123_vm0, %v1942_v9, 0.0 }
 0x3a0   :  { %v1892_v38 = vmax.f32 %v1865_v40, %v1868_v3  ;;  %v1947_v35 = vadd.f32 %v1946_v19, %v1945_v48 }
 0x3a2   :  { %1900 = vst.msk [vmem:[#allocation4 + $0x20] sm:$0xff] %vm123_vm0, %v1892_v38 }
 0x3a4   :  { %v1805_v26 = vpop.f32.mrf.mxu1 }
 0x3a5   :  { %v1806_v53 = vadd.f32 %v4591_v42, %v1805_v26 }
 0x3a7   :  { %v1871_v25 = vadd.f32 %v1870_v37, %v1806_v53 }
 0x3ac   :  { %v1808_v16 = vpop.f32.mrf.mxu1 }
 0x3ad   :  { %v1809_v4 = vadd.f32 %v4591_v42, %v1808_v16 }
 0x3af   :  { %v1874_v60 = vadd.f32 %v1873_v41, %v1809_v4 }
 0x3b1   :  { %v1893_v30 = vmax.f32 %v1871_v25, %v1874_v60 }
 0x3b3   :  { %1901 = vst.msk [vmem:[#allocation4 + $0x28] sm:$0xff] %vm123_vm0, %v1893_v30 }
 0x3ba   :  { %v1811_v46 = vpop.f32.mrf.mxu1  ;;  %v1908_v63 = vld [vmem:[#allocation4 + $0x20] ss:$2 sm:$0xff]  ;;  %v1916_v39 = vld [vmem:[#allocation4 + $0x21] ss:$2 sm:$0xff] }
 0x3bb   :  { %v1812_v14 = vadd.f32 %v4591_v42, %v1811_v46  ;;  %v1921_v36 = vmax.f32 %v1908_v63, %v1916_v39 }
 0x3bd   :  { %v1877_v21 = vadd.f32 %v1876_v12, %v1812_v14  ;;  %v1925_v8 = vmax.f32 %v1921_v36, 0.0  ;;  %v2099_v36 = vld [vmem:[%s5794_s4 + $0x68] sm:$0xff] }
 0x3bf   :  { %v1943_v13 = vmul.f32 %v1925_v8, %v1925_v8  ;;  %v1930_v32 = vsel %vm123_vm0, %v1925_v8, 0.0 }
 0x3c1   :  { %v1948_v24 = vsel %vm123_vm0, %v1943_v13, 0.0 }
 0x3c2   :  { %v1814_v47 = vpop.f32.mrf.mxu1  ;;  %v1949_v52 = vadd.f32 %v1948_v24, %v1947_v35  ;;  %v2096_v24 = vld [vmem:[%s5794_s4 + $0x50] sm:$0xff] }
 0x3c3   :  { %v1815_v28 = vadd.f32 %v4591_v42, %v1814_v47 }
 0x3c5   :  { %v1880_v49 = vadd.f32 %v1879_v56, %v1815_v28 }
 0x3c7   :  { %v1894_v6 = vmax.f32 %v1877_v21, %v1880_v49 }
 0x3c9   :  { %1902 = vst.msk [vmem:[#allocation4 + $0x30] sm:$0xff] %vm123_vm0, %v1894_v6 }
 0x3ca   :  { %v1817_v51 = vpop.f32.mrf.mxu1 }
 0x3cb   :  { %v1818_v61 = vadd.f32 %v4591_v42, %v1817_v51  ;;  %v46_v51 = vld [vmem:[%s5800_s10 + $0x4] sm:$0x1] }
 0x3cd   :  { %v1883_v17 = vadd.f32 %v1882_v50, %v1818_v61 }
 0x3d2   :  { %v1820_v54 = vpop.f32.mrf.mxu1 }
 0x3d3   :  { %v1821_v59 = vadd.f32 %v4591_v42, %v1820_v54  ;;  %v1928_v42 = vsel %vm123_vm0, %v4620_v5, 0.0  ;;  %v47_v54 = vld [vmem:[%s5800_s10 + $0x5] sm:$0x1] }
 0x3d4   :  { %v1929_v23 = vadd.f32 %v1928_v42, %v1927_v27  ;;  %v2098_v42 = vld [vmem:[%s5794_s4 + $0x60] sm:$0xff] }
 0x3d5   :  { %v1886_v1 = vadd.f32 %v1885_v55, %v1821_v59 }
 0x3d6   :  { %v1931_v31 = vadd.f32 %v1930_v32, %v1929_v23 }
 0x3d7   :  { %v1895_v18 = vmax.f32 %v1883_v17, %v1886_v1  ;;  %v2100_v17 = vld [vmem:[%s5794_s4 + $0x70] sm:$0xff] }
 0x3d8   :  { %2152 = vmatpush.msrb.mxu3 %v2100_v17 }
 0x3d9   :  { %1903 = vst.msk [vmem:[#allocation4 + $0x38] sm:$0xff] %vm123_vm0, %v1895_v18 }
 0x3da   :  { %2153 = vmatpush.msrb.mxu3 %v2099_v36  ;;  %v2116_v36 = vld [vmem:[%s5794_s4 + $0xf0] sm:$0xff] }
 0x3dc   :  { %2154 = vmatpush.msrb.mxu3 %v2098_v42  ;;  %v2110_v42 = vld [vmem:[%s5794_s4 + $0xc0] sm:$0xff] }
 0x3e0   :  { %v1910_v2 = vld [vmem:[#allocation4 + $0x30] ss:$2 sm:$0xff]  ;;  %v1918_v20 = vld [vmem:[#allocation4 + $0x31] ss:$2 sm:$0xff] }
 0x3e1   :  { %v1922_v22 = vmax.f32 %v1910_v2, %v1918_v20  ;;  %v2232_v20 = vld [vmem:[%s5795_s5] sm:$0xff] }
 0x3e2   :  { %2253 = vmatpush.msra.mxu2 %v2232_v20  ;;  %v2107_v20 = vld [vmem:[%s5794_s4 + $0xa8] sm:$0xff] }
 0x3e3   :  { %v4632_v15 = vmax.f32 %v1922_v22, 0.0  ;;  %v2097_v22 = vld [vmem:[%s5794_s4 + $0x58] sm:$0xff] }
 0x3e4   :  { %2155 = vmatpush.msrb.mxu3 %v2097_v22  ;;  %v2103_v22 = vld [vmem:[%s5794_s4 + $0x88] sm:$0xff] }
 0x3e5   :  { %v1932_v45 = vsel %vm123_vm0, %v4632_v15, 0.0  ;;  %v1944_v33 = vmul.f32 %v4632_v15, %v4632_v15 }
 0x3e6   :  { %v1933_v44 = vadd.f32 %v1932_v45, %v1931_v31  ;;  %2156 = vmatpush.msrb.mxu3 %v2096_v24 }
 0x3e7   :  { %v1950_v34 = vsel %vm123_vm0, %v1944_v33, 0.0 }
 0x3e8   :  { %v1934_v58 = vrot.slane %v1933_v44, 4  ;;  %v1951_v40 = vadd.f32 %v1950_v34, %v1949_v52 }
 0x3ea   :  { %v1935_v3 = vadd.f32 %v1934_v58, %v1933_v44  ;;  %v1952_v38 = vrot.slane %v1951_v40, 4  ;;  %v2095_v44 = vld [vmem:[%s5794_s4 + $0x48] sm:$0xff] }
 0x3eb   :  { %2157 = vmatpush.msrb.mxu3 %v2095_v44 }
 0x3ec   :  { %v1936_v37 = vrot.slane %v1935_v3, 2  ;;  %v1953_v26 = vadd.f32 %v1952_v38, %v1951_v40  ;;  %v2094_v40 = vld [vmem:[%s5794_s4 + $0x40] sm:$0xff] }
 0x3ed   :  { %2158 = vmatpush.msrb.mxu3 %v2094_v40 }
 0x3ee   :  { %v1937_v53 = vadd.f32 %v1936_v37, %v1935_v3  ;;  %v1954_v41 = vrot.slane %v1953_v26, 2 }
 0x3f0   :  { %v1938_v16 = vrot.slane %v1937_v53, 1  ;;  %v1955_v4 = vadd.f32 %v1954_v41, %v1953_v26 }
 0x3f2   :  { %v1939_v25 = vadd.f32 %v1938_v16, %v1937_v53  ;;  %v1956_v60 = vrot.slane %v1955_v4, 1 }
 0x3f4   :  { %v1940_v30 = vmul.f32 0.03125, %v1939_v25  ;;  %v1957_v12 = vadd.f32 %v1956_v60, %v1955_v4  ;;  %v2093_v25 = vld [vmem:[%s5794_s4 + $0x38] sm:$0xff] }
 0x3f5   :  { %2159 = vmatpush.msrb.mxu3 %v2093_v25  ;;  %v2124_v25 = vld [vmem:[%s5794_s4 + $0x130] sm:$0xff] }
 0x3f6   :  { %v1958_v46 = vmul.f32 0.03125, %v1957_v12  ;;  %v1959_v56 = vmul.f32 %v1940_v30, %v1940_v30  ;;  %v2092_v12 = vld [vmem:[%s5794_s4 + $0x30] sm:$0xff] }
 0x3f7   :  { %2160 = vmatpush.msrb.mxu3 %v2092_v12  ;;  %v2123_v12 = vld [vmem:[%s5794_s4 + $0x128] sm:$0xff] }
 0x3f8   :  { %v1960_v14 = vsub.f32 %v1958_v46, %v1959_v56 }
 0x3fa   :  { %v1961_v47 = vadd.f32 1e-05, %v1960_v14 }
 0x3fc   :  { %3441 = vrsqrt.f32 %v1961_v47  ;;  %vm1968_vm12 = vweird.f32 %v1961_v47 }
 0x402   :  { %v3442_v28 = vpop.eup %3441 }
 0x403   :  { %v1963_v21 = vmul.f32 %v3442_v28, %v1961_v47  ;;  %vm1969_vm11 = vweird.f32 %v3442_v28 }
 0x404   :  { %vm1970_vm13 = vmor %vm1968_vm12, %vm1969_vm11 }
 0x405   :  { %v1964_v49 = vmul.f32 %v3442_v28, %v1963_v21  ;;  %v2091_v21 = vld [vmem:[%s5794_s4 + $0x28] sm:$0xff] }
 0x406   :  { %2161 = vmatpush.msrb.mxu3 %v2091_v21  ;;  %v2119_v21 = vld [vmem:[%s5794_s4 + $0x108] sm:$0xff] }
 0x407   :  { %v1965_v6 = vmul.f32 0.5, %v1964_v49  ;;  %v2090_v49 = vld [vmem:[%s5794_s4 + $0x20] sm:$0xff] }
 0x408   :  { %2162 = vmatpush.msrb.mxu3 %v2090_v49 }
 0x409   :  { %v1966_v50 = vsub.f32 1.5, %v1965_v6 }
 0x40b   :  { %v1967_v61 = vmul.f32 %v3442_v28, %v1966_v50 }
 0x40d   :  { %v1971_v43 = vsel %vm1970_vm13, %v3442_v28, %v1967_v61  ;;  %v2089_v61 = vld [vmem:[%s5794_s4 + $0x18] sm:$0xff] }
 0x40e   :  { %v1972_v29 = vmul.f32 %v1971_v43, %v46_v51  ;;  %v2088_v43 = vld [vmem:[%s5794_s4 + $0x10] sm:$0xff]  ;;  %2163 = vmatpush.msrb.mxu3 %v2089_v61  ;;  %v2149_v61 = vld [vmem:[%s5794_s4 + $0x1f8] sm:$0xff] }
 0x410   :  { %v1973_v55 = vmul.f32 %v1972_v29, %v1940_v30  ;;  %v1975_v10 = vperm.slane %v1972_v29, 0  ;;  %2164 = vmatpush.msrb.mxu3 %v2088_v43 }
 0x412   :  { %v1974_v59 = vsub.f32 %v47_v54, %v1973_v55  ;;  %v1976_v62 = vmul.f32 %v1975_v10, %v1923_v7  ;;  %v1978_v63 = vmul.f32 %v1975_v10, %v1925_v8  ;;  %v1977_v19 = vmul.f32 %v1975_v10, %v4620_v5 }
 0x413   :  { %v1979_v32 = vmul.f32 %v1975_v10, %v4632_v15 }
 0x414   :  { %v1980_v39 = vperm.slane %v1974_v59, 0 }
 0x416   :  { %v1981_v1 = vadd.f32 %v1980_v39, %v1976_v62  ;;  %v1983_v57 = vadd.f32 %v1980_v39, %v1978_v63  ;;  %v4671_v23 = vadd.f32 %v1980_v39, %v1977_v19  ;;  %v4673_v48 = vadd.f32 %v1980_v39, %v1979_v32  ;;  %v2087_v63 = vld [vmem:[%s5794_s4 + $0x8] sm:$0xff]  ;;  %v2086_v39 = vld [vmem:[%s5794_s4] sm:$0xff]  ;;  %v2105_v19 = vld [vmem:[%s5794_s4 + $0x98] sm:$0xff] }
 0x417   :  { %2165 = vmatpush.msrb.mxu3 %v2087_v63  ;;  %v2104_v32 = vld [vmem:[%s5794_s4 + $0x90] sm:$0xff]  ;;  %v2143_v63 = vld [vmem:[%s5794_s4 + $0x1c8] sm:$0xff] }
 0x418   :  { %v2002_v18 = vrot.slane %v1981_v1, 3  ;;  %v2003_v7 = vrot.slane %v1983_v57, 2  ;;  %v1996_v8 = vrot.slane %v1981_v1, 2  ;;  %v1997_v9 = vrot.slane %v1983_v57, 1 }
 0x419   :  { %v1991_v11 = vrot.slane %v1981_v1, 1  ;;  %v2024_v35 = vrot.slane %v1981_v1, 7  ;;  %v2025_v5 = vrot.slane %v1983_v57, 6  ;;  %v2018_v31 = vrot.slane %v1981_v1, 6  ;;  %2166 = vmatpush.msrb.mxu3 %v2086_v39  ;;  %v2142_v39 = vld [vmem:[%s5794_s4 + $0x1c0] sm:$0xff] }
 0x41a   :  { %v2004_v13 = vsel %vm1988_vm14, %v2003_v7, %v2002_v18  ;;  %v1998_v2 = vsel %vm1988_vm14, %v1997_v9, %v1996_v8  ;;  %v2019_v15 = vrot.slane %v1983_v57, 5  ;;  %v2012_v45 = vrot.slane %v1981_v1, 5  ;;  %v2115_v18 = vld [vmem:[%s5794_s4 + $0xe8] sm:$0xff]  ;;  %v2114_v7 = vld [vmem:[%s5794_s4 + $0xe0] sm:$0xff]  ;;  %v2113_v8 = vld [vmem:[%s5794_s4 + $0xd8] sm:$0xff] }
 0x41b   :  { %2005 = vrot.lane.b32.xlu1 %v2004_v13, %s3475_s17  ;;  %1999 = vrot.lane.b32.xlu0 %v1998_v2, %s3476_s18  ;;  %v1992_v27 = vsel %vm1988_vm14, %v1983_v57, %v1991_v11  ;;  %v2013_v33 = vrot.slane %v1983_v57, 4  ;;  %v1987_v52 = vrot.slane %v1983_v57, 7  ;;  %v2008_v34 = vrot.slane %v1981_v1, 4  ;;  %v2112_v9 = vld [vmem:[%s5794_s4 + $0xd0] sm:$0xff]  ;;  %v2111_v11 = vld [vmem:[%s5794_s4 + $0xc8] sm:$0xff] }
 0x41c   :  { %1993 = vrot.lane.b32.xlu2 %v1992_v27, %s3477_s19  ;;  %v2009_v58 = vrot.slane %v1983_v57, 3  ;;  %v2032_v3 = vrot.slane %v4673_v48, 7  ;;  %v2052_v38 = vrot.slane %v4671_v23, 4  ;;  %v2053_v37 = vrot.slane %v4673_v48, 3  ;;  %v2109_v13 = vld [vmem:[%s5794_s4 + $0xb8] sm:$0xff]  ;;  %v2108_v2 = vld [vmem:[%s5794_s4 + $0xb0] sm:$0xff] }
 0x41d   :  { %v2026_v26 = vsel %vm1988_vm14, %v2025_v5, %v2024_v35  ;;  %v2020_v53 = vsel %vm1988_vm14, %v2019_v15, %v2018_v31  ;;  %v4690_v41 = vsel %vm1988_vm14, %v1987_v52, %v1981_v1  ;;  %v2014_v4 = vsel %vm1988_vm14, %v2013_v33, %v2012_v45  ;;  %v2117_v1 = vld [vmem:[%s5794_s4 + $0xf8] sm:$0xff]  ;;  %v2106_v27 = vld [vmem:[%s5794_s4 + $0xa0] sm:$0xff]  ;;  %v2132_v33 = vld [vmem:[%s5794_s4 + $0x170] sm:$0xff] }
 0x41e   :  { %v4693_v16 = vsel %vm1988_vm14, %v2009_v58, %v2008_v34  ;;  %v4703_v60 = vsel %vm1988_vm14, %v2032_v3, %v4671_v23  ;;  %v4706_v30 = vsel %vm1988_vm14, %v2053_v37, %v2052_v38  ;;  %v2046_v46 = vrot.slane %v4671_v23, 3  ;;  %2171 = vmatpush.msra.mxu3 %v2117_v1  ;;  %v2133_v15 = vld [vmem:[%s5794_s4 + $0x178] sm:$0xff]  ;;  %v2131_v52 = vld [vmem:[%s5794_s4 + $0x168] sm:$0xff]  ;;  %v2130_v34 = vld [vmem:[%s5794_s4 + $0x160] sm:$0xff] }
 0x41f   :  { %v2047_v56 = vrot.slane %v4673_v48, 2  ;;  %v2040_v14 = vrot.slane %v4671_v23, 2  ;;  %v2041_v47 = vrot.slane %v4673_v48, 1  ;;  %v2035_v28 = vrot.slane %v4671_v23, 1  ;;  %v2129_v37 = vld [vmem:[%s5794_s4 + $0x158] sm:$0xff]  ;;  %v2139_v1 = vld [vmem:[%s5794_s4 + $0x1a8] sm:$0xff] }
 0x420   :  { %v2068_v29 = vrot.slane %v4671_v23, 7  ;;  %v2069_v54 = vrot.slane %v4673_v48, 6  ;;  %v2062_v55 = vrot.slane %v4671_v23, 6  ;;  %v2063_v10 = vrot.slane %v4673_v48, 5  ;;  %2172 = vmatpush.msra.mxu3 %v2116_v36  ;;  %v2137_v36 = vld [vmem:[%s5794_s4 + $0x198] sm:$0xff] }
 0x421   :  { %v2048_v6 = vsel %vm1988_vm14, %v2047_v56, %v2046_v46  ;;  %v2042_v50 = vsel %vm1988_vm14, %v2041_v47, %v2040_v14  ;;  %v2036_v51 = vsel %vm1988_vm14, %v4673_v48, %v2035_v28  ;;  %v2056_v59 = vrot.slane %v4671_v23, 5  ;;  %v2102_v23 = vld [vmem:[%s5794_s4 + $0x80] sm:$0xff]  ;;  %v2121_v56 = vld [vmem:[%s5794_s4 + $0x118] sm:$0xff]  ;;  %v2120_v47 = vld [vmem:[%s5794_s4 + $0x110] sm:$0xff] }
 0x422   :  { %v2057_v62 = vrot.slane %v4673_v48, 4  ;;  %v2070_v0 = vsel %vm1988_vm14, %v2069_v54, %v2068_v29  ;;  %v2064_v17 = vsel %vm1988_vm14, %v2063_v10, %v2062_v55  ;;  %2173 = vmatpush.msra.mxu3 %v2115_v18  ;;  %v2122_v46 = vld [vmem:[%s5794_s4 + $0x120] sm:$0xff]  ;;  %v2273_v54 = vld [vmem:[%s5796_s6 + $0x70] sm:$0xff]  ;;  %v2147_v55 = vld [vmem:[%s5794_s4 + $0x1e8] sm:$0xff] }
 0x423   :  { %2027 = vrot.lane.b32.xlu1 %v2026_v26, %s3475_s17  ;;  %2021 = vrot.lane.b32.xlu0 %v2020_v53, %s3476_s18  ;;  %v2128_v53 = vld [vmem:[%s5794_s4 + $0x150] sm:$0xff]  ;;  %v2231_v29 = vld [vmem:[%s5790_s0] sm:$0x3] }
 0x424   :  { %2015 = vrot.lane.b32.xlu2 %v2014_v4, %s3477_s19  ;;  %v2058_v57 = vsel %vm1988_vm14, %v2057_v62, %v2056_v59  ;;  %2174 = vmatpush.msra.mxu3 %v2114_v7  ;;  %v2125_v4 = vld [vmem:[%s5794_s4 + $0x138] sm:$0xff]  ;;  %v2146_v10 = vld [vmem:[%s5794_s4 + $0x1e0] sm:$0xff]  ;;  %v2144_v62 = vld [vmem:[%s5794_s4 + $0x1d0] sm:$0xff] }
 0x425   :  { %3139 = vmatmul.msk.f32.vlgmr.msra.gmra.mxu2 %vm2234_vm15, %v2231_v29  ;;  %2429 = vmatpush.msra.mxu1 %v2273_v54  ;;  %v2145_v59 = vld [vmem:[%s5794_s4 + $0x1d8] sm:$0xff]  ;;  %v2136_v7 = vld [vmem:[%s5794_s4 + $0x190] sm:$0xff]  ;;  %v2264_v29 = vld [vmem:[%s5796_s6 + $0x28] sm:$0xff] }
 0x426   :  { %2175 = vmatpush.msra.mxu3 %v2113_v8  ;;  %v2560_v54 = vld [vmem:[%s5798_s8 + $0x270] sm:$0xff] }
 0x428   :  { %2176 = vmatpush.msra.mxu3 %v2112_v9  ;;  %v2135_v9 = vld [vmem:[%s5794_s4 + $0x188] sm:$0xff] }
 0x42a   :  { %2177 = vmatpush.msra.mxu3 %v2111_v11 }
 0x42b   :  { %2049 = vrot.lane.b32.xlu1 %v2048_v6, %s3475_s17  ;;  %2043 = vrot.lane.b32.xlu0 %v2042_v50, %s3476_s18 }
 0x42c   :  { %2037 = vrot.lane.b32.xlu2 %v2036_v51, %s3477_s19  ;;  %2178 = vmatpush.msra.mxu3 %v2110_v42  ;;  %v2118_v51 = vld [vmem:[%s5794_s4 + $0x100] sm:$0xff] }
 0x42e   :  { %2179 = vmatpush.msra.mxu3 %v2109_v13 }
 0x430   :  { %2180 = vmatpush.msra.mxu3 %v2108_v2  ;;  %v2134_v2 = vld [vmem:[%s5794_s4 + $0x180] sm:$0xff] }
 0x432   :  { %2181 = vmatpush.msra.mxu3 %v2107_v20 }
 0x433   :  { %2071 = vrot.lane.b32.xlu1 %v2070_v0, %s3475_s17  ;;  %2065 = vrot.lane.b32.xlu0 %v2064_v17, %s3476_s18  ;;  %v2141_v0 = vld [vmem:[%s5794_s4 + $0x1b8] sm:$0xff]  ;;  %v2140_v17 = vld [vmem:[%s5794_s4 + $0x1b0] sm:$0xff] }
 0x434   :  { %2059 = vrot.lane.b32.xlu2 %v2058_v57, %s3477_s19  ;;  %2182 = vmatpush.msra.mxu3 %v2106_v27  ;;  %v2138_v57 = vld [vmem:[%s5794_s4 + $0x1a0] sm:$0xff]  ;;  %v2269_v27 = vld [vmem:[%s5796_s6 + $0x50] sm:$0xff] }
 0x435   :  { %2430 = vmatpush.msra.mxu1 %v2269_v27  ;;  %v2509_v27 = vld [vmem:[%s5798_s8 + $0xd8] sm:$0xff] }
 0x436   :  { %2183 = vmatpush.msra.mxu3 %v2105_v19  ;;  %v2287_v19 = vld [vmem:[%s5797_s7 + $0x60] sm:$0xff] }
 0x438   :  { %2184 = vmatpush.msra.mxu3 %v2104_v32  ;;  %v2288_v32 = vld [vmem:[%s5797_s7 + $0x68] sm:$0xff] }
 0x439   :  { %2326 = vmatpush.msrb.mxu2 %v2288_v32  ;;  %v2506_v32 = vld [vmem:[%s5798_s8 + $0xc0] sm:$0xff] }
 0x43a   :  { %2185 = vmatpush.msra.mxu3 %v2103_v22  ;;  %v2283_v22 = vld [vmem:[%s5797_s7 + $0x40] sm:$0xff] }
 0x43c   :  { %2186 = vmatpush.msra.mxu3 %v2102_v23  ;;  %v2284_v23 = vld [vmem:[%s5797_s7 + $0x48] sm:$0xff] }
 0x43d   :  { %2327 = vmatpush.msrb.mxu2 %v2284_v23  ;;  %v2611_v23 = vld [vmem:[%s5798_s8 + $0x408] sm:$0xff] }
 0x476   :  { %v1994_v48 = vpop.permute.xlu2 %1993 }
 0x477   :  { %v2074_v24 = vsel %vm123_vm0, %v4690_v41, %v1994_v48  ;;  %v2127_v41 = vld [vmem:[%s5794_s4 + $0x148] sm:$0xff]  ;;  %v2279_v48 = vld [vmem:[%s5797_s7 + $0x20] sm:$0xff] }
 0x47e   :  { %v2016_v44 = vpop.permute.xlu2 %2015 }
 0x47f   :  { %v2077_v58 = vsel %vm123_vm0, %v4693_v16, %v2016_v44  ;;  %v2126_v16 = vld [vmem:[%s5794_s4 + $0x140] sm:$0xff] }
 0x486   :  { %v2038_v14 = vpop.permute.xlu2 %2037 }
 0x487   :  { %v2080_v49 = vsel %vm123_vm0, %v4703_v60, %v2038_v14  ;;  %v2148_v60 = vld [vmem:[%s5794_s4 + $0x1f0] sm:$0xff]  ;;  %v2569_v14 = vld [vmem:[%s5798_s8 + $0x2b8] sm:$0xff] }
 0x48d   :  { %v2006_v35 = vpop.permute.xlu1 %2005  ;;  %v2000_v5 = vpop.permute.xlu0 %1999 }
 0x48e   :  { %v2075_v31 = vsel %vm1623_vm7, %v2074_v24, %v2000_v5  ;;  %v2060_v18 = vpop.permute.xlu2 %2059  ;;  %v2280_v24 = vld [vmem:[%s5797_s7 + $0x28] sm:$0xff] }
 0x48f   :  { %v2076_v45 = vsel %vm1657_vm9, %v2075_v31, %v2006_v35  ;;  %v2083_v11 = vsel %vm123_vm0, %v4706_v30, %v2060_v18  ;;  %v2265_v30 = vld [vmem:[%s5796_s6 + $0x30] sm:$0xff]  ;;  %v2275_v35 = vld [vmem:[%s5797_s7] sm:$0xff]  ;;  %2328 = vmatpush.msrb.mxu2 %v2280_v24  ;;  %v2276_v5 = vld [vmem:[%s5797_s7 + $0x8] sm:$0xff] }
 0x490   :  { %2167 = vmatmul.f32.vlgmr.msrb.gmra.mxu3 %v2076_v45  ;;  %2431 = vmatpush.msra.mxu1 %v2265_v30  ;;  %v2289_v31 = vld [vmem:[%s5797_s7 + $0x70] sm:$0xff]  ;;  %v2262_v18 = vld [vmem:[%s5796_s6 + $0x18] sm:$0xff]  ;;  %v2542_v30 = vld [vmem:[%s5798_s8 + $0x1e0] sm:$0xff] }
 0x491   :  { %2191 = vmatpush.msrb.mxu3 %v2133_v15  ;;  %v2290_v15 = vld [vmem:[%s5797_s7 + $0x78] sm:$0xff]  ;;  %2329 = vmatpush.msrb.mxu2 %v2276_v5  ;;  %v2285_v45 = vld [vmem:[%s5797_s7 + $0x50] sm:$0xff] }
 0x492   :  { %v2536_v24 = vld [vmem:[%s5798_s8 + $0x1b0] sm:$0xff] }
 0x493   :  { %2192 = vmatpush.msrb.mxu3 %v2132_v33  ;;  %v2286_v33 = vld [vmem:[%s5797_s7 + $0x58] sm:$0xff]  ;;  %2366 = vmatpush.msra.mxu2 %v2290_v15  ;;  %v2500_v5 = vld [vmem:[%s5798_s8 + $0x90] sm:$0xff] }
 0x494   :  { %v2605_v15 = vld [vmem:[%s5798_s8 + $0x3d8] sm:$0xff] }
 0x495   :  { %2193 = vmatpush.msrb.mxu3 %v2131_v52  ;;  %v2028_v40 = vpop.permute.xlu1 %2027  ;;  %v2022_v3 = vpop.permute.xlu0 %2021  ;;  %v2281_v52 = vld [vmem:[%s5797_s7 + $0x30] sm:$0xff]  ;;  %2367 = vmatpush.msra.mxu2 %v2286_v33  ;;  %v2530_v33 = vld [vmem:[%s5798_s8 + $0x180] sm:$0xff] }
 0x496   :  { %v2078_v38 = vsel %vm1623_vm7, %v2077_v58, %v2022_v3  ;;  %v2277_v58 = vld [vmem:[%s5797_s7 + $0x10] sm:$0xff]  ;;  %v3437_v3 = vld [vmem:[%s5800_s10 + $0x7] ss:$0 sm:$0xff] }
 0x497   :  { %2194 = vmatpush.msrb.mxu3 %v2130_v34  ;;  %v2079_v26 = vsel %vm1657_vm9, %v2078_v38, %v2028_v40  ;;  %v2282_v34 = vld [vmem:[%s5797_s7 + $0x38] sm:$0xff] }
 0x498   :  { %2187 = vmatmul.f32.vlgmr.msra.gmra.mxu3 %v2079_v26  ;;  %v2278_v40 = vld [vmem:[%s5797_s7 + $0x18] sm:$0xff]  ;;  %2368 = vmatpush.msra.mxu2 %v2282_v34  ;;  %v2261_v26 = vld [vmem:[%s5796_s6 + $0x10] sm:$0xff]  ;;  %s3049_s7 = sshll.u32 %s5802_s12, 4  ;;  %s3050_s7 = int_to_ptr.hbm [resolvable:$true] %s3049_s7 }
 0x499   :  { %2195 = vmatpush.msrb.mxu3 %v2129_v37  ;;  %2432 = vmatpush.msra.mxu1 %v2261_v26  ;;  %v2528_v34 = vld [vmem:[%s5798_s8 + $0x170] sm:$0xff]  ;;  %v2522_v26 = vld [vmem:[%s5798_s8 + $0x140] sm:$0xff] }
 0x49a   :  { %2369 = vmatpush.msra.mxu2 %v2278_v40  ;;  %v2491_v40 = vld [vmem:[%s5798_s8 + $0x48] sm:$0xff] }
 0x49b   :  { %2196 = vmatpush.msrb.mxu3 %v2128_v53 }
 0x49d   :  { %2197 = vmatpush.msrb.mxu3 %v2127_v41  ;;  %v2044_v28 = vpop.permute.xlu0 %2043  ;;  %v2050_v6 = vpop.permute.xlu1 %2049 }
 0x49e   :  { %v2081_v50 = vsel %vm1623_vm7, %v2080_v49, %v2044_v28  ;;  %v2271_v49 = vld [vmem:[%s5796_s6 + $0x60] sm:$0xff] }
 0x49f   :  { %2198 = vmatpush.msrb.mxu3 %v2126_v16  ;;  %v2082_v43 = vsel %vm1657_vm9, %v2081_v50, %v2050_v6  ;;  %v3436_v16 = vld [vmem:[%s5800_s10 + $0x6] ss:$0 sm:$0xff]  ;;  %v2272_v6 = vld [vmem:[%s5796_s6 + $0x68] sm:$0xff] }
 0x4a0   :  { %v2566_v50 = vld [vmem:[%s5798_s8 + $0x2a0] sm:$0xff] }
 0x4a1   :  { %2199 = vmatpush.msrb.mxu3 %v2125_v4 }
 0x4a3   :  { %2200 = vmatpush.msrb.mxu3 %v2124_v25 }
 0x4a5   :  { %2201 = vmatpush.msrb.mxu3 %v2123_v12  ;;  %v2066_v8 = vpop.permute.xlu0 %2065  ;;  %v2072_v42 = vpop.permute.xlu1 %2071  ;;  %v2575_v12 = vld [vmem:[%s5798_s8 + $0x2e8] sm:$0xff] }
 0x4a6   :  { %v2084_v13 = vsel %vm1623_vm7, %v2083_v11, %v2066_v8  ;;  %2701 = vmatpush.msrb.mxu1 %v2575_v12  ;;  %v2623_v8 = vld [vmem:[%s5798_s8 + $0x468] sm:$0xff]  ;;  %v2548_v11 = vld [vmem:[%s5798_s8 + $0x210] sm:$0xff]  ;;  %vm3040_vm7 = vcmask 25600  }
 0x4a7   :  { %2202 = vmatpush.msrb.mxu3 %v2122_v46  ;;  %v2085_v20 = vsel %vm1657_vm9, %v2084_v13, %v2072_v42  ;;  %v2620_v42 = vld [vmem:[%s5798_s8 + $0x450] sm:$0xff]  ;;  %v2671_v12 = vld [vmem:[%s5798_s8 + $0x5e8] sm:$0xff] }
 0x4a8   :  { %v2255_v38 = vpop.f32.mrf.mxu2  ;;  %v2512_v13 = vld [vmem:[%s5798_s8 + $0xf0] sm:$0xff] }
 0x4a9   :  { %2203 = vmatpush.msrb.mxu3 %v2121_v56  ;;  %v2256_v37 = vadd.f32 %v3437_v3, %v2255_v38  ;;  %v2572_v56 = vld [vmem:[%s5798_s8 + $0x2d0] sm:$0xff]  ;;  %v2525_v3 = vld [vmem:[%s5798_s8 + $0x158] sm:$0xff] }
 0x4aa   :  { %2702 = vmatpush.msrb.mxu1 %v2572_v56  ;;  %v2596_v38 = vld [vmem:[%s5798_s8 + $0x390] sm:$0xff] }
 0x4ab   :  { %2204 = vmatpush.msrb.mxu3 %v2120_v47  ;;  %v4980_v53 = vmax.f32 %v2256_v37, 0.0  ;;  %v2488_v37 = vld [vmem:[%s5798_s8 + $0x30] sm:$0xff] }
 0x4ac   :  { %2703 = vmatpush.msrb.mxu1 %v2569_v14  ;;  %v2668_v56 = vld [vmem:[%s5798_s8 + $0x5d0] sm:$0xff] }
 0x4ad   :  { %2205 = vmatpush.msrb.mxu3 %v2119_v21  ;;  %3146 = vmatmul.msk.f32.vlgmr.msra.gmra.mxu1 %vm123_vm0, %v4980_v53  ;;  %v2584_v14 = vld [vmem:[%s5798_s8 + $0x330] sm:$0xff] }
 0x4ae   :  { %2704 = vmatpush.msrb.mxu1 %v2566_v50  ;;  %v2573_v50 = vld [vmem:[%s5798_s8 + $0x2d8] sm:$0xff] }
 0x4af   :  { %2206 = vmatpush.msrb.mxu3 %v2118_v51  ;;  %v2267_v51 = vld [vmem:[%s5796_s6 + $0x40] sm:$0xff] }
 0x4b0   :  { %2207 = vmatmul.f32.vlgmr.msrb.gmra.mxu3 %v2082_v43  ;;  %v2563_v43 = vld [vmem:[%s5798_s8 + $0x288] sm:$0xff] }
 0x4b1   :  { %2211 = vmatpush.msra.mxu3 %v2149_v61  ;;  %v2268_v61 = vld [vmem:[%s5796_s6 + $0x48] sm:$0xff]  ;;  %2705 = vmatpush.msrb.mxu1 %v2563_v43  ;;  %v2564_v43 = vld [vmem:[%s5798_s8 + $0x290] sm:$0xff] }
 0x4b3   :  { %2212 = vmatpush.msra.mxu3 %v2148_v60  ;;  %v2263_v60 = vld [vmem:[%s5796_s6 + $0x20] sm:$0xff]  ;;  %2706 = vmatpush.msrb.mxu1 %v2560_v54  ;;  %v2555_v54 = vld [vmem:[%s5798_s8 + $0x248] sm:$0xff] }
 0x4b5   :  { %2213 = vmatpush.msra.mxu3 %v2147_v55  ;;  %v2259_v55 = vld [vmem:[%s5796_s6] sm:$0xff] }
 0x4b7   :  { %2214 = vmatpush.msra.mxu3 %v2146_v10  ;;  %v2260_v10 = vld [vmem:[%s5796_s6 + $0x8] sm:$0xff] }
 0x4b9   :  { %2215 = vmatpush.msra.mxu3 %v2145_v59  ;;  %v2274_v59 = vld [vmem:[%s5796_s6 + $0x78] sm:$0xff] }
 0x4bb   :  { %2216 = vmatpush.msra.mxu3 %v2144_v62  ;;  %v2527_v62 = vld [vmem:[%s5798_s8 + $0x168] sm:$0xff] }
 0x4bd   :  { %2217 = vmatpush.msra.mxu3 %v2143_v63  ;;  %v2557_v63 = vld [vmem:[%s5798_s8 + $0x258] sm:$0xff] }
 0x4be   :  { %2707 = vmatpush.msrb.mxu1 %v2557_v63  ;;  %v2513_v63 = vld [vmem:[%s5798_s8 + $0xf8] sm:$0xff] }
 0x4bf   :  { %2218 = vmatpush.msra.mxu3 %v2142_v39  ;;  %v2270_v39 = vld [vmem:[%s5796_s6 + $0x58] sm:$0xff] }
 0x4c1   :  { %2219 = vmatpush.msra.mxu3 %v2141_v0  ;;  %v2524_v0 = vld [vmem:[%s5798_s8 + $0x150] sm:$0xff] }
 0x4c3   :  { %2220 = vmatpush.msra.mxu3 %v2140_v17  ;;  %v2554_v17 = vld [vmem:[%s5798_s8 + $0x240] sm:$0xff] }
 0x4c4   :  { %2708 = vmatpush.msrb.mxu1 %v2554_v17  ;;  %v2510_v17 = vld [vmem:[%s5798_s8 + $0xe0] sm:$0xff] }
 0x4c5   :  { %2221 = vmatpush.msra.mxu3 %v2139_v1  ;;  %v2266_v1 = vld [vmem:[%s5796_s6 + $0x38] sm:$0xff] }
 0x4c7   :  { %2222 = vmatpush.msra.mxu3 %v2138_v57  ;;  %v2521_v57 = vld [vmem:[%s5798_s8 + $0x138] sm:$0xff] }
 0x4c9   :  { %2223 = vmatpush.msra.mxu3 %v2137_v36  ;;  %v2551_v36 = vld [vmem:[%s5798_s8 + $0x228] sm:$0xff] }
 0x4ca   :  { %2709 = vmatpush.msrb.mxu1 %v2551_v36  ;;  %v2507_v36 = vld [vmem:[%s5798_s8 + $0xc8] sm:$0xff] }
 0x4cb   :  { %2224 = vmatpush.msra.mxu3 %v2136_v7  ;;  %v2518_v7 = vld [vmem:[%s5798_s8 + $0x120] sm:$0xff] }
 0x4cc   :  { %2710 = vmatpush.msrb.mxu1 %v2548_v11  ;;  %v2644_v11 = vld [vmem:[%s5798_s8 + $0x510] sm:$0xff] }
 0x4cd   :  { %2225 = vmatpush.msra.mxu3 %v2135_v9  ;;  %v2515_v9 = vld [vmem:[%s5798_s8 + $0x108] sm:$0xff] }
 0x4cf   :  { %2226 = vmatpush.msra.mxu3 %v2134_v2  ;;  %v2545_v2 = vld [vmem:[%s5798_s8 + $0x1f8] sm:$0xff] }
 0x4d0   :  { %2227 = vmatmul.f32.vlgmr.msra.gmra.mxu3 %v2085_v20  ;;  %v2617_v20 = vld [vmem:[%s5798_s8 + $0x438] sm:$0xff]  ;;  %2711 = vmatpush.msrb.mxu1 %v2545_v2 }
 0x4d1   :  { %2306 = vmatpush.msrb.mxu3 %v2287_v19  ;;  %v2614_v19 = vld [vmem:[%s5798_s8 + $0x420] sm:$0xff]  ;;  %v2641_v2 = vld [vmem:[%s5798_s8 + $0x4f8] sm:$0xff] }
 0x4d2   :  { %2712 = vmatpush.msrb.mxu1 %v2542_v30  ;;  %v2638_v30 = vld [vmem:[%s5798_s8 + $0x4e0] sm:$0xff] }
 0x4d3   :  { %2307 = vmatpush.msrb.mxu3 %v2283_v22  ;;  %v2539_v22 = vld [vmem:[%s5798_s8 + $0x1c8] sm:$0xff] }
 0x4d4   :  { %2713 = vmatpush.msrb.mxu1 %v2539_v22  ;;  %v2635_v22 = vld [vmem:[%s5798_s8 + $0x4c8] sm:$0xff] }
 0x4d5   :  { %2308 = vmatpush.msrb.mxu3 %v2279_v48  ;;  %v2503_v48 = vld [vmem:[%s5798_s8 + $0xa8] sm:$0xff] }
 0x4d6   :  { %2714 = vmatpush.msrb.mxu1 %v2536_v24  ;;  %v2489_v24 = vld [vmem:[%s5798_s8 + $0x38] sm:$0xff] }
 0x4d7   :  { %2309 = vmatpush.msrb.mxu3 %v2275_v35  ;;  %v2608_v35 = vld [vmem:[%s5798_s8 + $0x3f0] sm:$0xff] }
 0x4d9   :  { %2346 = vmatpush.msra.mxu3 %v2289_v31  ;;  %v2533_v31 = vld [vmem:[%s5798_s8 + $0x198] sm:$0xff] }
 0x4da   :  { %2715 = vmatpush.msrb.mxu1 %v2533_v31  ;;  %v2626_v31 = vld [vmem:[%s5798_s8 + $0x480] sm:$0xff] }
 0x4db   :  { %2347 = vmatpush.msra.mxu3 %v2285_v45  ;;  %v2497_v45 = vld [vmem:[%s5798_s8 + $0x78] sm:$0xff] }
 0x4dc   :  { %2716 = vmatpush.msrb.mxu1 %v2530_v33 }
 0x4dd   :  { %2348 = vmatpush.msra.mxu3 %v2281_v52  ;;  %v2494_v52 = vld [vmem:[%s5798_s8 + $0x60] sm:$0xff] }
 0x4de   :  { %2761 = vmatpush.msra.mxu1 %v2528_v34 }
 0x4df   :  { %2349 = vmatpush.msra.mxu3 %v2277_v58  ;;  %v2599_v58 = vld [vmem:[%s5798_s8 + $0x3a8] sm:$0xff] }
 0x4e0   :  { %2762 = vmatpush.msra.mxu1 %v2525_v3 }
 0x4e2   :  { %2763 = vmatpush.msra.mxu1 %v2522_v26  ;;  %v2529_v26 = vld [vmem:[%s5798_s8 + $0x178] sm:$0xff] }
 0x513   :  { %v2168_v44 = vpop.f32.mrf.mxu3 }
 0x514   :  { %v2169_v25 = vadd.f32 %v3436_v16, %v2168_v44  ;;  %v2602_v44 = vld [vmem:[%s5798_s8 + $0x3c0] sm:$0xff]  ;;  %v2519_v16 = vld [vmem:[%s5798_s8 + $0x128] sm:$0xff] }
 0x515   :  { %2764 = vmatpush.msra.mxu1 %v2519_v16 }
 0x51b   :  { %v2188_v41 = vpop.f32.mrf.mxu3 }
 0x51c   :  { %v2189_v46 = vadd.f32 %v2188_v41, %v2169_v25  ;;  %v2485_v41 = vld [vmem:[%s5798_s8 + $0x18] sm:$0xff]  ;;  %v2482_v25 = vld [vmem:[%s5798_s8] sm:$0xff] }
 0x533   :  { %v2208_v4 = vpop.f32.mrf.mxu3 }
 0x534   :  { %v2209_v47 = vadd.f32 %v2208_v4, %v2189_v46  ;;  %v2590_v4 = vld [vmem:[%s5798_s8 + $0x360] sm:$0xff]  ;;  %v2587_v46 = vld [vmem:[%s5798_s8 + $0x348] sm:$0xff] }
 0x553   :  { %v2228_v28 = vpop.f32.mrf.mxu3 }
 0x554   :  { %v2229_v21 = vadd.f32 %v2228_v28, %v2209_v47  ;;  %v2665_v47 = vld [vmem:[%s5798_s8 + $0x5b8] sm:$0xff] }
 0x555   :  { %v2581_v28 = vld [vmem:[%s5798_s8 + $0x318] sm:$0xff] }
 0x556   :  { %3140 = vmatmul.msk.f32.vlgmr.msrb.gmra.mxu3 %vm123_vm0, %v2229_v21  ;;  %3141 = vmatmul.msk.f32.vlgmr.msrb.gmra.mxu2 %vm123_vm0, %v2229_v21 }
 0x557   :  { %2389 = vmatpush.msrb.mxu3 %v2271_v49  ;;  %2409 = vmatpush.msrb.mxu2 %v2272_v6  ;;  %v2578_v49 = vld [vmem:[%s5798_s8 + $0x300] sm:$0xff]  ;;  %v2576_v6 = vld [vmem:[%s5798_s8 + $0x2f0] sm:$0xff] }
 0x559   :  { %2390 = vmatpush.msrb.mxu3 %v2267_v51  ;;  %2410 = vmatpush.msrb.mxu2 %v2268_v61  ;;  %v2570_v51 = vld [vmem:[%s5798_s8 + $0x2c0] sm:$0xff]  ;;  %v2567_v61 = vld [vmem:[%s5798_s8 + $0x2a8] sm:$0xff] }
 0x55b   :  { %2391 = vmatpush.msrb.mxu3 %v2263_v60  ;;  %2411 = vmatpush.msrb.mxu2 %v2264_v29  ;;  %v2561_v60 = vld [vmem:[%s5798_s8 + $0x278] sm:$0xff]  ;;  %v2558_v29 = vld [vmem:[%s5798_s8 + $0x260] sm:$0xff] }
 0x55d   :  { %2392 = vmatpush.msrb.mxu3 %v2259_v55  ;;  %2412 = vmatpush.msrb.mxu2 %v2260_v10  ;;  %v2659_v55 = vld [vmem:[%s5798_s8 + $0x588] sm:$0xff]  ;;  %v2516_v10 = vld [vmem:[%s5798_s8 + $0x110] sm:$0xff] }
 0x55e   :  { %3142 = vmatmul.msk.f32.vlgmr.msra.gmra.mxu3 %vm123_vm0, %v2229_v21  ;;  %3143 = vmatmul.msk.f32.vlgmr.msra.gmra.mxu2 %vm123_vm0, %v2229_v21  ;;  %v2662_v21 = vld [vmem:[%s5798_s8 + $0x5a0] sm:$0xff] }
 0x55f   :  { %2449 = vmatpush.msra.mxu3 %v2274_v59  ;;  %2681 = vmatpush.msra.mxu2 %v2527_v62  ;;  %v2552_v59 = vld [vmem:[%s5798_s8 + $0x230] sm:$0xff] }
 0x560   :  { %2765 = vmatpush.msra.mxu1 %v2516_v10  ;;  %v2656_v62 = vld [vmem:[%s5798_s8 + $0x570] sm:$0xff] }
 0x561   :  { %2450 = vmatpush.msra.mxu3 %v2270_v39  ;;  %2682 = vmatpush.msra.mxu2 %v2524_v0  ;;  %v2549_v39 = vld [vmem:[%s5798_s8 + $0x218] sm:$0xff] }
 0x562   :  { %v2653_v0 = vld [vmem:[%s5798_s8 + $0x558] sm:$0xff]  ;;  %2766 = vmatpush.msra.mxu1 %v2513_v63  ;;  %v2618_v63 = vld [vmem:[%s5798_s8 + $0x440] sm:$0xff] }
 0x563   :  { %2451 = vmatpush.msra.mxu3 %v2266_v1  ;;  %2683 = vmatpush.msra.mxu2 %v2521_v57  ;;  %v2546_v1 = vld [vmem:[%s5798_s8 + $0x200] sm:$0xff] }
 0x564   :  { %v2650_v57 = vld [vmem:[%s5798_s8 + $0x540] sm:$0xff]  ;;  %2767 = vmatpush.msra.mxu1 %v2510_v17  ;;  %v2511_v17 = vld [vmem:[%s5798_s8 + $0xe8] sm:$0xff] }
 0x565   :  { %2452 = vmatpush.msra.mxu3 %v2262_v18  ;;  %2684 = vmatpush.msra.mxu2 %v2518_v7  ;;  %v2543_v18 = vld [vmem:[%s5798_s8 + $0x1e8] sm:$0xff] }
 0x566   :  { %3144 = vmatmul.msk.f32.vlgmr.msrb.gmra.mxu3 %vm123_vm0, %v4980_v53  ;;  %3145 = vmatmul.msk.f32.vlgmr.msrb.gmra.mxu2 %vm123_vm0, %v4980_v53  ;;  %v2647_v7 = vld [vmem:[%s5798_s8 + $0x528] sm:$0xff] }
 0x567   :  { %2721 = vmatpush.msrb.mxu3 %v2623_v8  ;;  %2685 = vmatpush.msra.mxu2 %v2515_v9  ;;  %v2504_v8 = vld [vmem:[%s5798_s8 + $0xb0] sm:$0xff] }
 0x568   :  { %2768 = vmatpush.msra.mxu1 %v2507_v36  ;;  %v2540_v9 = vld [vmem:[%s5798_s8 + $0x1d0] sm:$0xff]  ;;  %v2663_v36 = vld [vmem:[%s5798_s8 + $0x5a8] sm:$0xff] }
 0x569   :  { %2722 = vmatpush.msrb.mxu3 %v2620_v42  ;;  %2686 = vmatpush.msra.mxu2 %v2512_v13  ;;  %v2501_v42 = vld [vmem:[%s5798_s8 + $0x98] sm:$0xff] }
 0x56a   :  { %2769 = vmatpush.msra.mxu1 %v2504_v8  ;;  %v2537_v13 = vld [vmem:[%s5798_s8 + $0x1b8] sm:$0xff]  ;;  %v2612_v8 = vld [vmem:[%s5798_s8 + $0x410] sm:$0xff] }
 0x56b   :  { %2723 = vmatpush.msrb.mxu3 %v2617_v20  ;;  %2687 = vmatpush.msra.mxu2 %v2509_v27  ;;  %v2498_v20 = vld [vmem:[%s5798_s8 + $0x80] sm:$0xff] }
 0x56c   :  { %2770 = vmatpush.msra.mxu1 %v2501_v42  ;;  %v2534_v27 = vld [vmem:[%s5798_s8 + $0x1a0] sm:$0xff]  ;;  %v2609_v42 = vld [vmem:[%s5798_s8 + $0x3f8] sm:$0xff] }
 0x56d   :  { %2724 = vmatpush.msrb.mxu3 %v2614_v19  ;;  %2688 = vmatpush.msra.mxu2 %v2506_v32  ;;  %v2495_v19 = vld [vmem:[%s5798_s8 + $0x68] sm:$0xff] }
 0x56e   :  { %3147 = vmatmul.msk.f32.vlgmr.msra.gmra.mxu3 %vm123_vm0, %v4980_v53  ;;  %v2593_v53 = vld [vmem:[%s5798_s8 + $0x378] sm:$0xff]  ;;  %2771 = vmatpush.msra.mxu1 %v2498_v20  ;;  %v2531_v32 = vld [vmem:[%s5798_s8 + $0x188] sm:$0xff]  ;;  %v2606_v20 = vld [vmem:[%s5798_s8 + $0x3e0] sm:$0xff] }
 0x56f   :  { %2725 = vmatpush.msrb.mxu3 %v2611_v23  ;;  %2689 = vmatpush.msra.mxu2 %v2503_v48  ;;  %v2492_v23 = vld [vmem:[%s5798_s8 + $0x50] sm:$0xff] }
 0x570   :  { %2772 = vmatpush.msra.mxu1 %v2495_v19  ;;  %v2632_v48 = vld [vmem:[%s5798_s8 + $0x4b0] sm:$0xff]  ;;  %v2603_v19 = vld [vmem:[%s5798_s8 + $0x3c8] sm:$0xff] }
 0x571   :  { %2726 = vmatpush.msrb.mxu3 %v2608_v35  ;;  %2690 = vmatpush.msra.mxu2 %v2500_v5  ;;  %v2629_v35 = vld [vmem:[%s5798_s8 + $0x498] sm:$0xff]  ;;  %v2486_v5 = vld [vmem:[%s5798_s8 + $0x20] sm:$0xff] }
 0x572   :  { %2773 = vmatpush.msra.mxu1 %v2492_v23  ;;  %v2600_v23 = vld [vmem:[%s5798_s8 + $0x3b0] sm:$0xff] }
 0x573   :  { %2727 = vmatpush.msrb.mxu3 %v2605_v15  ;;  %2691 = vmatpush.msra.mxu2 %v2497_v45  ;;  %v2483_v15 = vld [vmem:[%s5798_s8 + $0x8] sm:$0xff] }
 0x574   :  { %2774 = vmatpush.msra.mxu1 %v2489_v24  ;;  %v2493_v24 = vld [vmem:[%s5798_s8 + $0x58] sm:$0xff] }
 0x575   :  { %2728 = vmatpush.msrb.mxu3 %v2602_v44  ;;  %2692 = vmatpush.msra.mxu2 %v2494_v52  ;;  %v50_v44 = vld [vmem:[%s5801_s11] ss:$4 sm:$0xf]  ;;  %v2434_v52 = vpop.f32.mrf.mxu1 }
 0x576   :  { %2775 = vmatpush.msra.mxu1 %v2486_v5  ;;  %v2460_v34 = vperm.slane %v50_v44, 2  ;;  %v2645_v5 = vld [vmem:[%s5798_s8 + $0x518] sm:$0xff] }
 0x577   :  { %2729 = vmatpush.msrb.mxu3 %v2599_v58  ;;  %2693 = vmatpush.msra.mxu2 %v2491_v40 }
 0x578   :  { %2776 = vmatpush.msra.mxu1 %v2483_v15  ;;  %v2594_v15 = vld [vmem:[%s5798_s8 + $0x380] sm:$0xff] }
 0x579   :  { %2730 = vmatpush.msrb.mxu3 %v2596_v38  ;;  %2694 = vmatpush.msra.mxu2 %v2488_v37 }
 0x57b   :  { %2731 = vmatpush.msrb.mxu3 %v2593_v53  ;;  %2695 = vmatpush.msra.mxu2 %v2485_v41  ;;  %v2458_v53 = vperm.slane %v50_v44, 0  ;;  %v2459_v41 = vperm.slane %v50_v44, 1 }
 0x57d   :  { %2732 = vmatpush.msrb.mxu3 %v2590_v4  ;;  %2696 = vmatpush.msra.mxu2 %v2482_v25 }
 0x57f   :  { %2741 = vmatpush.msrb.mxu2 %v2671_v12  ;;  %2733 = vmatpush.msrb.mxu3 %v2587_v46  ;;  %v2526_v12 = vld [vmem:[%s5798_s8 + $0x160] sm:$0xff] }
 0x581   :  { %2742 = vmatpush.msrb.mxu2 %v2668_v56  ;;  %2734 = vmatpush.msrb.mxu3 %v2584_v14  ;;  %v2523_v14 = vld [vmem:[%s5798_s8 + $0x148] sm:$0xff] }
 0x583   :  { %2743 = vmatpush.msrb.mxu2 %v2665_v47  ;;  %2735 = vmatpush.msrb.mxu3 %v2581_v28 }
 0x585   :  { %2744 = vmatpush.msrb.mxu2 %v2662_v21  ;;  %2736 = vmatpush.msrb.mxu3 %v2578_v49  ;;  %v2520_v21 = vld [vmem:[%s5798_s8 + $0x130] sm:$0xff] }
 0x587   :  { %2781 = vmatpush.msra.mxu3 %v2576_v6  ;;  %2745 = vmatpush.msrb.mxu2 %v2659_v55  ;;  %v2621_v55 = vld [vmem:[%s5798_s8 + $0x458] sm:$0xff] }
 0x589   :  { %2782 = vmatpush.msra.mxu3 %v2573_v50  ;;  %2746 = vmatpush.msrb.mxu2 %v2656_v62  ;;  %v2624_v50 = vld [vmem:[%s5798_s8 + $0x470] sm:$0xff]  ;;  %v2514_v62 = vld [vmem:[%s5798_s8 + $0x100] sm:$0xff] }
 0x58b   :  { %2783 = vmatpush.msra.mxu3 %v2570_v51  ;;  %2747 = vmatpush.msrb.mxu2 %v2653_v0  ;;  %v2461_v51 = vperm.slane %v50_v44, 3  ;;  %v2666_v0 = vld [vmem:[%s5798_s8 + $0x5c0] sm:$0xff]  ;;  %v2591_v44 = vld [vmem:[%s5798_s8 + $0x368] sm:$0xff] }
 0x58d   :  { %2784 = vmatpush.msra.mxu3 %v2567_v61  ;;  %2748 = vmatpush.msrb.mxu2 %v2650_v57 }
 0x58f   :  { %2785 = vmatpush.msra.mxu3 %v2564_v43  ;;  %2749 = vmatpush.msrb.mxu2 %v2647_v7 }
 0x591   :  { %2786 = vmatpush.msra.mxu3 %v2561_v60  ;;  %2750 = vmatpush.msrb.mxu2 %v2644_v11  ;;  %v2672_v60 = vld [vmem:[%s5798_s8 + $0x5f0] sm:$0xff]  ;;  %v2505_v11 = vld [vmem:[%s5798_s8 + $0xb8] sm:$0xff] }
 0x593   :  { %2787 = vmatpush.msra.mxu3 %v2558_v29  ;;  %2751 = vmatpush.msrb.mxu2 %v2641_v2  ;;  %v2517_v29 = vld [vmem:[%s5798_s8 + $0x118] sm:$0xff]  ;;  %v2502_v2 = vld [vmem:[%s5798_s8 + $0xa0] sm:$0xff] }
 0x595   :  { %2788 = vmatpush.msra.mxu3 %v2555_v54  ;;  %2752 = vmatpush.msrb.mxu2 %v2638_v30  ;;  %v2499_v30 = vld [vmem:[%s5798_s8 + $0x88] sm:$0xff] }
 0x597   :  { %2789 = vmatpush.msra.mxu3 %v2552_v59  ;;  %2753 = vmatpush.msrb.mxu2 %v2635_v22  ;;  %v2669_v59 = vld [vmem:[%s5798_s8 + $0x5d8] sm:$0xff]  ;;  %v2496_v22 = vld [vmem:[%s5798_s8 + $0x70] sm:$0xff] }
 0x599   :  { %2790 = vmatpush.msra.mxu3 %v2549_v39  ;;  %2754 = vmatpush.msrb.mxu2 %v2632_v48  ;;  %v2648_v48 = vld [vmem:[%s5798_s8 + $0x530] sm:$0xff] }
 0x59b   :  { %2791 = vmatpush.msra.mxu3 %v2546_v1  ;;  %2755 = vmatpush.msrb.mxu2 %v2629_v35  ;;  %v2615_v1 = vld [vmem:[%s5798_s8 + $0x428] sm:$0xff]  ;;  %v2597_v35 = vld [vmem:[%s5798_s8 + $0x398] sm:$0xff] }
 0x59d   :  { %2792 = vmatpush.msra.mxu3 %v2543_v18  ;;  %2756 = vmatpush.msrb.mxu2 %v2626_v31  ;;  %v2508_v18 = vld [vmem:[%s5798_s8 + $0xd0] sm:$0xff]  ;;  %v2490_v31 = vld [vmem:[%s5798_s8 + $0x40] sm:$0xff] }
 0x59f   :  { %2793 = vmatpush.msra.mxu3 %v2540_v9  ;;  %v2660_v9 = vld [vmem:[%s5798_s8 + $0x590] sm:$0xff] }
 0x5a1   :  { %2794 = vmatpush.msra.mxu3 %v2537_v13  ;;  %v2657_v13 = vld [vmem:[%s5798_s8 + $0x578] sm:$0xff] }
 0x5a3   :  { %2795 = vmatpush.msra.mxu3 %v2534_v27  ;;  %v2654_v27 = vld [vmem:[%s5798_s8 + $0x560] sm:$0xff] }
 0x5a5   :  { %2796 = vmatpush.msra.mxu3 %v2531_v32  ;;  %v2651_v32 = vld [vmem:[%s5798_s8 + $0x548] sm:$0xff] }
 0x5d9   :  { %v2311_v45 = vpop.f32.mrf.mxu3  ;;  %v2331_v33 = vpop.f32.mrf.mxu2 }
 0x5e1   :  { %v2351_v58 = vpop.f32.mrf.mxu3  ;;  %v2371_v40 = vpop.f32.mrf.mxu2 }
 0x5e2   :  { %v2435_v3 = vadd.f32 %v2434_v52, %v2351_v58  ;;  %v2639_v52 = vld [vmem:[%s5798_s8 + $0x4e8] sm:$0xff]  ;;  %v2588_v58 = vld [vmem:[%s5798_s8 + $0x350] sm:$0xff] }
 0x5e4   :  { %v2468_v38 = vadd.f32 %v2460_v34, %v2435_v3  ;;  %v2484_v34 = vld [vmem:[%s5798_s8 + $0x10] sm:$0xff] }
 0x5e5   :  { %v2636_v3 = vld [vmem:[%s5798_s8 + $0x4d0] sm:$0xff] }
 0x5e6   :  { %v2476_v37 = vmul.f32 0.01, %v2468_v38  ;;  %vm2472_vm0 = vcmp.gt.f32.partialorder %v2468_v38, 0.0 }
 0x5e8   :  { %v5327_v16 = vsel %vm2472_vm0, %v2468_v38, %v2476_v37  ;;  %v2585_v38 = vld [vmem:[%s5798_s8 + $0x338] sm:$0xff]  ;;  %v2670_v37 = vld [vmem:[%s5798_s8 + $0x5e0] sm:$0xff] }
 0x5e9   :  { %v2394_v4 = vpop.f32.mrf.mxu3  ;;  %v2414_v25 = vpop.f32.mrf.mxu2  ;;  %2737 = vmatmul.f32.vlgmr.msrb.gmra.mxu3 %v5327_v16 }
 0x5ea   :  { %v2395_v46 = vadd.f32 %v2394_v4, %v2311_v45  ;;  %v2415_v56 = vadd.f32 %v2414_v25, %v2331_v33  ;;  %2841 = vmatpush.msrb.mxu3 %v2529_v26  ;;  %v2642_v45 = vld [vmem:[%s5798_s8 + $0x500] sm:$0xff]  ;;  %v2487_v33 = vld [vmem:[%s5798_s8 + $0x28] sm:$0xff]  ;;  %v2633_v26 = vld [vmem:[%s5798_s8 + $0x4b8] sm:$0xff] }
 0x5eb   :  { %v2630_v4 = vld [vmem:[%s5798_s8 + $0x4a0] sm:$0xff]  ;;  %v2579_v25 = vld [vmem:[%s5798_s8 + $0x308] sm:$0xff] }
 0x5ec   :  { %v2466_v47 = vadd.f32 %v2458_v53, %v2395_v46  ;;  %v2467_v28 = vadd.f32 %v2459_v41, %v2415_v56  ;;  %2842 = vmatpush.msrb.mxu3 %v2526_v12  ;;  %v2582_v53 = vld [vmem:[%s5798_s8 + $0x320] sm:$0xff]  ;;  %v2667_v41 = vld [vmem:[%s5798_s8 + $0x5c8] sm:$0xff]  ;;  %v2664_v12 = vld [vmem:[%s5798_s8 + $0x5b0] sm:$0xff] }
 0x5ed   :  { %v2627_v46 = vld [vmem:[%s5798_s8 + $0x488] sm:$0xff]  ;;  %v2577_v56 = vld [vmem:[%s5798_s8 + $0x2f8] sm:$0xff] }
 0x5ee   :  { %vm2470_vm1 = vcmp.gt.f32.partialorder %v2466_v47, 0.0  ;;  %v2474_v49 = vmul.f32 0.01, %v2466_v47  ;;  %v2475_v6 = vmul.f32 0.01, %v2467_v28  ;;  %2843 = vmatpush.msrb.mxu3 %v2523_v14  ;;  %vm2471_vm2 = vcmp.gt.f32.partialorder %v2467_v28, 0.0 }
 0x5ef   :  { %v2625_v14 = vld [vmem:[%s5798_s8 + $0x478] sm:$0xff] }
 0x5f0   :  { %2844 = vmatpush.msrb.mxu3 %v2520_v21  ;;  %v5342_v61 = vsel %vm2470_vm1, %v2466_v47, %v2474_v49  ;;  %v5344_v43 = vsel %vm2471_vm2, %v2467_v28, %v2475_v6  ;;  %v2661_v47 = vld [vmem:[%s5798_s8 + $0x598] sm:$0xff]  ;;  %v2574_v28 = vld [vmem:[%s5798_s8 + $0x2e0] sm:$0xff]  ;;  %v2571_v6 = vld [vmem:[%s5798_s8 + $0x2c8] sm:$0xff] }
 0x5f1   :  { %v2454_v54 = vpop.f32.mrf.mxu3  ;;  %2697 = vmatmul.f32.vlgmr.msra.gmra.mxu2 %v5342_v61  ;;  %2717 = vmatmul.f32.vlgmr.msrb.gmra.mxu1 %v5344_v43  ;;  %v2622_v21 = vld [vmem:[%s5798_s8 + $0x460] sm:$0xff] }
 0x5f2   :  { %v2455_v10 = vadd.f32 %v2454_v54, %v2371_v40  ;;  %2797 = vmatmul.f32.vlgmr.msra.gmra.mxu3 %v5344_v43  ;;  %2801 = vmatpush.msra.mxu2 %v2624_v50  ;;  %v2673_v40 = vld [vmem:[%s5798_s8 + $0x5f8] sm:$0xff]  ;;  %v2658_v49 = vld [vmem:[%s5798_s8 + $0x580] sm:$0xff]  ;;  %v2619_v50 = vld [vmem:[%s5798_s8 + $0x448] sm:$0xff] }
 0x5f3   :  { %2821 = vmatpush.msrb.mxu1 %v2672_v60  ;;  %2845 = vmatpush.msrb.mxu3 %v2517_v29  ;;  %v2616_v60 = vld [vmem:[%s5798_s8 + $0x430] sm:$0xff]  ;;  %v2565_v54 = vld [vmem:[%s5798_s8 + $0x298] sm:$0xff] }
 0x5f4   :  { %v2469_v39 = vadd.f32 %v2461_v51, %v2455_v10  ;;  %2802 = vmatpush.msra.mxu2 %v2621_v55  ;;  %v2655_v51 = vld [vmem:[%s5798_s8 + $0x568] sm:$0xff]  ;;  %v2652_v29 = vld [vmem:[%s5798_s8 + $0x550] sm:$0xff]  ;;  %v2613_v55 = vld [vmem:[%s5798_s8 + $0x418] sm:$0xff] }
 0x5f5   :  { %2822 = vmatpush.msrb.mxu1 %v2669_v59  ;;  %2846 = vmatpush.msrb.mxu3 %v2514_v62  ;;  %v2649_v10 = vld [vmem:[%s5798_s8 + $0x538] sm:$0xff]  ;;  %v2562_v59 = vld [vmem:[%s5798_s8 + $0x280] sm:$0xff] }
 0x5f6   :  { %vm2473_vm3 = vcmp.gt.f32.partialorder %v2469_v39, 0.0  ;;  %v2477_v57 = vmul.f32 0.01, %v2469_v39  ;;  %2803 = vmatpush.msra.mxu2 %v2618_v63  ;;  %v2610_v62 = vld [vmem:[%s5798_s8 + $0x400] sm:$0xff] }
 0x5f7   :  { %2823 = vmatpush.msrb.mxu1 %v2666_v0  ;;  %2847 = vmatpush.msrb.mxu3 %v2511_v17  ;;  %v2646_v63 = vld [vmem:[%s5798_s8 + $0x520] sm:$0xff]  ;;  %v2607_v0 = vld [vmem:[%s5798_s8 + $0x3e8] sm:$0xff] }
 0x5f8   :  { %2804 = vmatpush.msra.mxu2 %v2615_v1  ;;  %v5382_v7 = vsel %vm2473_vm3, %v2469_v39, %v2477_v57  ;;  %v2559_v39 = vld [vmem:[%s5798_s8 + $0x268] sm:$0xff]  ;;  %v2556_v1 = vld [vmem:[%s5798_s8 + $0x250] sm:$0xff] }
 0x5f9   :  { %2824 = vmatpush.msrb.mxu1 %v2663_v36  ;;  %2848 = vmatpush.msrb.mxu3 %v2508_v18  ;;  %v2643_v17 = vld [vmem:[%s5798_s8 + $0x508] sm:$0xff]  ;;  %v2604_v57 = vld [vmem:[%s5798_s8 + $0x3d0] sm:$0xff]  ;;  %v2553_v18 = vld [vmem:[%s5798_s8 + $0x238] sm:$0xff] }
 0x5fa   :  { %2757 = vmatmul.f32.vlgmr.msrb.gmra.mxu2 %v5382_v7  ;;  %2777 = vmatmul.f32.vlgmr.msra.gmra.mxu1 %v5342_v61  ;;  %v2640_v36 = vld [vmem:[%s5798_s8 + $0x4f0] sm:$0xff] }
 0x5fb   :  { %2805 = vmatpush.msra.mxu2 %v2612_v8  ;;  %2825 = vmatpush.msrb.mxu1 %v2660_v9  ;;  %v2601_v8 = vld [vmem:[%s5798_s8 + $0x3b8] sm:$0xff] }
 0x5fc   :  { %2849 = vmatpush.msrb.mxu3 %v2505_v11  ;;  %v2637_v9 = vld [vmem:[%s5798_s8 + $0x4d8] sm:$0xff]  ;;  %v2550_v11 = vld [vmem:[%s5798_s8 + $0x220] sm:$0xff] }
 0x5fd   :  { %2806 = vmatpush.msra.mxu2 %v2609_v42  ;;  %2826 = vmatpush.msrb.mxu1 %v2657_v13  ;;  %v2598_v42 = vld [vmem:[%s5798_s8 + $0x3a0] sm:$0xff] }
 0x5fe   :  { %2850 = vmatpush.msrb.mxu3 %v2502_v2  ;;  %v2634_v13 = vld [vmem:[%s5798_s8 + $0x4c0] sm:$0xff]  ;;  %v2547_v2 = vld [vmem:[%s5798_s8 + $0x208] sm:$0xff] }
 0x5ff   :  { %2807 = vmatpush.msra.mxu2 %v2606_v20  ;;  %2827 = vmatpush.msrb.mxu1 %v2654_v27  ;;  %v2595_v20 = vld [vmem:[%s5798_s8 + $0x388] sm:$0xff] }
 0x600   :  { %2851 = vmatpush.msrb.mxu3 %v2499_v30  ;;  %v2631_v27 = vld [vmem:[%s5798_s8 + $0x4a8] sm:$0xff]  ;;  %v2544_v30 = vld [vmem:[%s5798_s8 + $0x1f0] sm:$0xff] }
 0x601   :  { %2808 = vmatpush.msra.mxu2 %v2603_v19  ;;  %2828 = vmatpush.msrb.mxu1 %v2651_v32  ;;  %v2592_v19 = vld [vmem:[%s5798_s8 + $0x370] sm:$0xff] }
 0x602   :  { %2852 = vmatpush.msrb.mxu3 %v2496_v22  ;;  %v2628_v32 = vld [vmem:[%s5798_s8 + $0x490] sm:$0xff]  ;;  %v2541_v22 = vld [vmem:[%s5798_s8 + $0x1d8] sm:$0xff] }
 0x603   :  { %2809 = vmatpush.msra.mxu2 %v2600_v23  ;;  %2829 = vmatpush.msrb.mxu1 %v2648_v48  ;;  %v2589_v23 = vld [vmem:[%s5798_s8 + $0x358] sm:$0xff]  ;;  %v2538_v48 = vld [vmem:[%s5798_s8 + $0x1c0] sm:$0xff] }
 0x604   :  { %2853 = vmatpush.msrb.mxu3 %v2493_v24  ;;  %v2586_v24 = vld [vmem:[%s5798_s8 + $0x340] sm:$0xff] }
 0x605   :  { %2810 = vmatpush.msra.mxu2 %v2597_v35  ;;  %2830 = vmatpush.msrb.mxu1 %v2645_v5  ;;  %v2535_v35 = vld [vmem:[%s5798_s8 + $0x1a8] sm:$0xff] }
 0x606   :  { %2854 = vmatpush.msrb.mxu3 %v2490_v31  ;;  %v2583_v5 = vld [vmem:[%s5798_s8 + $0x328] sm:$0xff]  ;;  %v2580_v31 = vld [vmem:[%s5798_s8 + $0x310] sm:$0xff] }
 0x607   :  { %2811 = vmatpush.msra.mxu2 %v2594_v15  ;;  %2831 = vmatpush.msrb.mxu1 %v2642_v45  ;;  %v2945_v15 = vld [vmem:[%s5799_s9 + $0x78] sm:$0xff]  ;;  %v2944_v45 = vld [vmem:[%s5799_s9 + $0x70] sm:$0xff] }
 0x608   :  { %2855 = vmatpush.msrb.mxu3 %v2487_v33  ;;  %v2943_v33 = vld [vmem:[%s5799_s9 + $0x68] sm:$0xff] }
 0x609   :  { %2812 = vmatpush.msra.mxu2 %v2591_v44  ;;  %2832 = vmatpush.msrb.mxu1 %v2639_v52  ;;  %v2942_v44 = vld [vmem:[%s5799_s9 + $0x60] sm:$0xff]  ;;  %v2939_v52 = vld [vmem:[%s5799_s9 + $0x48] sm:$0xff] }
 0x60a   :  { %2856 = vmatpush.msrb.mxu3 %v2484_v34  ;;  %v2938_v34 = vld [vmem:[%s5799_s9 + $0x40] sm:$0xff] }
 0x60b   :  { %2857 = vmatmul.f32.vlgmr.msrb.gmra.mxu3 %v5342_v61  ;;  %2813 = vmatpush.msra.mxu2 %v2588_v58  ;;  %v2568_v61 = vld [vmem:[%s5798_s8 + $0x2b0] sm:$0xff]  ;;  %v2937_v58 = vld [vmem:[%s5799_s9 + $0x38] sm:$0xff] }
 0x60c   :  { %2901 = vmatpush.msra.mxu3 %v2673_v40  ;;  %2833 = vmatpush.msrb.mxu1 %v2636_v3  ;;  %v2936_v40 = vld [vmem:[%s5799_s9 + $0x30] sm:$0xff]  ;;  %v2935_v3 = vld [vmem:[%s5799_s9 + $0x28] sm:$0xff] }
 0x60d   :  { %2814 = vmatpush.msra.mxu2 %v2585_v38  ;;  %v2934_v38 = vld [vmem:[%s5799_s9 + $0x20] sm:$0xff] }
 0x60e   :  { %2902 = vmatpush.msra.mxu3 %v2670_v37  ;;  %2834 = vmatpush.msrb.mxu1 %v2633_v26  ;;  %v2933_v37 = vld [vmem:[%s5799_s9 + $0x18] sm:$0xff] }
 0x60f   :  { %2815 = vmatpush.msra.mxu2 %v2582_v53  ;;  %v2961_v26 = vld [vmem:[%s5799_s9 + $0xf8] sm:$0xff]  ;;  %v2932_v53 = vld [vmem:[%s5799_s9 + $0x10] sm:$0xff] }
 0x610   :  { %2903 = vmatpush.msra.mxu3 %v2667_v41  ;;  %2835 = vmatpush.msrb.mxu1 %v2630_v4  ;;  %v2960_v41 = vld [vmem:[%s5799_s9 + $0xf0] sm:$0xff]  ;;  %v2931_v4 = vld [vmem:[%s5799_s9 + $0x8] sm:$0xff] }
 0x611   :  { %2816 = vmatpush.msra.mxu2 %v2579_v25  ;;  %v2959_v25 = vld [vmem:[%s5799_s9 + $0xe8] sm:$0xff] }
 0x612   :  { %2904 = vmatpush.msra.mxu3 %v2664_v12  ;;  %2836 = vmatpush.msrb.mxu1 %v2627_v46  ;;  %v2930_v12 = vld [vmem:[%s5799_s9] sm:$0xff] }
 0x613   :  { %2817 = vmatmul.f32.vlgmr.msra.gmra.mxu2 %v5327_v16  ;;  %2837 = vmatmul.f32.vlgmr.msrb.gmra.mxu1 %v5382_v7  ;;  %v2958_v46 = vld [vmem:[%s5799_s9 + $0xe0] sm:$0xff] }
 0x614   :  { %2861 = vmatpush.msrb.mxu2 %v2577_v56  ;;  %2881 = vmatpush.msra.mxu1 %v2625_v14  ;;  %v2957_v56 = vld [vmem:[%s5799_s9 + $0xd8] sm:$0xff]  ;;  %v2956_v14 = vld [vmem:[%s5799_s9 + $0xd0] sm:$0xff] }
 0x615   :  { %2905 = vmatpush.msra.mxu3 %v2661_v47  ;;  %v2955_v47 = vld [vmem:[%s5799_s9 + $0xc8] sm:$0xff] }
 0x616   :  { %2862 = vmatpush.msrb.mxu2 %v2574_v28  ;;  %2882 = vmatpush.msra.mxu1 %v2622_v21  ;;  %v5704_v28 = vld [vmem:[%s5801_s11 + $0x1] ss:$4 sm:$0x7] }
 0x617   :  { %2906 = vmatpush.msra.mxu3 %v2658_v49  ;;  %v2954_v21 = vld [vmem:[%s5799_s9 + $0xc0] sm:$0xff]  ;;  %v2953_v49 = vld [vmem:[%s5799_s9 + $0xb8] sm:$0xff] }
 0x618   :  { %2863 = vmatpush.msrb.mxu2 %v2571_v6  ;;  %2883 = vmatpush.msra.mxu1 %v2619_v50  ;;  %v2675_v6 = vperm.slane %v5704_v28, 0  ;;  %v2952_v50 = vld [vmem:[%s5799_s9 + $0xb0] sm:$0xff] }
 0x619   :  { %2907 = vmatpush.msra.mxu3 %v2655_v51 }
 0x61a   :  { %2864 = vmatpush.msrb.mxu2 %v2568_v61  ;;  %2884 = vmatpush.msra.mxu1 %v2616_v60  ;;  %v2951_v61 = vld [vmem:[%s5799_s9 + $0xa8] sm:$0xff] }
 0x61b   :  { %2908 = vmatpush.msra.mxu3 %v2652_v29  ;;  %v2950_v29 = vld [vmem:[%s5799_s9 + $0xa0] sm:$0xff] }
 0x61c   :  { %2865 = vmatpush.msrb.mxu2 %v2565_v54  ;;  %2885 = vmatpush.msra.mxu1 %v2613_v55 }
 0x61d   :  { %2909 = vmatpush.msra.mxu3 %v2649_v10 }
 0x61e   :  { %2866 = vmatpush.msrb.mxu2 %v2562_v59  ;;  %2886 = vmatpush.msra.mxu1 %v2610_v62  ;;  %v2949_v59 = vld [vmem:[%s5799_s9 + $0x98] sm:$0xff]  ;;  %v2948_v62 = vld [vmem:[%s5799_s9 + $0x90] sm:$0xff] }
 0x61f   :  { %2910 = vmatpush.msra.mxu3 %v2646_v63 }
 0x620   :  { %2867 = vmatpush.msrb.mxu2 %v2559_v39  ;;  %2887 = vmatpush.msra.mxu1 %v2607_v0  ;;  %v2947_v0 = vld [vmem:[%s5799_s9 + $0x88] sm:$0xff] }
 0x621   :  { %2911 = vmatpush.msra.mxu3 %v2643_v17 }
 0x622   :  { %2868 = vmatpush.msrb.mxu2 %v2556_v1  ;;  %2888 = vmatpush.msra.mxu1 %v2604_v57  ;;  %v2977_v1 = vld [vmem:[%s5799_s9 + $0x178] sm:$0xff]  ;;  %v2976_v57 = vld [vmem:[%s5799_s9 + $0x170] sm:$0xff] }
 0x623   :  { %2912 = vmatpush.msra.mxu3 %v2640_v36  ;;  %v2946_v36 = vld [vmem:[%s5799_s9 + $0x80] sm:$0xff] }
 0x624   :  { %2869 = vmatpush.msrb.mxu2 %v2553_v18  ;;  %2889 = vmatpush.msra.mxu1 %v2601_v8  ;;  %v2975_v8 = vld [vmem:[%s5799_s9 + $0x168] sm:$0xff] }
 0x625   :  { %2913 = vmatpush.msra.mxu3 %v2637_v9 }
 0x626   :  { %2870 = vmatpush.msrb.mxu2 %v2550_v11  ;;  %2890 = vmatpush.msra.mxu1 %v2598_v42  ;;  %v2974_v11 = vld [vmem:[%s5799_s9 + $0x160] sm:$0xff]  ;;  %v2973_v42 = vld [vmem:[%s5799_s9 + $0x158] sm:$0xff] }
 0x627   :  { %2914 = vmatpush.msra.mxu3 %v2634_v13  ;;  %v2972_v13 = vld [vmem:[%s5799_s9 + $0x150] sm:$0xff] }
 0x628   :  { %2871 = vmatpush.msrb.mxu2 %v2547_v2  ;;  %2891 = vmatpush.msra.mxu1 %v2595_v20  ;;  %v2971_v2 = vld [vmem:[%s5799_s9 + $0x148] sm:$0xff]  ;;  %v2676_v20 = vperm.slane %v5704_v28, 1 }
 0x629   :  { %2915 = vmatpush.msra.mxu3 %v2631_v27 }
 0x62a   :  { %2872 = vmatpush.msrb.mxu2 %v2544_v30  ;;  %2892 = vmatpush.msra.mxu1 %v2592_v19  ;;  %v2970_v30 = vld [vmem:[%s5799_s9 + $0x140] sm:$0xff] }
 0x62b   :  { %2916 = vmatpush.msra.mxu3 %v2628_v32  ;;  %v2969_v32 = vld [vmem:[%s5799_s9 + $0x138] sm:$0xff] }
 0x62c   :  { %2917 = vmatmul.f32.vlgmr.msra.gmra.mxu3 %v5382_v7  ;;  %2873 = vmatpush.msrb.mxu2 %v2541_v22  ;;  %v2532_v7 = vld [vmem:[%s5798_s8 + $0x190] sm:$0xff] }
 0x62d   :  { %2893 = vmatpush.msra.mxu1 %v2589_v23  ;;  %3019 = vmatpush.msrb.mxu3 %v2977_v1  ;;  %v2968_v22 = vld [vmem:[%s5799_s9 + $0x130] sm:$0xff]  ;;  %v2967_v23 = vld [vmem:[%s5799_s9 + $0x128] sm:$0xff] }
 0x62e   :  { %2874 = vmatpush.msrb.mxu2 %v2538_v48 }
 0x62f   :  { %2894 = vmatpush.msra.mxu1 %v2586_v24  ;;  %3020 = vmatpush.msrb.mxu3 %v2976_v57 }
 0x630   :  { %2875 = vmatpush.msrb.mxu2 %v2535_v35 }
 0x631   :  { %2895 = vmatpush.msra.mxu1 %v2583_v5  ;;  %3021 = vmatpush.msrb.mxu3 %v2975_v8 }
 0x632   :  { %2876 = vmatpush.msrb.mxu2 %v2532_v7 }
 0x633   :  { %2896 = vmatpush.msra.mxu1 %v2580_v31  ;;  %2877 = vmatmul.f32.vlgmr.msrb.gmra.mxu2 %v5344_v43  ;;  %v2941_v43 = vld [vmem:[%s5799_s9 + $0x58] sm:$0xff] }
 0x634   :  { %2897 = vmatmul.f32.vlgmr.msra.gmra.mxu1 %v5327_v16  ;;  %2979 = vmatpush.msra.mxu2 %v2945_v15  ;;  %v2940_v16 = vld [vmem:[%s5799_s9 + $0x50] sm:$0xff] }
 0x635   :  { %2999 = vmatpush.msrb.mxu1 %v2961_v26  ;;  %3022 = vmatpush.msrb.mxu3 %v2974_v11 }
 0x636   :  { %2980 = vmatpush.msra.mxu2 %v2944_v45  ;;  %v2966_v45 = vld [vmem:[%s5799_s9 + $0x120] sm:$0xff] }
 0x637   :  { %3000 = vmatpush.msrb.mxu1 %v2960_v41  ;;  %3023 = vmatpush.msrb.mxu3 %v2973_v42 }
 0x638   :  { %2981 = vmatpush.msra.mxu2 %v2943_v33  ;;  %v2965_v33 = vld [vmem:[%s5799_s9 + $0x118] sm:$0xff] }
 0x639   :  { %3001 = vmatpush.msrb.mxu1 %v2959_v25  ;;  %3024 = vmatpush.msrb.mxu3 %v2972_v13 }
 0x63a   :  { %2982 = vmatpush.msra.mxu2 %v2942_v44 }
 0x63b   :  { %3002 = vmatpush.msrb.mxu1 %v2958_v46  ;;  %3025 = vmatpush.msrb.mxu3 %v2971_v2 }
 0x63c   :  { %2983 = vmatpush.msra.mxu2 %v2941_v43  ;;  %v2964_v43 = vld [vmem:[%s5799_s9 + $0x110] sm:$0xff] }
 0x63d   :  { %3003 = vmatpush.msrb.mxu1 %v2957_v56  ;;  %3026 = vmatpush.msrb.mxu3 %v2970_v30 }
 0x63e   :  { %2984 = vmatpush.msra.mxu2 %v2940_v16  ;;  %v2963_v16 = vld [vmem:[%s5799_s9 + $0x108] sm:$0xff] }
 0x63f   :  { %3004 = vmatpush.msrb.mxu1 %v2956_v14  ;;  %3027 = vmatpush.msrb.mxu3 %v2969_v32 }
 0x640   :  { %2985 = vmatpush.msra.mxu2 %v2939_v52  ;;  %v2962_v52 = vld [vmem:[%s5799_s9 + $0x100] sm:$0xff]  ;;  %s3479_s9 = smov [#allocation5]  }
 0x641   :  { %3005 = vmatpush.msrb.mxu1 %v2955_v47  ;;  %3028 = vmatpush.msrb.mxu3 %v2968_v22  ;;  %s3047_s15 = sshll.u32 %s3479_s9, 4  ;;  %s3048_s15 = int_to_ptr.vmem [resolvable:$true] %s3047_s15 }
 0x642   :  { %2986 = vmatpush.msra.mxu2 %v2938_v34  ;;  %v2677_v34 = vperm.slane %v5704_v28, 2 }
 0x643   :  { %3006 = vmatpush.msrb.mxu1 %v2954_v21  ;;  %3029 = vmatpush.msrb.mxu3 %v2967_v23 }
 0x644   :  { %2987 = vmatpush.msra.mxu2 %v2937_v58 }
 0x645   :  { %3007 = vmatpush.msrb.mxu1 %v2953_v49  ;;  %3030 = vmatpush.msrb.mxu3 %v2966_v45 }
 0x646   :  { %2988 = vmatpush.msra.mxu2 %v2936_v40 }
 0x647   :  { %3008 = vmatpush.msrb.mxu1 %v2952_v50  ;;  %3031 = vmatpush.msrb.mxu3 %v2965_v33 }
 0x648   :  { %2989 = vmatpush.msra.mxu2 %v2935_v3 }
 0x649   :  { %3009 = vmatpush.msrb.mxu1 %v2951_v61  ;;  %3032 = vmatpush.msrb.mxu3 %v2964_v43 }
 0x64a   :  { %2990 = vmatpush.msra.mxu2 %v2934_v38 }
 0x64b   :  { %3010 = vmatpush.msrb.mxu1 %v2950_v29  ;;  %3033 = vmatpush.msrb.mxu3 %v2963_v16 }
 0x64c   :  { %2991 = vmatpush.msra.mxu2 %v2933_v37 }
 0x64d   :  { %3011 = vmatpush.msrb.mxu1 %v2949_v59  ;;  %3034 = vmatpush.msrb.mxu3 %v2962_v52 }
 0x64e   :  { %2992 = vmatpush.msra.mxu2 %v2932_v53 }
 0x64f   :  { %3012 = vmatpush.msrb.mxu1 %v2948_v62 }
 0x650   :  { %2993 = vmatpush.msra.mxu2 %v2931_v4 }
 0x651   :  { %3013 = vmatpush.msrb.mxu1 %v2947_v0 }
 0x652   :  { %2994 = vmatpush.msra.mxu2 %v2930_v12  ;;  %v3438_v12 = vld [vmem:[%s5801_s11 + $0x2] ss:$0 sm:$0xff] }
 0x653   :  { %3014 = vmatpush.msrb.mxu1 %v2946_v36 }
 0x66c   :  { %v2738_v10 = vpop.f32.mrf.mxu3 }
 0x66e   :  { %v2718_v54 = vpop.f32.mrf.mxu1 }
 0x674   :  { %v2698_v51 = vpop.f32.mrf.mxu2 }
 0x675   :  { %v2699_v60 = vadd.f32 %v2698_v51, %v2675_v6  ;;  %v2798_v48 = vpop.f32.mrf.mxu3 }
 0x677   :  { %v2719_v55 = vadd.f32 %v2718_v54, %v2699_v60  ;;  %v2778_v27 = vpop.f32.mrf.mxu1 }
 0x678   :  { %v2779_v19 = vadd.f32 %v2778_v27, %v2676_v20 }
 0x679   :  { %v2739_v63 = vadd.f32 %v2738_v10, %v2719_v55 }
 0x67a   :  { %v2799_v24 = vadd.f32 %v2798_v48, %v2779_v19 }
 0x67d   :  { %v2758_v39 = vpop.f32.mrf.mxu2 }
 0x67e   :  { %v2759_v17 = vadd.f32 %v2758_v39, %v2739_v63 }
 0x680   :  { %vm2921_vm4 = vcmp.gt.f32.partialorder %v2759_v17, 0.0  ;;  %v2924_v18 = vmul.f32 0.01, %v2759_v17 }
 0x682   :  { %v2927_v9 = vsel %vm2921_vm4, %v2759_v17, %v2924_v18 }
 0x683   :  { %2995 = vmatmul.f32.vlgmr.msra.gmra.mxu2 %v2927_v9 }
 0x68e   :  { %v2858_v58 = vpop.f32.mrf.mxu3 }
 0x68f   :  { %v2859_v40 = vadd.f32 %v2858_v58, %v2677_v34 }
 0x690   :  { %v2838_v7 = vpop.f32.mrf.mxu1 }
 0x696   :  { %v2818_v35 = vpop.f32.mrf.mxu2 }
 0x697   :  { %v2819_v5 = vadd.f32 %v2818_v35, %v2799_v24 }
 0x699   :  { %v2839_v31 = vadd.f32 %v2838_v7, %v2819_v5 }
 0x69b   :  { %vm2922_vm5 = vcmp.gt.f32.partialorder %v2839_v31, 0.0  ;;  %v2925_v15 = vmul.f32 0.01, %v2839_v31 }
 0x69d   :  { %v2928_v44 = vsel %vm2922_vm5, %v2839_v31, %v2925_v15 }
 0x69e   :  { %3015 = vmatmul.f32.vlgmr.msrb.gmra.mxu1 %v2928_v44 }
 0x6af   :  { %v2918_v53 = vpop.f32.mrf.mxu3 }
 0x6b1   :  { %v2898_v37 = vpop.f32.mrf.mxu1 }
 0x6b6   :  { %v2878_v3 = vpop.f32.mrf.mxu2 }
 0x6b7   :  { %v2879_v38 = vadd.f32 %v2878_v3, %v2859_v40 }
 0x6b9   :  { %v2899_v26 = vadd.f32 %v2898_v37, %v2879_v38 }
 0x6bb   :  { %v2919_v41 = vadd.f32 %v2918_v53, %v2899_v26 }
 0x6bd   :  { %vm2923_vm6 = vcmp.gt.f32.partialorder %v2919_v41, 0.0  ;;  %v2926_v4 = vmul.f32 0.01, %v2919_v41 }
 0x6bf   :  { %v2929_v25 = vsel %vm2923_vm6, %v2919_v41, %v2926_v4 }
 0x6c0   :  { %3035 = vmatmul.f32.vlgmr.msrb.gmra.mxu3 %v2929_v25 }
 0x706   :  { %v2996_v46 = vpop.f32.mrf.mxu2 }
 0x707   :  { %v2997_v14 = vadd.f32 %v3438_v12, %v2996_v46 }
 0x71b   :  { %v3016_v56 = vpop.f32.mrf.mxu1 }
 0x71c   :  { %v3017_v47 = vadd.f32 %v3016_v56, %v2997_v14 }
 0x743   :  { %v3036_v28 = vpop.f32.mrf.mxu3 }
 0x744   :  { %v3037_v21 = vadd.f32 %v3036_v28, %v3017_v47 }
 0x746   :  { %3443 = vtanh.f32 %v3037_v21 }
 0x74c   :  { %v3444_v49 = vpop.eup %3443 }
 0x74d   :  { %3041 = vst.msk [vmem:[#allocation5] sm:$0x3] %vm3040_vm7, %v3444_v49 }
 0x74e   :  { %3052 = dma.vmem_to_hbm [thread:$0]  %s3048_s15, 32, %s3050_s7, [#allocation6]  }
 0x74f   :  { %3469 = dma.done.wait [#allocation6], 32  }
 0x750   :  { %3470 = vsyncadd [#allocation6], 4294967264 }
 0x751   :  { %3057 = vsyncpa [#allocation6], 1 }

</bundles_post_ra>
